<compile_context>
chip_gen: v7x
topology: tpu7x:2x2x1
jax: 0.10.0
libtpu: 0.0.40
codegen_flags: <defaults>
</compile_context>

<pallas_src>
import functools

import jax
import jax.numpy as jnp
from jax import lax
from jax.experimental import pallas as pl
from jax.experimental.pallas import tpu as pltpu


# -----------------------------------------------------------------------------
# In-kernel building blocks (operate on flat (M, lanes) f32 values, M = Bt*T0)
# -----------------------------------------------------------------------------
def _shift_rows(v, s, t_in, T0):
    """operand[r] = v[r + s] staying inside each length-T0 sample, 0 outside."""
    if s == 0:
        return v
    M, C = v.shape
    if abs(s) >= T0:
        return jnp.zeros_like(v)
    pad = jnp.zeros((abs(s), C), v.dtype)
    if s > 0:
        shifted = jnp.concatenate([v[s:, :], pad], axis=0)
        if t_in is None:                     # single sample per block
            return shifted
        valid = t_in < (T0 - s)
    else:
        shifted = jnp.concatenate([pad, v[:M + s, :]], axis=0)
        if t_in is None:
            return shifted
        valid = t_in >= (-s)
    return jnp.where(valid, shifted, jnp.zeros_like(shifted))


def _conv_blocked(x, taps, bias, *, cin, f_in, expand, t_in, T0,
                  pre_relu=False, post_relu=False,
                  compute_dtype=jnp.bfloat16):
    """'same' Conv1d (+ optional fused x2 nearest upsample) on the
    phase-blocked layout.

    x      : (M, f_in*cin) f32; row r = blocked time t = r % T0 of sample
             r // T0; lanes [p*cin:(p+1)*cin] hold full-res time f_in*t + p.
    taps   : list of (time_offset, weight (cin, cout)) in compute_dtype.
    bias   : (1, cout) f32.
    expand : 1, or 2 to fuse the preceding nearest x2 upsample.
    returns: (M, f_out*cout) f32 with f_out = f_in * expand.
    """
    if pre_relu:
        x = jnp.maximum(x, 0.0)
    xc = x.astype(compute_dtype)
    M = x.shape[0]
    f_out = f_in * expand
    cout = taps[0][1].shape[1]

    operand_cache = {}

    def operand(s, q_src):
        key = (s, q_src)
        if key not in operand_cache:
            v = xc[:, q_src * cin:(q_src + 1) * cin]
            operand_cache[key] = _shift_rows(v, s, t_in, T0)
        return operand_cache[key]

    phases = []
    for p in range(f_out):
        # Group taps hitting the same (row shift, source phase): one matmul
        # per group with the tap weights pre-summed (W_even/W_odd folding).
        groups = {}
        for off, w in taps:
            s, q = divmod(p + off, f_out)          # floor divmod
            key = (s, q // expand)                 # nearest-upsample source
            groups[key] = w if key not in groups else groups[key] + w
        acc = jnp.zeros((M, cout), jnp.float32)
        for (s, q_src), w in groups.items():
            if abs(s) >= T0:                       # fully outside the sample
                continue
            acc = acc + jnp.dot(operand(s, q_src), w,
                                preferred_element_type=jnp.float32)
        acc = acc + bias
        if post_relu:
            acc = jnp.maximum(acc, 0.0)
        phases.append(acc)
    return phases[0] if f_out == 1 else jnp.concatenate(phases, axis=1)


# -----------------------------------------------------------------------------
# Fused decoder kernel: one grid step == one stack of Bt batch samples
# -----------------------------------------------------------------------------
def _decoder_kernel(*args, n_w, down_t, depth, growth, T0, compute_dtype):
    x_ref = args[0]
    w_refs = args[1:1 + n_w]
    o_ref = args[1 + n_w]

    it = iter(w_refs)

    def nxt():
        return next(it)[...]            # weights are small & VMEM-resident

    M = x_ref.shape[0]
    t_in = None
    if M != T0:                          # per-sample halo mask only if stacked
        t_in = lax.broadcasted_iota(jnp.int32, (M, 1), 0) % T0

    def conv3(x, dilation, f_in, expand=1, pre_relu=False, post_relu=False):
        w0, w1, w2, b = nxt(), nxt(), nxt(), nxt()
        return _conv_blocked(
            x, [(-dilation, w0), (0, w1), (dilation, w2)], b,
            cin=w0.shape[0], f_in=f_in, expand=expand, t_in=t_in, T0=T0,
            pre_relu=pre_relu, post_relu=post_relu,
            compute_dtype=compute_dtype)

    def conv1(x, f_in, pre_relu=False, post_relu=False):
        w, b = nxt(), nxt()
        return _conv_blocked(
            x, [(0, w)], b, cin=w.shape[0], f_in=f_in, expand=1,
            t_in=t_in, T0=T0, pre_relu=pre_relu, post_relu=post_relu,
            compute_dtype=compute_dtype)

    x = x_ref[...].astype(jnp.float32)

    # Conv1d(output_emb_width, width, 3, 1, 1) + ReLU
    x = conv3(x, 1, 1, post_relu=True)

    f = 1
    for _ in range(down_t):
        # Resnet1D(width, depth, growth, reverse_dilation=True), norm=None
        for j in range(depth):
            d = growth ** (depth - 1 - j)           # reversed dilations
            h = conv3(x, d, f, pre_relu=True)       # ReLU -> dilated k=3 conv
            h = conv1(h, f, pre_relu=True)          # ReLU -> k=1 conv
            x = x + h                               # residual (f32)
        # Upsample(scale_factor=2, nearest) folded into Conv1d(width,width,3)
        x = conv3(x, 1, f, expand=2)
        f *= 2

    # Conv1d(width, width, 3, 1, 1) + ReLU
    x = conv3(x, 1, f, post_relu=True)
    # Conv1d(width, input_emb_width [lane-padded], 3, 1, 1)
    x = conv3(x, 1, f)

    o_ref[...] = x.astype(o_ref.dtype)              # lane-dense (128) store


# -----------------------------------------------------------------------------
# Wrapper: layout plumbing, weight flattening, pallas_call setup
# -----------------------------------------------------------------------------
def decoder_forward(x_ncl, params, cfg, *, compute_dtype=jnp.bfloat16,
                    batch_rows_target=1024):
    """x_ncl: (B, output_emb_width, T0) -> (B, input_emb_width, T0 * 2**down_t)."""
    down_t = cfg["down_t"]
    depth = cfg["depth"]
    growth = cfg["dilation_growth_rate"]

    B, C0, T0 = x_ncl.shape
    f_final = 2 ** down_t
    T_out = T0 * f_final
    c_out = cfg["input_emb_width"]
    # pad the last conv's output channels so the final store is 128-lane dense
    c_out_pad = max(c_out, max(1, 128 // f_final))

    # batch tile: stack as many samples as possible into the matmul M dim
    bt = B
    for cand in range(B, 0, -1):
        if B % cand == 0 and cand * T0 <= max(T0, batch_rows_target):
            bt = cand
            break
    if (bt * T0) % 8 != 0:               # BlockSpec sublane rule fallback
        bt = B
    grid = (B // bt,)

    # channels-last, flat rows: row = b*T0 + t
    x_rows = jnp.transpose(x_ncl, (0, 2, 1)).astype(jnp.float32)
    x_rows = x_rows.reshape(B * T0, C0)

    # --- flatten weights in kernel consumption order -------------------------
    flat = []

    def add_conv(w, b, cout_pad=None):
        w = jnp.asarray(w, jnp.float32)
        b = jnp.asarray(b, jnp.float32)
        K, _, cout = w.shape
        if cout_pad is not None and cout_pad > cout:
            w = jnp.pad(w, ((0, 0), (0, 0), (0, cout_pad - cout)))
            b = jnp.pad(b, (0, cout_pad - cout))
            cout = cout_pad
        for k in range(K):
            flat.append(w[k].astype(compute_dtype))   # (Cin, Cout) per tap
        flat.append(b.reshape(1, cout))                # bias kept in f32

    add_conv(params["in_w"], params["in_b"])
    for i in range(down_t):
        for j in range(depth):
            w1, b1, w2, b2 = params[f"res_{i}_{j}"]
            add_conv(w1, b1)
            add_conv(w2, b2)
        uw, ub = params[f"up_{i}"]
        add_conv(uw, ub)
    add_conv(params["mid_w"], params["mid_b"])
    add_conv(params["out_w"], params["out_b"], cout_pad=c_out_pad)
    n_w = len(flat)

    kernel = functools.partial(_decoder_kernel, n_w=n_w, down_t=down_t,
                               depth=depth, growth=growth, T0=T0,
                               compute_dtype=compute_dtype)

    out_rows = pl.pallas_call(
        kernel,
        out_shape=jax.ShapeDtypeStruct((B * T0, f_final * c_out_pad),
                                       jnp.float32),
        grid=grid,
        in_specs=[pl.BlockSpec((bt * T0, C0), lambda g: (g, 0))]
        # all weights: full block, constant index -> fetched once, resident
        + [pl.BlockSpec(w.shape, lambda g: (0, 0)) for w in flat],
        out_specs=pl.BlockSpec((bt * T0, f_final * c_out_pad),
                               lambda g: (g, 0)),
        compiler_params=pltpu.CompilerParams(
            dimension_semantics=("parallel",),         # batch groups -> TCs
            vmem_limit_bytes=64 * 1024 * 1024),
    )(x_rows, *flat)

    # de-block: lane (p, c) of row (b, t) is full-res time f_final*t + p
    out = out_rows.reshape(B, T0, f_final, c_out_pad)[..., :c_out]
    out = out.reshape(B, T_out, c_out)
    return jnp.transpose(out, (0, 2, 1))               # back to (B, C, T_out)


# -----------------------------------------------------------------------------
# Pure-JAX reference (independent path: pad + per-tap einsum + repeat)
# -----------------------------------------------------------------------------
def _ref_conv1d(x_btc, w, b, dilation=1):
    K, _, _ = w.shape
    pad = dilation * (K - 1) // 2
    T = x_btc.shape[1]
    xp = jnp.pad(x_btc, ((0, 0), (pad, pad), (0, 0)))
    y = b[None, None, :].astype(jnp.float32)
    for k in range(K):
        y = y + jnp.einsum("btc,cd->btd",
                           xp[:, k * dilation:k * dilation + T, :], w[k],
                           precision=lax.Precision.HIGHEST)
    return y


def decoder_reference(x_ncl, params, cfg):
    down_t, depth = cfg["down_t"], cfg["depth"]
    growth = cfg["dilation_growth_rate"]
    x = jnp.transpose(x_ncl, (0, 2, 1)).astype(jnp.float32)
    x = jax.nn.relu(_ref_conv1d(x, params["in_w"], params["in_b"]))
    for i in range(down_t):
        for j in range(depth):
            d = growth ** (depth - 1 - j)
            w1, b1, w2, b2 = params[f"res_{i}_{j}"]
            h = _ref_conv1d(jax.nn.relu(x), w1, b1, d)
            h = _ref_conv1d(jax.nn.relu(h), w2, b2)
            x = x + h
        x = jnp.repeat(x, 2, axis=1)
        uw, ub = params[f"up_{i}"]
        x = _ref_conv1d(x, uw, ub)
    x = jax.nn.relu(_ref_conv1d(x, params["mid_w"], params["mid_b"]))
    x = _ref_conv1d(x, params["out_w"], params["out_b"])
    return jnp.transpose(x, (0, 2, 1))


# -----------------------------------------------------------------------------
# Deterministic parameter construction ((K, Cin, Cout) layout)
# -----------------------------------------------------------------------------
def _init_conv(key, k, cin, cout):
    kw, kb = jax.random.split(key)
    scale = 1.0 / jnp.sqrt(jnp.float32(k * cin))
    w = jax.random.normal(kw, (k, cin, cout), jnp.float32) * scale
    b = jax.random.normal(kb, (cout,), jnp.float32) * scale
    return w, b


def make_params(key, cfg):
    width = cfg["width"]
    params = {}
    key, k0 = jax.random.split(key)
    params["in_w"], params["in_b"] = _init_conv(k0, 3, cfg["output_emb_width"],
                                                width)
    for i in range(cfg["down_t"]):
        for j in range(cfg["depth"]):
            key, k1, k2 = jax.random.split(key, 3)
            w1, b1 = _init_conv(k1, 3, width, width)   # dilated 3-tap conv
            w2, b2 = _init_conv(k2, 1, width, width)   # 1x1 conv
            params[f"res_{i}_{j}"] = (w1, b1, w2, b2)
        key, ku = jax.random.split(key)
        params[f"up_{i}"] = _init_conv(ku, 3, width, width)
    key, km, ko = jax.random.split(key, 3)
    params["mid_w"], params["mid_b"] = _init_conv(km, 3, width, width)
    params["out_w"], params["out_b"] = _init_conv(ko, 3, width,
                                                  cfg["input_emb_width"])
    return params


# -----------------------------------------------------------------------------
if __name__ == "__main__":
    cfg = dict(
        input_emb_width=3,
        output_emb_width=32,
        down_t=2,
        width=32,
        depth=2,
        dilation_growth_rate=3,
    )
    B, T = 2, 8

    key = jax.random.PRNGKey(0)
    key, kx, kp = jax.random.split(key, 3)
    x = jax.random.normal(kx, (B, cfg["output_emb_width"], T), jnp.float32)
    params = make_params(kp, cfg)

    expected_shape = (B, cfg["input_emb_width"], T * 2 ** cfg["down_t"])
    ref = jax.block_until_ready(decoder_reference(x, params, cfg))
    assert ref.shape == expected_shape

    # 1) f32-operand path: tight check of tap / halo / dilation / phase math.
    out_f32 = jax.block_until_ready(
        decoder_forward(x, params, cfg, compute_dtype=jnp.float32))
    assert out_f32.shape == expected_shape, (out_f32.shape, expected_shape)
    assert bool(jnp.all(jnp.isfinite(out_f32)))
    err_f32 = float(jnp.max(jnp.abs(out_f32 - ref)))
    assert err_f32 < 5e-3, f"f32 path max abs error vs reference: {err_f32}"

    # 2) bf16-operand path (f32 accumulation): the production configuration.
    #    Tolerance is relative and only loosened for bf16 operand rounding
    #    accumulated over ~13 chained convs; indexing bugs show up as O(1).
    out_bf16 = jax.block_until_ready(
        decoder_forward(x, params, cfg, compute_dtype=jnp.bfloat16))
    assert out_bf16.shape == expected_shape
    assert bool(jnp.all(jnp.isfinite(out_bf16)))
    scale = float(jnp.max(jnp.abs(ref)))
    err_bf16 = float(jnp.max(jnp.abs(out_bf16 - ref)))
    assert err_bf16 < 0.1 * scale, (
        f"bf16 path relative error vs reference: {err_bf16 / scale}")

    print("KERNEL_OK")
</pallas_src>

<mosaic_0001>
module attributes {stable_mosaic.version = 11 : i64} {
  func.func @_decoder_kernel(%arg0: i32, %arg1: memref<16x32xf32, #tpu.memory_space<vmem>>, %arg2: memref<32x32xf32, #tpu.memory_space<vmem>>, %arg3: memref<32x32xf32, #tpu.memory_space<vmem>>, %arg4: memref<32x32xf32, #tpu.memory_space<vmem>>, %arg5: memref<1x32xf32, #tpu.memory_space<vmem>>, %arg6: memref<32x32xf32, #tpu.memory_space<vmem>>, %arg7: memref<32x32xf32, #tpu.memory_space<vmem>>, %arg8: memref<32x32xf32, #tpu.memory_space<vmem>>, %arg9: memref<1x32xf32, #tpu.memory_space<vmem>>, %arg10: memref<32x32xf32, #tpu.memory_space<vmem>>, %arg11: memref<1x32xf32, #tpu.memory_space<vmem>>, %arg12: memref<32x32xf32, #tpu.memory_space<vmem>>, %arg13: memref<32x32xf32, #tpu.memory_space<vmem>>, %arg14: memref<32x32xf32, #tpu.memory_space<vmem>>, %arg15: memref<1x32xf32, #tpu.memory_space<vmem>>, %arg16: memref<32x32xf32, #tpu.memory_space<vmem>>, %arg17: memref<1x32xf32, #tpu.memory_space<vmem>>, %arg18: memref<32x32xf32, #tpu.memory_space<vmem>>, %arg19: memref<32x32xf32, #tpu.memory_space<vmem>>, %arg20: memref<32x32xf32, #tpu.memory_space<vmem>>, %arg21: memref<1x32xf32, #tpu.memory_space<vmem>>, %arg22: memref<32x32xf32, #tpu.memory_space<vmem>>, %arg23: memref<32x32xf32, #tpu.memory_space<vmem>>, %arg24: memref<32x32xf32, #tpu.memory_space<vmem>>, %arg25: memref<1x32xf32, #tpu.memory_space<vmem>>, %arg26: memref<32x32xf32, #tpu.memory_space<vmem>>, %arg27: memref<1x32xf32, #tpu.memory_space<vmem>>, %arg28: memref<32x32xf32, #tpu.memory_space<vmem>>, %arg29: memref<32x32xf32, #tpu.memory_space<vmem>>, %arg30: memref<32x32xf32, #tpu.memory_space<vmem>>, %arg31: memref<1x32xf32, #tpu.memory_space<vmem>>, %arg32: memref<32x32xf32, #tpu.memory_space<vmem>>, %arg33: memref<1x32xf32, #tpu.memory_space<vmem>>, %arg34: memref<32x32xf32, #tpu.memory_space<vmem>>, %arg35: memref<32x32xf32, #tpu.memory_space<vmem>>, %arg36: memref<32x32xf32, #tpu.memory_space<vmem>>, %arg37: memref<1x32xf32, #tpu.memory_space<vmem>>, %arg38: memref<32x32xf32, #tpu.memory_space<vmem>>, %arg39: memref<32x32xf32, #tpu.memory_space<vmem>>, %arg40: memref<32x32xf32, #tpu.memory_space<vmem>>, %arg41: memref<1x32xf32, #tpu.memory_space<vmem>>, %arg42: memref<32x32xf32, #tpu.memory_space<vmem>>, %arg43: memref<32x32xf32, #tpu.memory_space<vmem>>, %arg44: memref<32x32xf32, #tpu.memory_space<vmem>>, %arg45: memref<1x32xf32, #tpu.memory_space<vmem>>, %arg46: memref<16x128xf32, #tpu.memory_space<vmem>>) attributes {dimension_semantics = [#tpu.dimension_semantics<parallel>], iteration_bounds = array<i64: 1>, scalar_prefetch = 0 : i64, scratch_operands = 0 : i64, tpu.core_type = #tpu.core_type<tc>, window_params = [{transform_indices = @transform_0, window_bounds = array<i64: 16, 32>}, {pipeline_mode = #tpu.pipeline_mode<synchronous>, transform_indices = @transform_1, window_bounds = array<i64: 32, 32>}, {pipeline_mode = #tpu.pipeline_mode<synchronous>, transform_indices = @transform_2, window_bounds = array<i64: 32, 32>}, {pipeline_mode = #tpu.pipeline_mode<synchronous>, transform_indices = @transform_3, window_bounds = array<i64: 32, 32>}, {pipeline_mode = #tpu.pipeline_mode<synchronous>, transform_indices = @transform_4, window_bounds = array<i64: 1, 32>}, {pipeline_mode = #tpu.pipeline_mode<synchronous>, transform_indices = @transform_5, window_bounds = array<i64: 32, 32>}, {pipeline_mode = #tpu.pipeline_mode<synchronous>, transform_indices = @transform_6, window_bounds = array<i64: 32, 32>}, {pipeline_mode = #tpu.pipeline_mode<synchronous>, transform_indices = @transform_7, window_bounds = array<i64: 32, 32>}, {pipeline_mode = #tpu.pipeline_mode<synchronous>, transform_indices = @transform_8, window_bounds = array<i64: 1, 32>}, {pipeline_mode = #tpu.pipeline_mode<synchronous>, transform_indices = @transform_9, window_bounds = array<i64: 32, 32>}, {pipeline_mode = #tpu.pipeline_mode<synchronous>, transform_indices = @transform_10, window_bounds = array<i64: 1, 32>}, {pipeline_mode = #tpu.pipeline_mode<synchronous>, transform_indices = @transform_11, window_bounds = array<i64: 32, 32>}, {pipeline_mode = #tpu.pipeline_mode<synchronous>, transform_indices = @transform_12, window_bounds = array<i64: 32, 32>}, {pipeline_mode = #tpu.pipeline_mode<synchronous>, transform_indices = @transform_13, window_bounds = array<i64: 32, 32>}, {pipeline_mode = #tpu.pipeline_mode<synchronous>, transform_indices = @transform_14, window_bounds = array<i64: 1, 32>}, {pipeline_mode = #tpu.pipeline_mode<synchronous>, transform_indices = @transform_15, window_bounds = array<i64: 32, 32>}, {pipeline_mode = #tpu.pipeline_mode<synchronous>, transform_indices = @transform_16, window_bounds = array<i64: 1, 32>}, {pipeline_mode = #tpu.pipeline_mode<synchronous>, transform_indices = @transform_17, window_bounds = array<i64: 32, 32>}, {pipeline_mode = #tpu.pipeline_mode<synchronous>, transform_indices = @transform_18, window_bounds = array<i64: 32, 32>}, {pipeline_mode = #tpu.pipeline_mode<synchronous>, transform_indices = @transform_19, window_bounds = array<i64: 32, 32>}, {pipeline_mode = #tpu.pipeline_mode<synchronous>, transform_indices = @transform_20, window_bounds = array<i64: 1, 32>}, {pipeline_mode = #tpu.pipeline_mode<synchronous>, transform_indices = @transform_21, window_bounds = array<i64: 32, 32>}, {pipeline_mode = #tpu.pipeline_mode<synchronous>, transform_indices = @transform_22, window_bounds = array<i64: 32, 32>}, {pipeline_mode = #tpu.pipeline_mode<synchronous>, transform_indices = @transform_23, window_bounds = array<i64: 32, 32>}, {pipeline_mode = #tpu.pipeline_mode<synchronous>, transform_indices = @transform_24, window_bounds = array<i64: 1, 32>}, {pipeline_mode = #tpu.pipeline_mode<synchronous>, transform_indices = @transform_25, window_bounds = array<i64: 32, 32>}, {pipeline_mode = #tpu.pipeline_mode<synchronous>, transform_indices = @transform_26, window_bounds = array<i64: 1, 32>}, {pipeline_mode = #tpu.pipeline_mode<synchronous>, transform_indices = @transform_27, window_bounds = array<i64: 32, 32>}, {pipeline_mode = #tpu.pipeline_mode<synchronous>, transform_indices = @transform_28, window_bounds = array<i64: 32, 32>}, {pipeline_mode = #tpu.pipeline_mode<synchronous>, transform_indices = @transform_29, window_bounds = array<i64: 32, 32>}, {pipeline_mode = #tpu.pipeline_mode<synchronous>, transform_indices = @transform_30, window_bounds = array<i64: 1, 32>}, {pipeline_mode = #tpu.pipeline_mode<synchronous>, transform_indices = @transform_31, window_bounds = array<i64: 32, 32>}, {pipeline_mode = #tpu.pipeline_mode<synchronous>, transform_indices = @transform_32, window_bounds = array<i64: 1, 32>}, {pipeline_mode = #tpu.pipeline_mode<synchronous>, transform_indices = @transform_33, window_bounds = array<i64: 32, 32>}, {pipeline_mode = #tpu.pipeline_mode<synchronous>, transform_indices = @transform_34, window_bounds = array<i64: 32, 32>}, {pipeline_mode = #tpu.pipeline_mode<synchronous>, transform_indices = @transform_35, window_bounds = array<i64: 32, 32>}, {pipeline_mode = #tpu.pipeline_mode<synchronous>, transform_indices = @transform_36, window_bounds = array<i64: 1, 32>}, {pipeline_mode = #tpu.pipeline_mode<synchronous>, transform_indices = @transform_37, window_bounds = array<i64: 32, 32>}, {pipeline_mode = #tpu.pipeline_mode<synchronous>, transform_indices = @transform_38, window_bounds = array<i64: 32, 32>}, {pipeline_mode = #tpu.pipeline_mode<synchronous>, transform_indices = @transform_39, window_bounds = array<i64: 32, 32>}, {pipeline_mode = #tpu.pipeline_mode<synchronous>, transform_indices = @transform_40, window_bounds = array<i64: 1, 32>}, {pipeline_mode = #tpu.pipeline_mode<synchronous>, transform_indices = @transform_41, window_bounds = array<i64: 32, 32>}, {pipeline_mode = #tpu.pipeline_mode<synchronous>, transform_indices = @transform_42, window_bounds = array<i64: 32, 32>}, {pipeline_mode = #tpu.pipeline_mode<synchronous>, transform_indices = @transform_43, window_bounds = array<i64: 32, 32>}, {pipeline_mode = #tpu.pipeline_mode<synchronous>, transform_indices = @transform_44, window_bounds = array<i64: 1, 32>}, {transform_indices = @transform_45, window_bounds = array<i64: 16, 128>}]} {
    %0 = tpu.iota {dimensions = array<i32: 0>} : vector<16x1xi32>
    %c8_i32 = arith.constant 8 : i32
    %c0_i32 = arith.constant 0 : i32
    %1 = arith.cmpi eq, %c8_i32, %c0_i32 : i32
    %c1_i32 = arith.constant 1 : i32
    %2 = arith.select %1, %c1_i32, %c8_i32 : i32
    %3 = vector.broadcast %2 : i32 to vector<16x1xi32>
    %4 = arith.remsi %0, %3 : vector<16x1xi32>
    %c0_i32_0 = arith.constant 0 : i32
    %5 = vector.broadcast %c0_i32_0 : i32 to vector<16x1xi32>
    %6 = arith.cmpi ne, %4, %5 : vector<16x1xi32>
    %c0_i32_1 = arith.constant 0 : i32
    %7 = vector.broadcast %c0_i32_1 : i32 to vector<16x1xi32>
    %8 = arith.cmpi slt, %4, %7 : vector<16x1xi32>
    %c0_i32_2 = arith.constant 0 : i32
    %9 = arith.cmpi slt, %2, %c0_i32_2 : i32
    %10 = vector.broadcast %9 : i1 to vector<16x1xi1>
    %11 = vector.broadcast %10 : vector<16x1xi1> to vector<16x1xi1>
    %12 = arith.xori %8, %11 : vector<16x1xi1>
    %13 = arith.andi %12, %6 : vector<16x1xi1>
    %14 = vector.broadcast %2 : i32 to vector<16x1xi32>
    %15 = arith.addi %4, %14 : vector<16x1xi32>
    %16 = arith.select %13, %15, %4 : vector<16x1xi1>, vector<16x1xi32>
    %c0 = arith.constant 0 : index
    %c0_3 = arith.constant 0 : index
    %17 = vector.load %arg1[%c0, %c0_3] : memref<16x32xf32, #tpu.memory_space<vmem>>, vector<16x32xf32>
    %c0_4 = arith.constant 0 : index
    %c0_5 = arith.constant 0 : index
    %18 = vector.load %arg2[%c0_4, %c0_5] : memref<32x32xf32, #tpu.memory_space<vmem>>, vector<32x32xf32>
    %c0_6 = arith.constant 0 : index
    %c0_7 = arith.constant 0 : index
    %19 = vector.load %arg3[%c0_6, %c0_7] : memref<32x32xf32, #tpu.memory_space<vmem>>, vector<32x32xf32>
    %c0_8 = arith.constant 0 : index
    %c0_9 = arith.constant 0 : index
    %20 = vector.load %arg4[%c0_8, %c0_9] : memref<32x32xf32, #tpu.memory_space<vmem>>, vector<32x32xf32>
    %c0_10 = arith.constant 0 : index
    %c0_11 = arith.constant 0 : index
    %21 = vector.load %arg5[%c0_10, %c0_11] : memref<1x32xf32, #tpu.memory_space<vmem>>, vector<1x32xf32>
    %cst = arith.constant 0.000000e+00 : f32
    %22 = vector.broadcast %cst : f32 to vector<16x32xf32>
    %cst_12 = arith.constant 0.000000e+00 : f32
    %23 = vector.broadcast %cst_12 : f32 to vector<1x32xf32>
    %24 = vector.extract_strided_slice %17 {offsets = [0, 0], sizes = [15, 32], strides = [1, 1]} : vector<16x32xf32> to vector<15x32xf32>
    %25 = tpu.concatenate %23, %24 in 0 : vector<1x32xf32>, vector<15x32xf32> -> vector<16x32xf32>
    %c1_i32_13 = arith.constant 1 : i32
    %26 = vector.broadcast %c1_i32_13 : i32 to vector<16x1xi32>
    %27 = arith.cmpi sge, %16, %26 : vector<16x1xi32>
    %cst_14 = arith.constant 0.000000e+00 : f32
    %28 = vector.broadcast %cst_14 : f32 to vector<16x32xf32>
    %29 = vector.shape_cast %27 : vector<16x1xi1> to vector<16x1xi1>
    %30 = vector.broadcast %29 : vector<16x1xi1> to vector<16x32xi1>
    %31 = arith.select %30, %25, %28 : vector<16x32xi1>, vector<16x32xf32>
    %cst_15 = arith.constant dense<0.000000e+00> : vector<16x32xf32>
    %32 = tpu.matmul %31, %18, %cst_15 {dimension_numbers = #tpu.dot_dimension_numbers<[1], [0], [0], [1], [0, 0, 1, 1], [], []>} : vector<16x32xf32>, vector<32x32xf32>, vector<16x32xf32> -> vector<16x32xf32>
    %33 = arith.addf %22, %32 : vector<16x32xf32>
    %cst_16 = arith.constant dense<0.000000e+00> : vector<16x32xf32>
    %34 = tpu.matmul %17, %19, %cst_16 {dimension_numbers = #tpu.dot_dimension_numbers<[1], [0], [0], [1], [0, 0, 1, 1], [], []>} : vector<16x32xf32>, vector<32x32xf32>, vector<16x32xf32> -> vector<16x32xf32>
    %35 = arith.addf %33, %34 : vector<16x32xf32>
    %cst_17 = arith.constant 0.000000e+00 : f32
    %36 = vector.broadcast %cst_17 : f32 to vector<1x32xf32>
    %37 = vector.extract_strided_slice %17 {offsets = [1, 0], sizes = [15, 32], strides = [1, 1]} : vector<16x32xf32> to vector<15x32xf32>
    %38 = tpu.concatenate %37, %36 in 0 : vector<15x32xf32>, vector<1x32xf32> -> vector<16x32xf32>
    %c7_i32 = arith.constant 7 : i32
    %39 = vector.broadcast %c7_i32 : i32 to vector<16x1xi32>
    %40 = arith.cmpi slt, %16, %39 : vector<16x1xi32>
    %cst_18 = arith.constant 0.000000e+00 : f32
    %41 = vector.broadcast %cst_18 : f32 to vector<16x32xf32>
    %42 = vector.shape_cast %40 : vector<16x1xi1> to vector<16x1xi1>
    %43 = vector.broadcast %42 : vector<16x1xi1> to vector<16x32xi1>
    %44 = arith.select %43, %38, %41 : vector<16x32xi1>, vector<16x32xf32>
    %cst_19 = arith.constant dense<0.000000e+00> : vector<16x32xf32>
    %45 = tpu.matmul %44, %20, %cst_19 {dimension_numbers = #tpu.dot_dimension_numbers<[1], [0], [0], [1], [0, 0, 1, 1], [], []>} : vector<16x32xf32>, vector<32x32xf32>, vector<16x32xf32> -> vector<16x32xf32>
    %46 = arith.addf %35, %45 : vector<16x32xf32>
    %47 = vector.broadcast %21 : vector<1x32xf32> to vector<16x32xf32>
    %48 = arith.addf %46, %47 : vector<16x32xf32>
    %cst_20 = arith.constant 0.000000e+00 : f32
    %49 = vector.broadcast %cst_20 : f32 to vector<16x32xf32>
    %50 = arith.maximumf %48, %49 : vector<16x32xf32>
    %c0_21 = arith.constant 0 : index
    %c0_22 = arith.constant 0 : index
    %51 = vector.load %arg6[%c0_21, %c0_22] : memref<32x32xf32, #tpu.memory_space<vmem>>, vector<32x32xf32>
    %c0_23 = arith.constant 0 : index
    %c0_24 = arith.constant 0 : index
    %52 = vector.load %arg7[%c0_23, %c0_24] : memref<32x32xf32, #tpu.memory_space<vmem>>, vector<32x32xf32>
    %c0_25 = arith.constant 0 : index
    %c0_26 = arith.constant 0 : index
    %53 = vector.load %arg8[%c0_25, %c0_26] : memref<32x32xf32, #tpu.memory_space<vmem>>, vector<32x32xf32>
    %c0_27 = arith.constant 0 : index
    %c0_28 = arith.constant 0 : index
    %54 = vector.load %arg9[%c0_27, %c0_28] : memref<1x32xf32, #tpu.memory_space<vmem>>, vector<1x32xf32>
    %cst_29 = arith.constant 0.000000e+00 : f32
    %55 = vector.broadcast %cst_29 : f32 to vector<16x32xf32>
    %56 = arith.maximumf %50, %55 : vector<16x32xf32>
    %cst_30 = arith.constant 0.000000e+00 : f32
    %57 = vector.broadcast %cst_30 : f32 to vector<16x32xf32>
    %cst_31 = arith.constant 0.000000e+00 : f32
    %58 = vector.broadcast %cst_31 : f32 to vector<3x32xf32>
    %59 = vector.extract_strided_slice %56 {offsets = [0, 0], sizes = [13, 32], strides = [1, 1]} : vector<16x32xf32> to vector<13x32xf32>
    %60 = tpu.concatenate %58, %59 in 0 : vector<3x32xf32>, vector<13x32xf32> -> vector<16x32xf32>
    %c3_i32 = arith.constant 3 : i32
    %61 = vector.broadcast %c3_i32 : i32 to vector<16x1xi32>
    %62 = arith.cmpi sge, %16, %61 : vector<16x1xi32>
    %cst_32 = arith.constant 0.000000e+00 : f32
    %63 = vector.broadcast %cst_32 : f32 to vector<16x32xf32>
    %64 = vector.shape_cast %62 : vector<16x1xi1> to vector<16x1xi1>
    %65 = vector.broadcast %64 : vector<16x1xi1> to vector<16x32xi1>
    %66 = arith.select %65, %60, %63 : vector<16x32xi1>, vector<16x32xf32>
    %cst_33 = arith.constant dense<0.000000e+00> : vector<16x32xf32>
    %67 = tpu.matmul %66, %51, %cst_33 {dimension_numbers = #tpu.dot_dimension_numbers<[1], [0], [0], [1], [0, 0, 1, 1], [], []>} : vector<16x32xf32>, vector<32x32xf32>, vector<16x32xf32> -> vector<16x32xf32>
    %68 = arith.addf %57, %67 : vector<16x32xf32>
    %cst_34 = arith.constant dense<0.000000e+00> : vector<16x32xf32>
    %69 = tpu.matmul %56, %52, %cst_34 {dimension_numbers = #tpu.dot_dimension_numbers<[1], [0], [0], [1], [0, 0, 1, 1], [], []>} : vector<16x32xf32>, vector<32x32xf32>, vector<16x32xf32> -> vector<16x32xf32>
    %70 = arith.addf %68, %69 : vector<16x32xf32>
    %cst_35 = arith.constant 0.000000e+00 : f32
    %71 = vector.broadcast %cst_35 : f32 to vector<3x32xf32>
    %72 = vector.extract_strided_slice %56 {offsets = [3, 0], sizes = [13, 32], strides = [1, 1]} : vector<16x32xf32> to vector<13x32xf32>
    %73 = tpu.concatenate %72, %71 in 0 : vector<13x32xf32>, vector<3x32xf32> -> vector<16x32xf32>
    %c5_i32 = arith.constant 5 : i32
    %74 = vector.broadcast %c5_i32 : i32 to vector<16x1xi32>
    %75 = arith.cmpi slt, %16, %74 : vector<16x1xi32>
    %cst_36 = arith.constant 0.000000e+00 : f32
    %76 = vector.broadcast %cst_36 : f32 to vector<16x32xf32>
    %77 = vector.shape_cast %75 : vector<16x1xi1> to vector<16x1xi1>
    %78 = vector.broadcast %77 : vector<16x1xi1> to vector<16x32xi1>
    %79 = arith.select %78, %73, %76 : vector<16x32xi1>, vector<16x32xf32>
    %cst_37 = arith.constant dense<0.000000e+00> : vector<16x32xf32>
    %80 = tpu.matmul %79, %53, %cst_37 {dimension_numbers = #tpu.dot_dimension_numbers<[1], [0], [0], [1], [0, 0, 1, 1], [], []>} : vector<16x32xf32>, vector<32x32xf32>, vector<16x32xf32> -> vector<16x32xf32>
    %81 = arith.addf %70, %80 : vector<16x32xf32>
    %82 = vector.broadcast %54 : vector<1x32xf32> to vector<16x32xf32>
    %83 = arith.addf %81, %82 : vector<16x32xf32>
    %c0_38 = arith.constant 0 : index
    %c0_39 = arith.constant 0 : index
    %84 = vector.load %arg10[%c0_38, %c0_39] : memref<32x32xf32, #tpu.memory_space<vmem>>, vector<32x32xf32>
    %c0_40 = arith.constant 0 : index
    %c0_41 = arith.constant 0 : index
    %85 = vector.load %arg11[%c0_40, %c0_41] : memref<1x32xf32, #tpu.memory_space<vmem>>, vector<1x32xf32>
    %cst_42 = arith.constant 0.000000e+00 : f32
    %86 = vector.broadcast %cst_42 : f32 to vector<16x32xf32>
    %87 = arith.maximumf %83, %86 : vector<16x32xf32>
    %cst_43 = arith.constant 0.000000e+00 : f32
    %88 = vector.broadcast %cst_43 : f32 to vector<16x32xf32>
    %cst_44 = arith.constant dense<0.000000e+00> : vector<16x32xf32>
    %89 = tpu.matmul %87, %84, %cst_44 {dimension_numbers = #tpu.dot_dimension_numbers<[1], [0], [0], [1], [0, 0, 1, 1], [], []>} : vector<16x32xf32>, vector<32x32xf32>, vector<16x32xf32> -> vector<16x32xf32>
    %90 = arith.addf %88, %89 : vector<16x32xf32>
    %91 = vector.broadcast %85 : vector<1x32xf32> to vector<16x32xf32>
    %92 = arith.addf %90, %91 : vector<16x32xf32>
    %93 = arith.addf %50, %92 : vector<16x32xf32>
    %c0_45 = arith.constant 0 : index
    %c0_46 = arith.constant 0 : index
    %94 = vector.load %arg12[%c0_45, %c0_46] : memref<32x32xf32, #tpu.memory_space<vmem>>, vector<32x32xf32>
    %c0_47 = arith.constant 0 : index
    %c0_48 = arith.constant 0 : index
    %95 = vector.load %arg13[%c0_47, %c0_48] : memref<32x32xf32, #tpu.memory_space<vmem>>, vector<32x32xf32>
    %c0_49 = arith.constant 0 : index
    %c0_50 = arith.constant 0 : index
    %96 = vector.load %arg14[%c0_49, %c0_50] : memref<32x32xf32, #tpu.memory_space<vmem>>, vector<32x32xf32>
    %c0_51 = arith.constant 0 : index
    %c0_52 = arith.constant 0 : index
    %97 = vector.load %arg15[%c0_51, %c0_52] : memref<1x32xf32, #tpu.memory_space<vmem>>, vector<1x32xf32>
    %cst_53 = arith.constant 0.000000e+00 : f32
    %98 = vector.broadcast %cst_53 : f32 to vector<16x32xf32>
    %99 = arith.maximumf %93, %98 : vector<16x32xf32>
    %cst_54 = arith.constant 0.000000e+00 : f32
    %100 = vector.broadcast %cst_54 : f32 to vector<16x32xf32>
    %cst_55 = arith.constant 0.000000e+00 : f32
    %101 = vector.broadcast %cst_55 : f32 to vector<1x32xf32>
    %102 = vector.extract_strided_slice %99 {offsets = [0, 0], sizes = [15, 32], strides = [1, 1]} : vector<16x32xf32> to vector<15x32xf32>
    %103 = tpu.concatenate %101, %102 in 0 : vector<1x32xf32>, vector<15x32xf32> -> vector<16x32xf32>
    %c1_i32_56 = arith.constant 1 : i32
    %104 = vector.broadcast %c1_i32_56 : i32 to vector<16x1xi32>
    %105 = arith.cmpi sge, %16, %104 : vector<16x1xi32>
    %cst_57 = arith.constant 0.000000e+00 : f32
    %106 = vector.broadcast %cst_57 : f32 to vector<16x32xf32>
    %107 = vector.shape_cast %105 : vector<16x1xi1> to vector<16x1xi1>
    %108 = vector.broadcast %107 : vector<16x1xi1> to vector<16x32xi1>
    %109 = arith.select %108, %103, %106 : vector<16x32xi1>, vector<16x32xf32>
    %cst_58 = arith.constant dense<0.000000e+00> : vector<16x32xf32>
    %110 = tpu.matmul %109, %94, %cst_58 {dimension_numbers = #tpu.dot_dimension_numbers<[1], [0], [0], [1], [0, 0, 1, 1], [], []>} : vector<16x32xf32>, vector<32x32xf32>, vector<16x32xf32> -> vector<16x32xf32>
    %111 = arith.addf %100, %110 : vector<16x32xf32>
    %cst_59 = arith.constant dense<0.000000e+00> : vector<16x32xf32>
    %112 = tpu.matmul %99, %95, %cst_59 {dimension_numbers = #tpu.dot_dimension_numbers<[1], [0], [0], [1], [0, 0, 1, 1], [], []>} : vector<16x32xf32>, vector<32x32xf32>, vector<16x32xf32> -> vector<16x32xf32>
    %113 = arith.addf %111, %112 : vector<16x32xf32>
    %cst_60 = arith.constant 0.000000e+00 : f32
    %114 = vector.broadcast %cst_60 : f32 to vector<1x32xf32>
    %115 = vector.extract_strided_slice %99 {offsets = [1, 0], sizes = [15, 32], strides = [1, 1]} : vector<16x32xf32> to vector<15x32xf32>
    %116 = tpu.concatenate %115, %114 in 0 : vector<15x32xf32>, vector<1x32xf32> -> vector<16x32xf32>
    %c7_i32_61 = arith.constant 7 : i32
    %117 = vector.broadcast %c7_i32_61 : i32 to vector<16x1xi32>
    %118 = arith.cmpi slt, %16, %117 : vector<16x1xi32>
    %cst_62 = arith.constant 0.000000e+00 : f32
    %119 = vector.broadcast %cst_62 : f32 to vector<16x32xf32>
    %120 = vector.shape_cast %118 : vector<16x1xi1> to vector<16x1xi1>
    %121 = vector.broadcast %120 : vector<16x1xi1> to vector<16x32xi1>
    %122 = arith.select %121, %116, %119 : vector<16x32xi1>, vector<16x32xf32>
    %cst_63 = arith.constant dense<0.000000e+00> : vector<16x32xf32>
    %123 = tpu.matmul %122, %96, %cst_63 {dimension_numbers = #tpu.dot_dimension_numbers<[1], [0], [0], [1], [0, 0, 1, 1], [], []>} : vector<16x32xf32>, vector<32x32xf32>, vector<16x32xf32> -> vector<16x32xf32>
    %124 = arith.addf %113, %123 : vector<16x32xf32>
    %125 = vector.broadcast %97 : vector<1x32xf32> to vector<16x32xf32>
    %126 = arith.addf %124, %125 : vector<16x32xf32>
    %c0_64 = arith.constant 0 : index
    %c0_65 = arith.constant 0 : index
    %127 = vector.load %arg16[%c0_64, %c0_65] : memref<32x32xf32, #tpu.memory_space<vmem>>, vector<32x32xf32>
    %c0_66 = arith.constant 0 : index
    %c0_67 = arith.constant 0 : index
    %128 = vector.load %arg17[%c0_66, %c0_67] : memref<1x32xf32, #tpu.memory_space<vmem>>, vector<1x32xf32>
    %cst_68 = arith.constant 0.000000e+00 : f32
    %129 = vector.broadcast %cst_68 : f32 to vector<16x32xf32>
    %130 = arith.maximumf %126, %129 : vector<16x32xf32>
    %cst_69 = arith.constant 0.000000e+00 : f32
    %131 = vector.broadcast %cst_69 : f32 to vector<16x32xf32>
    %cst_70 = arith.constant dense<0.000000e+00> : vector<16x32xf32>
    %132 = tpu.matmul %130, %127, %cst_70 {dimension_numbers = #tpu.dot_dimension_numbers<[1], [0], [0], [1], [0, 0, 1, 1], [], []>} : vector<16x32xf32>, vector<32x32xf32>, vector<16x32xf32> -> vector<16x32xf32>
    %133 = arith.addf %131, %132 : vector<16x32xf32>
    %134 = vector.broadcast %128 : vector<1x32xf32> to vector<16x32xf32>
    %135 = arith.addf %133, %134 : vector<16x32xf32>
    %136 = arith.addf %93, %135 : vector<16x32xf32>
    %c0_71 = arith.constant 0 : index
    %c0_72 = arith.constant 0 : index
    %137 = vector.load %arg18[%c0_71, %c0_72] : memref<32x32xf32, #tpu.memory_space<vmem>>, vector<32x32xf32>
    %c0_73 = arith.constant 0 : index
    %c0_74 = arith.constant 0 : index
    %138 = vector.load %arg19[%c0_73, %c0_74] : memref<32x32xf32, #tpu.memory_space<vmem>>, vector<32x32xf32>
    %c0_75 = arith.constant 0 : index
    %c0_76 = arith.constant 0 : index
    %139 = vector.load %arg20[%c0_75, %c0_76] : memref<32x32xf32, #tpu.memory_space<vmem>>, vector<32x32xf32>
    %c0_77 = arith.constant 0 : index
    %c0_78 = arith.constant 0 : index
    %140 = vector.load %arg21[%c0_77, %c0_78] : memref<1x32xf32, #tpu.memory_space<vmem>>, vector<1x32xf32>
    %141 = arith.addf %138, %139 : vector<32x32xf32>
    %cst_79 = arith.constant 0.000000e+00 : f32
    %142 = vector.broadcast %cst_79 : f32 to vector<16x32xf32>
    %cst_80 = arith.constant 0.000000e+00 : f32
    %143 = vector.broadcast %cst_80 : f32 to vector<1x32xf32>
    %144 = vector.extract_strided_slice %136 {offsets = [0, 0], sizes = [15, 32], strides = [1, 1]} : vector<16x32xf32> to vector<15x32xf32>
    %145 = tpu.concatenate %143, %144 in 0 : vector<1x32xf32>, vector<15x32xf32> -> vector<16x32xf32>
    %c1_i32_81 = arith.constant 1 : i32
    %146 = vector.broadcast %c1_i32_81 : i32 to vector<16x1xi32>
    %147 = arith.cmpi sge, %16, %146 : vector<16x1xi32>
    %cst_82 = arith.constant 0.000000e+00 : f32
    %148 = vector.broadcast %cst_82 : f32 to vector<16x32xf32>
    %149 = vector.shape_cast %147 : vector<16x1xi1> to vector<16x1xi1>
    %150 = vector.broadcast %149 : vector<16x1xi1> to vector<16x32xi1>
    %151 = arith.select %150, %145, %148 : vector<16x32xi1>, vector<16x32xf32>
    %cst_83 = arith.constant dense<0.000000e+00> : vector<16x32xf32>
    %152 = tpu.matmul %151, %137, %cst_83 {dimension_numbers = #tpu.dot_dimension_numbers<[1], [0], [0], [1], [0, 0, 1, 1], [], []>} : vector<16x32xf32>, vector<32x32xf32>, vector<16x32xf32> -> vector<16x32xf32>
    %153 = arith.addf %142, %152 : vector<16x32xf32>
    %cst_84 = arith.constant dense<0.000000e+00> : vector<16x32xf32>
    %154 = tpu.matmul %136, %141, %cst_84 {dimension_numbers = #tpu.dot_dimension_numbers<[1], [0], [0], [1], [0, 0, 1, 1], [], []>} : vector<16x32xf32>, vector<32x32xf32>, vector<16x32xf32> -> vector<16x32xf32>
    %155 = arith.addf %153, %154 : vector<16x32xf32>
    %156 = vector.broadcast %140 : vector<1x32xf32> to vector<16x32xf32>
    %157 = arith.addf %155, %156 : vector<16x32xf32>
    %158 = arith.addf %137, %138 : vector<32x32xf32>
    %cst_85 = arith.constant 0.000000e+00 : f32
    %159 = vector.broadcast %cst_85 : f32 to vector<16x32xf32>
    %cst_86 = arith.constant dense<0.000000e+00> : vector<16x32xf32>
    %160 = tpu.matmul %136, %158, %cst_86 {dimension_numbers = #tpu.dot_dimension_numbers<[1], [0], [0], [1], [0, 0, 1, 1], [], []>} : vector<16x32xf32>, vector<32x32xf32>, vector<16x32xf32> -> vector<16x32xf32>
    %161 = arith.addf %159, %160 : vector<16x32xf32>
    %cst_87 = arith.constant 0.000000e+00 : f32
    %162 = vector.broadcast %cst_87 : f32 to vector<1x32xf32>
    %163 = vector.extract_strided_slice %136 {offsets = [1, 0], sizes = [15, 32], strides = [1, 1]} : vector<16x32xf32> to vector<15x32xf32>
    %164 = tpu.concatenate %163, %162 in 0 : vector<15x32xf32>, vector<1x32xf32> -> vector<16x32xf32>
    %c7_i32_88 = arith.constant 7 : i32
    %165 = vector.broadcast %c7_i32_88 : i32 to vector<16x1xi32>
    %166 = arith.cmpi slt, %16, %165 : vector<16x1xi32>
    %cst_89 = arith.constant 0.000000e+00 : f32
    %167 = vector.broadcast %cst_89 : f32 to vector<16x32xf32>
    %168 = vector.shape_cast %166 : vector<16x1xi1> to vector<16x1xi1>
    %169 = vector.broadcast %168 : vector<16x1xi1> to vector<16x32xi1>
    %170 = arith.select %169, %164, %167 : vector<16x32xi1>, vector<16x32xf32>
    %cst_90 = arith.constant dense<0.000000e+00> : vector<16x32xf32>
    %171 = tpu.matmul %170, %139, %cst_90 {dimension_numbers = #tpu.dot_dimension_numbers<[1], [0], [0], [1], [0, 0, 1, 1], [], []>} : vector<16x32xf32>, vector<32x32xf32>, vector<16x32xf32> -> vector<16x32xf32>
    %172 = arith.addf %161, %171 : vector<16x32xf32>
    %173 = vector.broadcast %140 : vector<1x32xf32> to vector<16x32xf32>
    %174 = arith.addf %172, %173 : vector<16x32xf32>
    %175 = tpu.concatenate %157, %174 in 1 : vector<16x32xf32>, vector<16x32xf32> -> vector<16x64xf32>
    %c0_91 = arith.constant 0 : index
    %c0_92 = arith.constant 0 : index
    %176 = vector.load %arg22[%c0_91, %c0_92] : memref<32x32xf32, #tpu.memory_space<vmem>>, vector<32x32xf32>
    %c0_93 = arith.constant 0 : index
    %c0_94 = arith.constant 0 : index
    %177 = vector.load %arg23[%c0_93, %c0_94] : memref<32x32xf32, #tpu.memory_space<vmem>>, vector<32x32xf32>
    %c0_95 = arith.constant 0 : index
    %c0_96 = arith.constant 0 : index
    %178 = vector.load %arg24[%c0_95, %c0_96] : memref<32x32xf32, #tpu.memory_space<vmem>>, vector<32x32xf32>
    %c0_97 = arith.constant 0 : index
    %c0_98 = arith.constant 0 : index
    %179 = vector.load %arg25[%c0_97, %c0_98] : memref<1x32xf32, #tpu.memory_space<vmem>>, vector<1x32xf32>
    %cst_99 = arith.constant 0.000000e+00 : f32
    %180 = vector.broadcast %cst_99 : f32 to vector<16x64xf32>
    %181 = arith.maximumf %175, %180 : vector<16x64xf32>
    %cst_100 = arith.constant 0.000000e+00 : f32
    %182 = vector.broadcast %cst_100 : f32 to vector<16x32xf32>
    %183 = vector.extract_strided_slice %181 {offsets = [0, 32], sizes = [16, 32], strides = [1, 1]} : vector<16x64xf32> to vector<16x32xf32>
    %cst_101 = arith.constant 0.000000e+00 : f32
    %184 = vector.broadcast %cst_101 : f32 to vector<2x32xf32>
    %185 = vector.extract_strided_slice %183 {offsets = [0, 0], sizes = [14, 32], strides = [1, 1]} : vector<16x32xf32> to vector<14x32xf32>
    %186 = tpu.concatenate %184, %185 in 0 : vector<2x32xf32>, vector<14x32xf32> -> vector<16x32xf32>
    %c2_i32 = arith.constant 2 : i32
    %187 = vector.broadcast %c2_i32 : i32 to vector<16x1xi32>
    %188 = arith.cmpi sge, %16, %187 : vector<16x1xi32>
    %cst_102 = arith.constant 0.000000e+00 : f32
    %189 = vector.broadcast %cst_102 : f32 to vector<16x32xf32>
    %190 = vector.shape_cast %188 : vector<16x1xi1> to vector<16x1xi1>
    %191 = vector.broadcast %190 : vector<16x1xi1> to vector<16x32xi1>
    %192 = arith.select %191, %186, %189 : vector<16x32xi1>, vector<16x32xf32>
    %cst_103 = arith.constant dense<0.000000e+00> : vector<16x32xf32>
    %193 = tpu.matmul %192, %176, %cst_103 {dimension_numbers = #tpu.dot_dimension_numbers<[1], [0], [0], [1], [0, 0, 1, 1], [], []>} : vector<16x32xf32>, vector<32x32xf32>, vector<16x32xf32> -> vector<16x32xf32>
    %194 = arith.addf %182, %193 : vector<16x32xf32>
    %195 = vector.extract_strided_slice %181 {offsets = [0, 0], sizes = [16, 32], strides = [1, 1]} : vector<16x64xf32> to vector<16x32xf32>
    %cst_104 = arith.constant dense<0.000000e+00> : vector<16x32xf32>
    %196 = tpu.matmul %195, %177, %cst_104 {dimension_numbers = #tpu.dot_dimension_numbers<[1], [0], [0], [1], [0, 0, 1, 1], [], []>} : vector<16x32xf32>, vector<32x32xf32>, vector<16x32xf32> -> vector<16x32xf32>
    %197 = arith.addf %194, %196 : vector<16x32xf32>
    %198 = vector.extract_strided_slice %181 {offsets = [0, 32], sizes = [16, 32], strides = [1, 1]} : vector<16x64xf32> to vector<16x32xf32>
    %cst_105 = arith.constant 0.000000e+00 : f32
    %199 = vector.broadcast %cst_105 : f32 to vector<1x32xf32>
    %200 = vector.extract_strided_slice %198 {offsets = [1, 0], sizes = [15, 32], strides = [1, 1]} : vector<16x32xf32> to vector<15x32xf32>
    %201 = tpu.concatenate %200, %199 in 0 : vector<15x32xf32>, vector<1x32xf32> -> vector<16x32xf32>
    %c7_i32_106 = arith.constant 7 : i32
    %202 = vector.broadcast %c7_i32_106 : i32 to vector<16x1xi32>
    %203 = arith.cmpi slt, %16, %202 : vector<16x1xi32>
    %cst_107 = arith.constant 0.000000e+00 : f32
    %204 = vector.broadcast %cst_107 : f32 to vector<16x32xf32>
    %205 = vector.shape_cast %203 : vector<16x1xi1> to vector<16x1xi1>
    %206 = vector.broadcast %205 : vector<16x1xi1> to vector<16x32xi1>
    %207 = arith.select %206, %201, %204 : vector<16x32xi1>, vector<16x32xf32>
    %cst_108 = arith.constant dense<0.000000e+00> : vector<16x32xf32>
    %208 = tpu.matmul %207, %178, %cst_108 {dimension_numbers = #tpu.dot_dimension_numbers<[1], [0], [0], [1], [0, 0, 1, 1], [], []>} : vector<16x32xf32>, vector<32x32xf32>, vector<16x32xf32> -> vector<16x32xf32>
    %209 = arith.addf %197, %208 : vector<16x32xf32>
    %210 = vector.broadcast %179 : vector<1x32xf32> to vector<16x32xf32>
    %211 = arith.addf %209, %210 : vector<16x32xf32>
    %cst_109 = arith.constant 0.000000e+00 : f32
    %212 = vector.broadcast %cst_109 : f32 to vector<16x32xf32>
    %213 = vector.extract_strided_slice %181 {offsets = [0, 0], sizes = [16, 32], strides = [1, 1]} : vector<16x64xf32> to vector<16x32xf32>
    %cst_110 = arith.constant 0.000000e+00 : f32
    %214 = vector.broadcast %cst_110 : f32 to vector<1x32xf32>
    %215 = vector.extract_strided_slice %213 {offsets = [0, 0], sizes = [15, 32], strides = [1, 1]} : vector<16x32xf32> to vector<15x32xf32>
    %216 = tpu.concatenate %214, %215 in 0 : vector<1x32xf32>, vector<15x32xf32> -> vector<16x32xf32>
    %c1_i32_111 = arith.constant 1 : i32
    %217 = vector.broadcast %c1_i32_111 : i32 to vector<16x1xi32>
    %218 = arith.cmpi sge, %16, %217 : vector<16x1xi32>
    %cst_112 = arith.constant 0.000000e+00 : f32
    %219 = vector.broadcast %cst_112 : f32 to vector<16x32xf32>
    %220 = vector.shape_cast %218 : vector<16x1xi1> to vector<16x1xi1>
    %221 = vector.broadcast %220 : vector<16x1xi1> to vector<16x32xi1>
    %222 = arith.select %221, %216, %219 : vector<16x32xi1>, vector<16x32xf32>
    %cst_113 = arith.constant dense<0.000000e+00> : vector<16x32xf32>
    %223 = tpu.matmul %222, %176, %cst_113 {dimension_numbers = #tpu.dot_dimension_numbers<[1], [0], [0], [1], [0, 0, 1, 1], [], []>} : vector<16x32xf32>, vector<32x32xf32>, vector<16x32xf32> -> vector<16x32xf32>
    %224 = arith.addf %212, %223 : vector<16x32xf32>
    %225 = vector.extract_strided_slice %181 {offsets = [0, 32], sizes = [16, 32], strides = [1, 1]} : vector<16x64xf32> to vector<16x32xf32>
    %cst_114 = arith.constant dense<0.000000e+00> : vector<16x32xf32>
    %226 = tpu.matmul %225, %177, %cst_114 {dimension_numbers = #tpu.dot_dimension_numbers<[1], [0], [0], [1], [0, 0, 1, 1], [], []>} : vector<16x32xf32>, vector<32x32xf32>, vector<16x32xf32> -> vector<16x32xf32>
    %227 = arith.addf %224, %226 : vector<16x32xf32>
    %228 = vector.extract_strided_slice %181 {offsets = [0, 0], sizes = [16, 32], strides = [1, 1]} : vector<16x64xf32> to vector<16x32xf32>
    %cst_115 = arith.constant 0.000000e+00 : f32
    %229 = vector.broadcast %cst_115 : f32 to vector<2x32xf32>
    %230 = vector.extract_strided_slice %228 {offsets = [2, 0], sizes = [14, 32], strides = [1, 1]} : vector<16x32xf32> to vector<14x32xf32>
    %231 = tpu.concatenate %230, %229 in 0 : vector<14x32xf32>, vector<2x32xf32> -> vector<16x32xf32>
    %c6_i32 = arith.constant 6 : i32
    %232 = vector.broadcast %c6_i32 : i32 to vector<16x1xi32>
    %233 = arith.cmpi slt, %16, %232 : vector<16x1xi32>
    %cst_116 = arith.constant 0.000000e+00 : f32
    %234 = vector.broadcast %cst_116 : f32 to vector<16x32xf32>
    %235 = vector.shape_cast %233 : vector<16x1xi1> to vector<16x1xi1>
    %236 = vector.broadcast %235 : vector<16x1xi1> to vector<16x32xi1>
    %237 = arith.select %236, %231, %234 : vector<16x32xi1>, vector<16x32xf32>
    %cst_117 = arith.constant dense<0.000000e+00> : vector<16x32xf32>
    %238 = tpu.matmul %237, %178, %cst_117 {dimension_numbers = #tpu.dot_dimension_numbers<[1], [0], [0], [1], [0, 0, 1, 1], [], []>} : vector<16x32xf32>, vector<32x32xf32>, vector<16x32xf32> -> vector<16x32xf32>
    %239 = arith.addf %227, %238 : vector<16x32xf32>
    %240 = vector.broadcast %179 : vector<1x32xf32> to vector<16x32xf32>
    %241 = arith.addf %239, %240 : vector<16x32xf32>
    %242 = tpu.concatenate %211, %241 in 1 : vector<16x32xf32>, vector<16x32xf32> -> vector<16x64xf32>
    %c0_118 = arith.constant 0 : index
    %c0_119 = arith.constant 0 : index
    %243 = vector.load %arg26[%c0_118, %c0_119] : memref<32x32xf32, #tpu.memory_space<vmem>>, vector<32x32xf32>
    %c0_120 = arith.constant 0 : index
    %c0_121 = arith.constant 0 : index
    %244 = vector.load %arg27[%c0_120, %c0_121] : memref<1x32xf32, #tpu.memory_space<vmem>>, vector<1x32xf32>
    %cst_122 = arith.constant 0.000000e+00 : f32
    %245 = vector.broadcast %cst_122 : f32 to vector<16x64xf32>
    %246 = arith.maximumf %242, %245 : vector<16x64xf32>
    %cst_123 = arith.constant 0.000000e+00 : f32
    %247 = vector.broadcast %cst_123 : f32 to vector<16x32xf32>
    %248 = vector.extract_strided_slice %246 {offsets = [0, 0], sizes = [16, 32], strides = [1, 1]} : vector<16x64xf32> to vector<16x32xf32>
    %cst_124 = arith.constant dense<0.000000e+00> : vector<16x32xf32>
    %249 = tpu.matmul %248, %243, %cst_124 {dimension_numbers = #tpu.dot_dimension_numbers<[1], [0], [0], [1], [0, 0, 1, 1], [], []>} : vector<16x32xf32>, vector<32x32xf32>, vector<16x32xf32> -> vector<16x32xf32>
    %250 = arith.addf %247, %249 : vector<16x32xf32>
    %251 = vector.broadcast %244 : vector<1x32xf32> to vector<16x32xf32>
    %252 = arith.addf %250, %251 : vector<16x32xf32>
    %cst_125 = arith.constant 0.000000e+00 : f32
    %253 = vector.broadcast %cst_125 : f32 to vector<16x32xf32>
    %254 = vector.extract_strided_slice %246 {offsets = [0, 32], sizes = [16, 32], strides = [1, 1]} : vector<16x64xf32> to vector<16x32xf32>
    %cst_126 = arith.constant dense<0.000000e+00> : vector<16x32xf32>
    %255 = tpu.matmul %254, %243, %cst_126 {dimension_numbers = #tpu.dot_dimension_numbers<[1], [0], [0], [1], [0, 0, 1, 1], [], []>} : vector<16x32xf32>, vector<32x32xf32>, vector<16x32xf32> -> vector<16x32xf32>
    %256 = arith.addf %253, %255 : vector<16x32xf32>
    %257 = vector.broadcast %244 : vector<1x32xf32> to vector<16x32xf32>
    %258 = arith.addf %256, %257 : vector<16x32xf32>
    %259 = tpu.concatenate %252, %258 in 1 : vector<16x32xf32>, vector<16x32xf32> -> vector<16x64xf32>
    %260 = arith.addf %175, %259 : vector<16x64xf32>
    %c0_127 = arith.constant 0 : index
    %c0_128 = arith.constant 0 : index
    %261 = vector.load %arg28[%c0_127, %c0_128] : memref<32x32xf32, #tpu.memory_space<vmem>>, vector<32x32xf32>
    %c0_129 = arith.constant 0 : index
    %c0_130 = arith.constant 0 : index
    %262 = vector.load %arg29[%c0_129, %c0_130] : memref<32x32xf32, #tpu.memory_space<vmem>>, vector<32x32xf32>
    %c0_131 = arith.constant 0 : index
    %c0_132 = arith.constant 0 : index
    %263 = vector.load %arg30[%c0_131, %c0_132] : memref<32x32xf32, #tpu.memory_space<vmem>>, vector<32x32xf32>
    %c0_133 = arith.constant 0 : index
    %c0_134 = arith.constant 0 : index
    %264 = vector.load %arg31[%c0_133, %c0_134] : memref<1x32xf32, #tpu.memory_space<vmem>>, vector<1x32xf32>
    %cst_135 = arith.constant 0.000000e+00 : f32
    %265 = vector.broadcast %cst_135 : f32 to vector<16x64xf32>
    %266 = arith.maximumf %260, %265 : vector<16x64xf32>
    %cst_136 = arith.constant 0.000000e+00 : f32
    %267 = vector.broadcast %cst_136 : f32 to vector<16x32xf32>
    %268 = vector.extract_strided_slice %266 {offsets = [0, 32], sizes = [16, 32], strides = [1, 1]} : vector<16x64xf32> to vector<16x32xf32>
    %cst_137 = arith.constant 0.000000e+00 : f32
    %269 = vector.broadcast %cst_137 : f32 to vector<1x32xf32>
    %270 = vector.extract_strided_slice %268 {offsets = [0, 0], sizes = [15, 32], strides = [1, 1]} : vector<16x32xf32> to vector<15x32xf32>
    %271 = tpu.concatenate %269, %270 in 0 : vector<1x32xf32>, vector<15x32xf32> -> vector<16x32xf32>
    %c1_i32_138 = arith.constant 1 : i32
    %272 = vector.broadcast %c1_i32_138 : i32 to vector<16x1xi32>
    %273 = arith.cmpi sge, %16, %272 : vector<16x1xi32>
    %cst_139 = arith.constant 0.000000e+00 : f32
    %274 = vector.broadcast %cst_139 : f32 to vector<16x32xf32>
    %275 = vector.shape_cast %273 : vector<16x1xi1> to vector<16x1xi1>
    %276 = vector.broadcast %275 : vector<16x1xi1> to vector<16x32xi1>
    %277 = arith.select %276, %271, %274 : vector<16x32xi1>, vector<16x32xf32>
    %cst_140 = arith.constant dense<0.000000e+00> : vector<16x32xf32>
    %278 = tpu.matmul %277, %261, %cst_140 {dimension_numbers = #tpu.dot_dimension_numbers<[1], [0], [0], [1], [0, 0, 1, 1], [], []>} : vector<16x32xf32>, vector<32x32xf32>, vector<16x32xf32> -> vector<16x32xf32>
    %279 = arith.addf %267, %278 : vector<16x32xf32>
    %280 = vector.extract_strided_slice %266 {offsets = [0, 0], sizes = [16, 32], strides = [1, 1]} : vector<16x64xf32> to vector<16x32xf32>
    %cst_141 = arith.constant dense<0.000000e+00> : vector<16x32xf32>
    %281 = tpu.matmul %280, %262, %cst_141 {dimension_numbers = #tpu.dot_dimension_numbers<[1], [0], [0], [1], [0, 0, 1, 1], [], []>} : vector<16x32xf32>, vector<32x32xf32>, vector<16x32xf32> -> vector<16x32xf32>
    %282 = arith.addf %279, %281 : vector<16x32xf32>
    %283 = vector.extract_strided_slice %266 {offsets = [0, 32], sizes = [16, 32], strides = [1, 1]} : vector<16x64xf32> to vector<16x32xf32>
    %cst_142 = arith.constant dense<0.000000e+00> : vector<16x32xf32>
    %284 = tpu.matmul %283, %263, %cst_142 {dimension_numbers = #tpu.dot_dimension_numbers<[1], [0], [0], [1], [0, 0, 1, 1], [], []>} : vector<16x32xf32>, vector<32x32xf32>, vector<16x32xf32> -> vector<16x32xf32>
    %285 = arith.addf %282, %284 : vector<16x32xf32>
    %286 = vector.broadcast %264 : vector<1x32xf32> to vector<16x32xf32>
    %287 = arith.addf %285, %286 : vector<16x32xf32>
    %cst_143 = arith.constant 0.000000e+00 : f32
    %288 = vector.broadcast %cst_143 : f32 to vector<16x32xf32>
    %cst_144 = arith.constant dense<0.000000e+00> : vector<16x32xf32>
    %289 = tpu.matmul %280, %261, %cst_144 {dimension_numbers = #tpu.dot_dimension_numbers<[1], [0], [0], [1], [0, 0, 1, 1], [], []>} : vector<16x32xf32>, vector<32x32xf32>, vector<16x32xf32> -> vector<16x32xf32>
    %290 = arith.addf %288, %289 : vector<16x32xf32>
    %cst_145 = arith.constant dense<0.000000e+00> : vector<16x32xf32>
    %291 = tpu.matmul %283, %262, %cst_145 {dimension_numbers = #tpu.dot_dimension_numbers<[1], [0], [0], [1], [0, 0, 1, 1], [], []>} : vector<16x32xf32>, vector<32x32xf32>, vector<16x32xf32> -> vector<16x32xf32>
    %292 = arith.addf %290, %291 : vector<16x32xf32>
    %293 = vector.extract_strided_slice %266 {offsets = [0, 0], sizes = [16, 32], strides = [1, 1]} : vector<16x64xf32> to vector<16x32xf32>
    %cst_146 = arith.constant 0.000000e+00 : f32
    %294 = vector.broadcast %cst_146 : f32 to vector<1x32xf32>
    %295 = vector.extract_strided_slice %293 {offsets = [1, 0], sizes = [15, 32], strides = [1, 1]} : vector<16x32xf32> to vector<15x32xf32>
    %296 = tpu.concatenate %295, %294 in 0 : vector<15x32xf32>, vector<1x32xf32> -> vector<16x32xf32>
    %c7_i32_147 = arith.constant 7 : i32
    %297 = vector.broadcast %c7_i32_147 : i32 to vector<16x1xi32>
    %298 = arith.cmpi slt, %16, %297 : vector<16x1xi32>
    %cst_148 = arith.constant 0.000000e+00 : f32
    %299 = vector.broadcast %cst_148 : f32 to vector<16x32xf32>
    %300 = vector.shape_cast %298 : vector<16x1xi1> to vector<16x1xi1>
    %301 = vector.broadcast %300 : vector<16x1xi1> to vector<16x32xi1>
    %302 = arith.select %301, %296, %299 : vector<16x32xi1>, vector<16x32xf32>
    %cst_149 = arith.constant dense<0.000000e+00> : vector<16x32xf32>
    %303 = tpu.matmul %302, %263, %cst_149 {dimension_numbers = #tpu.dot_dimension_numbers<[1], [0], [0], [1], [0, 0, 1, 1], [], []>} : vector<16x32xf32>, vector<32x32xf32>, vector<16x32xf32> -> vector<16x32xf32>
    %304 = arith.addf %292, %303 : vector<16x32xf32>
    %305 = vector.broadcast %264 : vector<1x32xf32> to vector<16x32xf32>
    %306 = arith.addf %304, %305 : vector<16x32xf32>
    %307 = tpu.concatenate %287, %306 in 1 : vector<16x32xf32>, vector<16x32xf32> -> vector<16x64xf32>
    %c0_150 = arith.constant 0 : index
    %c0_151 = arith.constant 0 : index
    %308 = vector.load %arg32[%c0_150, %c0_151] : memref<32x32xf32, #tpu.memory_space<vmem>>, vector<32x32xf32>
    %c0_152 = arith.constant 0 : index
    %c0_153 = arith.constant 0 : index
    %309 = vector.load %arg33[%c0_152, %c0_153] : memref<1x32xf32, #tpu.memory_space<vmem>>, vector<1x32xf32>
    %cst_154 = arith.constant 0.000000e+00 : f32
    %310 = vector.broadcast %cst_154 : f32 to vector<16x64xf32>
    %311 = arith.maximumf %307, %310 : vector<16x64xf32>
    %cst_155 = arith.constant 0.000000e+00 : f32
    %312 = vector.broadcast %cst_155 : f32 to vector<16x32xf32>
    %313 = vector.extract_strided_slice %311 {offsets = [0, 0], sizes = [16, 32], strides = [1, 1]} : vector<16x64xf32> to vector<16x32xf32>
    %cst_156 = arith.constant dense<0.000000e+00> : vector<16x32xf32>
    %314 = tpu.matmul %313, %308, %cst_156 {dimension_numbers = #tpu.dot_dimension_numbers<[1], [0], [0], [1], [0, 0, 1, 1], [], []>} : vector<16x32xf32>, vector<32x32xf32>, vector<16x32xf32> -> vector<16x32xf32>
    %315 = arith.addf %312, %314 : vector<16x32xf32>
    %316 = vector.broadcast %309 : vector<1x32xf32> to vector<16x32xf32>
    %317 = arith.addf %315, %316 : vector<16x32xf32>
    %cst_157 = arith.constant 0.000000e+00 : f32
    %318 = vector.broadcast %cst_157 : f32 to vector<16x32xf32>
    %319 = vector.extract_strided_slice %311 {offsets = [0, 32], sizes = [16, 32], strides = [1, 1]} : vector<16x64xf32> to vector<16x32xf32>
    %cst_158 = arith.constant dense<0.000000e+00> : vector<16x32xf32>
    %320 = tpu.matmul %319, %308, %cst_158 {dimension_numbers = #tpu.dot_dimension_numbers<[1], [0], [0], [1], [0, 0, 1, 1], [], []>} : vector<16x32xf32>, vector<32x32xf32>, vector<16x32xf32> -> vector<16x32xf32>
    %321 = arith.addf %318, %320 : vector<16x32xf32>
    %322 = vector.broadcast %309 : vector<1x32xf32> to vector<16x32xf32>
    %323 = arith.addf %321, %322 : vector<16x32xf32>
    %324 = tpu.concatenate %317, %323 in 1 : vector<16x32xf32>, vector<16x32xf32> -> vector<16x64xf32>
    %325 = arith.addf %260, %324 : vector<16x64xf32>
    %c0_159 = arith.constant 0 : index
    %c0_160 = arith.constant 0 : index
    %326 = vector.load %arg34[%c0_159, %c0_160] : memref<32x32xf32, #tpu.memory_space<vmem>>, vector<32x32xf32>
    %c0_161 = arith.constant 0 : index
    %c0_162 = arith.constant 0 : index
    %327 = vector.load %arg35[%c0_161, %c0_162] : memref<32x32xf32, #tpu.memory_space<vmem>>, vector<32x32xf32>
    %c0_163 = arith.constant 0 : index
    %c0_164 = arith.constant 0 : index
    %328 = vector.load %arg36[%c0_163, %c0_164] : memref<32x32xf32, #tpu.memory_space<vmem>>, vector<32x32xf32>
    %c0_165 = arith.constant 0 : index
    %c0_166 = arith.constant 0 : index
    %329 = vector.load %arg37[%c0_165, %c0_166] : memref<1x32xf32, #tpu.memory_space<vmem>>, vector<1x32xf32>
    %330 = arith.addf %327, %328 : vector<32x32xf32>
    %cst_167 = arith.constant 0.000000e+00 : f32
    %331 = vector.broadcast %cst_167 : f32 to vector<16x32xf32>
    %332 = vector.extract_strided_slice %325 {offsets = [0, 32], sizes = [16, 32], strides = [1, 1]} : vector<16x64xf32> to vector<16x32xf32>
    %cst_168 = arith.constant 0.000000e+00 : f32
    %333 = vector.broadcast %cst_168 : f32 to vector<1x32xf32>
    %334 = vector.extract_strided_slice %332 {offsets = [0, 0], sizes = [15, 32], strides = [1, 1]} : vector<16x32xf32> to vector<15x32xf32>
    %335 = tpu.concatenate %333, %334 in 0 : vector<1x32xf32>, vector<15x32xf32> -> vector<16x32xf32>
    %c1_i32_169 = arith.constant 1 : i32
    %336 = vector.broadcast %c1_i32_169 : i32 to vector<16x1xi32>
    %337 = arith.cmpi sge, %16, %336 : vector<16x1xi32>
    %cst_170 = arith.constant 0.000000e+00 : f32
    %338 = vector.broadcast %cst_170 : f32 to vector<16x32xf32>
    %339 = vector.shape_cast %337 : vector<16x1xi1> to vector<16x1xi1>
    %340 = vector.broadcast %339 : vector<16x1xi1> to vector<16x32xi1>
    %341 = arith.select %340, %335, %338 : vector<16x32xi1>, vector<16x32xf32>
    %cst_171 = arith.constant dense<0.000000e+00> : vector<16x32xf32>
    %342 = tpu.matmul %341, %326, %cst_171 {dimension_numbers = #tpu.dot_dimension_numbers<[1], [0], [0], [1], [0, 0, 1, 1], [], []>} : vector<16x32xf32>, vector<32x32xf32>, vector<16x32xf32> -> vector<16x32xf32>
    %343 = arith.addf %331, %342 : vector<16x32xf32>
    %344 = vector.extract_strided_slice %325 {offsets = [0, 0], sizes = [16, 32], strides = [1, 1]} : vector<16x64xf32> to vector<16x32xf32>
    %cst_172 = arith.constant dense<0.000000e+00> : vector<16x32xf32>
    %345 = tpu.matmul %344, %330, %cst_172 {dimension_numbers = #tpu.dot_dimension_numbers<[1], [0], [0], [1], [0, 0, 1, 1], [], []>} : vector<16x32xf32>, vector<32x32xf32>, vector<16x32xf32> -> vector<16x32xf32>
    %346 = arith.addf %343, %345 : vector<16x32xf32>
    %347 = vector.broadcast %329 : vector<1x32xf32> to vector<16x32xf32>
    %348 = arith.addf %346, %347 : vector<16x32xf32>
    %349 = arith.addf %326, %327 : vector<32x32xf32>
    %cst_173 = arith.constant 0.000000e+00 : f32
    %350 = vector.broadcast %cst_173 : f32 to vector<16x32xf32>
    %cst_174 = arith.constant dense<0.000000e+00> : vector<16x32xf32>
    %351 = tpu.matmul %344, %349, %cst_174 {dimension_numbers = #tpu.dot_dimension_numbers<[1], [0], [0], [1], [0, 0, 1, 1], [], []>} : vector<16x32xf32>, vector<32x32xf32>, vector<16x32xf32> -> vector<16x32xf32>
    %352 = arith.addf %350, %351 : vector<16x32xf32>
    %353 = vector.extract_strided_slice %325 {offsets = [0, 32], sizes = [16, 32], strides = [1, 1]} : vector<16x64xf32> to vector<16x32xf32>
    %cst_175 = arith.constant dense<0.000000e+00> : vector<16x32xf32>
    %354 = tpu.matmul %353, %328, %cst_175 {dimension_numbers = #tpu.dot_dimension_numbers<[1], [0], [0], [1], [0, 0, 1, 1], [], []>} : vector<16x32xf32>, vector<32x32xf32>, vector<16x32xf32> -> vector<16x32xf32>
    %355 = arith.addf %352, %354 : vector<16x32xf32>
    %356 = vector.broadcast %329 : vector<1x32xf32> to vector<16x32xf32>
    %357 = arith.addf %355, %356 : vector<16x32xf32>
    %358 = arith.addf %327, %328 : vector<32x32xf32>
    %cst_176 = arith.constant 0.000000e+00 : f32
    %359 = vector.broadcast %cst_176 : f32 to vector<16x32xf32>
    %cst_177 = arith.constant dense<0.000000e+00> : vector<16x32xf32>
    %360 = tpu.matmul %344, %326, %cst_177 {dimension_numbers = #tpu.dot_dimension_numbers<[1], [0], [0], [1], [0, 0, 1, 1], [], []>} : vector<16x32xf32>, vector<32x32xf32>, vector<16x32xf32> -> vector<16x32xf32>
    %361 = arith.addf %359, %360 : vector<16x32xf32>
    %cst_178 = arith.constant dense<0.000000e+00> : vector<16x32xf32>
    %362 = tpu.matmul %353, %358, %cst_178 {dimension_numbers = #tpu.dot_dimension_numbers<[1], [0], [0], [1], [0, 0, 1, 1], [], []>} : vector<16x32xf32>, vector<32x32xf32>, vector<16x32xf32> -> vector<16x32xf32>
    %363 = arith.addf %361, %362 : vector<16x32xf32>
    %364 = vector.broadcast %329 : vector<1x32xf32> to vector<16x32xf32>
    %365 = arith.addf %363, %364 : vector<16x32xf32>
    %366 = arith.addf %326, %327 : vector<32x32xf32>
    %cst_179 = arith.constant 0.000000e+00 : f32
    %367 = vector.broadcast %cst_179 : f32 to vector<16x32xf32>
    %cst_180 = arith.constant dense<0.000000e+00> : vector<16x32xf32>
    %368 = tpu.matmul %353, %366, %cst_180 {dimension_numbers = #tpu.dot_dimension_numbers<[1], [0], [0], [1], [0, 0, 1, 1], [], []>} : vector<16x32xf32>, vector<32x32xf32>, vector<16x32xf32> -> vector<16x32xf32>
    %369 = arith.addf %367, %368 : vector<16x32xf32>
    %370 = vector.extract_strided_slice %325 {offsets = [0, 0], sizes = [16, 32], strides = [1, 1]} : vector<16x64xf32> to vector<16x32xf32>
    %cst_181 = arith.constant 0.000000e+00 : f32
    %371 = vector.broadcast %cst_181 : f32 to vector<1x32xf32>
    %372 = vector.extract_strided_slice %370 {offsets = [1, 0], sizes = [15, 32], strides = [1, 1]} : vector<16x32xf32> to vector<15x32xf32>
    %373 = tpu.concatenate %372, %371 in 0 : vector<15x32xf32>, vector<1x32xf32> -> vector<16x32xf32>
    %c7_i32_182 = arith.constant 7 : i32
    %374 = vector.broadcast %c7_i32_182 : i32 to vector<16x1xi32>
    %375 = arith.cmpi slt, %16, %374 : vector<16x1xi32>
    %cst_183 = arith.constant 0.000000e+00 : f32
    %376 = vector.broadcast %cst_183 : f32 to vector<16x32xf32>
    %377 = vector.shape_cast %375 : vector<16x1xi1> to vector<16x1xi1>
    %378 = vector.broadcast %377 : vector<16x1xi1> to vector<16x32xi1>
    %379 = arith.select %378, %373, %376 : vector<16x32xi1>, vector<16x32xf32>
    %cst_184 = arith.constant dense<0.000000e+00> : vector<16x32xf32>
    %380 = tpu.matmul %379, %328, %cst_184 {dimension_numbers = #tpu.dot_dimension_numbers<[1], [0], [0], [1], [0, 0, 1, 1], [], []>} : vector<16x32xf32>, vector<32x32xf32>, vector<16x32xf32> -> vector<16x32xf32>
    %381 = arith.addf %369, %380 : vector<16x32xf32>
    %382 = vector.broadcast %329 : vector<1x32xf32> to vector<16x32xf32>
    %383 = arith.addf %381, %382 : vector<16x32xf32>
    %384 = tpu.concatenate %348, %357, %365, %383 in 1 : vector<16x32xf32>, vector<16x32xf32>, vector<16x32xf32>, vector<16x32xf32> -> vector<16x128xf32>
    %c0_185 = arith.constant 0 : index
    %c0_186 = arith.constant 0 : index
    %385 = vector.load %arg38[%c0_185, %c0_186] : memref<32x32xf32, #tpu.memory_space<vmem>>, vector<32x32xf32>
    %c0_187 = arith.constant 0 : index
    %c0_188 = arith.constant 0 : index
    %386 = vector.load %arg39[%c0_187, %c0_188] : memref<32x32xf32, #tpu.memory_space<vmem>>, vector<32x32xf32>
    %c0_189 = arith.constant 0 : index
    %c0_190 = arith.constant 0 : index
    %387 = vector.load %arg40[%c0_189, %c0_190] : memref<32x32xf32, #tpu.memory_space<vmem>>, vector<32x32xf32>
    %c0_191 = arith.constant 0 : index
    %c0_192 = arith.constant 0 : index
    %388 = vector.load %arg41[%c0_191, %c0_192] : memref<1x32xf32, #tpu.memory_space<vmem>>, vector<1x32xf32>
    %cst_193 = arith.constant 0.000000e+00 : f32
    %389 = vector.broadcast %cst_193 : f32 to vector<16x32xf32>
    %390 = vector.extract_strided_slice %384 {offsets = [0, 96], sizes = [16, 32], strides = [1, 1]} : vector<16x128xf32> to vector<16x32xf32>
    %cst_194 = arith.constant 0.000000e+00 : f32
    %391 = vector.broadcast %cst_194 : f32 to vector<1x32xf32>
    %392 = vector.extract_strided_slice %390 {offsets = [0, 0], sizes = [15, 32], strides = [1, 1]} : vector<16x32xf32> to vector<15x32xf32>
    %393 = tpu.concatenate %391, %392 in 0 : vector<1x32xf32>, vector<15x32xf32> -> vector<16x32xf32>
    %c1_i32_195 = arith.constant 1 : i32
    %394 = vector.broadcast %c1_i32_195 : i32 to vector<16x1xi32>
    %395 = arith.cmpi sge, %16, %394 : vector<16x1xi32>
    %cst_196 = arith.constant 0.000000e+00 : f32
    %396 = vector.broadcast %cst_196 : f32 to vector<16x32xf32>
    %397 = vector.shape_cast %395 : vector<16x1xi1> to vector<16x1xi1>
    %398 = vector.broadcast %397 : vector<16x1xi1> to vector<16x32xi1>
    %399 = arith.select %398, %393, %396 : vector<16x32xi1>, vector<16x32xf32>
    %cst_197 = arith.constant dense<0.000000e+00> : vector<16x32xf32>
    %400 = tpu.matmul %399, %385, %cst_197 {dimension_numbers = #tpu.dot_dimension_numbers<[1], [0], [0], [1], [0, 0, 1, 1], [], []>} : vector<16x32xf32>, vector<32x32xf32>, vector<16x32xf32> -> vector<16x32xf32>
    %401 = arith.addf %389, %400 : vector<16x32xf32>
    %402 = vector.extract_strided_slice %384 {offsets = [0, 0], sizes = [16, 32], strides = [1, 1]} : vector<16x128xf32> to vector<16x32xf32>
    %cst_198 = arith.constant dense<0.000000e+00> : vector<16x32xf32>
    %403 = tpu.matmul %402, %386, %cst_198 {dimension_numbers = #tpu.dot_dimension_numbers<[1], [0], [0], [1], [0, 0, 1, 1], [], []>} : vector<16x32xf32>, vector<32x32xf32>, vector<16x32xf32> -> vector<16x32xf32>
    %404 = arith.addf %401, %403 : vector<16x32xf32>
    %405 = vector.extract_strided_slice %384 {offsets = [0, 32], sizes = [16, 32], strides = [1, 1]} : vector<16x128xf32> to vector<16x32xf32>
    %cst_199 = arith.constant dense<0.000000e+00> : vector<16x32xf32>
    %406 = tpu.matmul %405, %387, %cst_199 {dimension_numbers = #tpu.dot_dimension_numbers<[1], [0], [0], [1], [0, 0, 1, 1], [], []>} : vector<16x32xf32>, vector<32x32xf32>, vector<16x32xf32> -> vector<16x32xf32>
    %407 = arith.addf %404, %406 : vector<16x32xf32>
    %408 = vector.broadcast %388 : vector<1x32xf32> to vector<16x32xf32>
    %409 = arith.addf %407, %408 : vector<16x32xf32>
    %cst_200 = arith.constant 0.000000e+00 : f32
    %410 = vector.broadcast %cst_200 : f32 to vector<16x32xf32>
    %411 = arith.maximumf %409, %410 : vector<16x32xf32>
    %cst_201 = arith.constant 0.000000e+00 : f32
    %412 = vector.broadcast %cst_201 : f32 to vector<16x32xf32>
    %cst_202 = arith.constant dense<0.000000e+00> : vector<16x32xf32>
    %413 = tpu.matmul %402, %385, %cst_202 {dimension_numbers = #tpu.dot_dimension_numbers<[1], [0], [0], [1], [0, 0, 1, 1], [], []>} : vector<16x32xf32>, vector<32x32xf32>, vector<16x32xf32> -> vector<16x32xf32>
    %414 = arith.addf %412, %413 : vector<16x32xf32>
    %cst_203 = arith.constant dense<0.000000e+00> : vector<16x32xf32>
    %415 = tpu.matmul %405, %386, %cst_203 {dimension_numbers = #tpu.dot_dimension_numbers<[1], [0], [0], [1], [0, 0, 1, 1], [], []>} : vector<16x32xf32>, vector<32x32xf32>, vector<16x32xf32> -> vector<16x32xf32>
    %416 = arith.addf %414, %415 : vector<16x32xf32>
    %417 = vector.extract_strided_slice %384 {offsets = [0, 64], sizes = [16, 32], strides = [1, 1]} : vector<16x128xf32> to vector<16x32xf32>
    %cst_204 = arith.constant dense<0.000000e+00> : vector<16x32xf32>
    %418 = tpu.matmul %417, %387, %cst_204 {dimension_numbers = #tpu.dot_dimension_numbers<[1], [0], [0], [1], [0, 0, 1, 1], [], []>} : vector<16x32xf32>, vector<32x32xf32>, vector<16x32xf32> -> vector<16x32xf32>
    %419 = arith.addf %416, %418 : vector<16x32xf32>
    %420 = vector.broadcast %388 : vector<1x32xf32> to vector<16x32xf32>
    %421 = arith.addf %419, %420 : vector<16x32xf32>
    %cst_205 = arith.constant 0.000000e+00 : f32
    %422 = vector.broadcast %cst_205 : f32 to vector<16x32xf32>
    %423 = arith.maximumf %421, %422 : vector<16x32xf32>
    %cst_206 = arith.constant 0.000000e+00 : f32
    %424 = vector.broadcast %cst_206 : f32 to vector<16x32xf32>
    %cst_207 = arith.constant dense<0.000000e+00> : vector<16x32xf32>
    %425 = tpu.matmul %405, %385, %cst_207 {dimension_numbers = #tpu.dot_dimension_numbers<[1], [0], [0], [1], [0, 0, 1, 1], [], []>} : vector<16x32xf32>, vector<32x32xf32>, vector<16x32xf32> -> vector<16x32xf32>
    %426 = arith.addf %424, %425 : vector<16x32xf32>
    %cst_208 = arith.constant dense<0.000000e+00> : vector<16x32xf32>
    %427 = tpu.matmul %417, %386, %cst_208 {dimension_numbers = #tpu.dot_dimension_numbers<[1], [0], [0], [1], [0, 0, 1, 1], [], []>} : vector<16x32xf32>, vector<32x32xf32>, vector<16x32xf32> -> vector<16x32xf32>
    %428 = arith.addf %426, %427 : vector<16x32xf32>
    %429 = vector.extract_strided_slice %384 {offsets = [0, 96], sizes = [16, 32], strides = [1, 1]} : vector<16x128xf32> to vector<16x32xf32>
    %cst_209 = arith.constant dense<0.000000e+00> : vector<16x32xf32>
    %430 = tpu.matmul %429, %387, %cst_209 {dimension_numbers = #tpu.dot_dimension_numbers<[1], [0], [0], [1], [0, 0, 1, 1], [], []>} : vector<16x32xf32>, vector<32x32xf32>, vector<16x32xf32> -> vector<16x32xf32>
    %431 = arith.addf %428, %430 : vector<16x32xf32>
    %432 = vector.broadcast %388 : vector<1x32xf32> to vector<16x32xf32>
    %433 = arith.addf %431, %432 : vector<16x32xf32>
    %cst_210 = arith.constant 0.000000e+00 : f32
    %434 = vector.broadcast %cst_210 : f32 to vector<16x32xf32>
    %435 = arith.maximumf %433, %434 : vector<16x32xf32>
    %cst_211 = arith.constant 0.000000e+00 : f32
    %436 = vector.broadcast %cst_211 : f32 to vector<16x32xf32>
    %cst_212 = arith.constant dense<0.000000e+00> : vector<16x32xf32>
    %437 = tpu.matmul %417, %385, %cst_212 {dimension_numbers = #tpu.dot_dimension_numbers<[1], [0], [0], [1], [0, 0, 1, 1], [], []>} : vector<16x32xf32>, vector<32x32xf32>, vector<16x32xf32> -> vector<16x32xf32>
    %438 = arith.addf %436, %437 : vector<16x32xf32>
    %cst_213 = arith.constant dense<0.000000e+00> : vector<16x32xf32>
    %439 = tpu.matmul %429, %386, %cst_213 {dimension_numbers = #tpu.dot_dimension_numbers<[1], [0], [0], [1], [0, 0, 1, 1], [], []>} : vector<16x32xf32>, vector<32x32xf32>, vector<16x32xf32> -> vector<16x32xf32>
    %440 = arith.addf %438, %439 : vector<16x32xf32>
    %441 = vector.extract_strided_slice %384 {offsets = [0, 0], sizes = [16, 32], strides = [1, 1]} : vector<16x128xf32> to vector<16x32xf32>
    %cst_214 = arith.constant 0.000000e+00 : f32
    %442 = vector.broadcast %cst_214 : f32 to vector<1x32xf32>
    %443 = vector.extract_strided_slice %441 {offsets = [1, 0], sizes = [15, 32], strides = [1, 1]} : vector<16x32xf32> to vector<15x32xf32>
    %444 = tpu.concatenate %443, %442 in 0 : vector<15x32xf32>, vector<1x32xf32> -> vector<16x32xf32>
    %c7_i32_215 = arith.constant 7 : i32
    %445 = vector.broadcast %c7_i32_215 : i32 to vector<16x1xi32>
    %446 = arith.cmpi slt, %16, %445 : vector<16x1xi32>
    %cst_216 = arith.constant 0.000000e+00 : f32
    %447 = vector.broadcast %cst_216 : f32 to vector<16x32xf32>
    %448 = vector.shape_cast %446 : vector<16x1xi1> to vector<16x1xi1>
    %449 = vector.broadcast %448 : vector<16x1xi1> to vector<16x32xi1>
    %450 = arith.select %449, %444, %447 : vector<16x32xi1>, vector<16x32xf32>
    %cst_217 = arith.constant dense<0.000000e+00> : vector<16x32xf32>
    %451 = tpu.matmul %450, %387, %cst_217 {dimension_numbers = #tpu.dot_dimension_numbers<[1], [0], [0], [1], [0, 0, 1, 1], [], []>} : vector<16x32xf32>, vector<32x32xf32>, vector<16x32xf32> -> vector<16x32xf32>
    %452 = arith.addf %440, %451 : vector<16x32xf32>
    %453 = vector.broadcast %388 : vector<1x32xf32> to vector<16x32xf32>
    %454 = arith.addf %452, %453 : vector<16x32xf32>
    %cst_218 = arith.constant 0.000000e+00 : f32
    %455 = vector.broadcast %cst_218 : f32 to vector<16x32xf32>
    %456 = arith.maximumf %454, %455 : vector<16x32xf32>
    %457 = tpu.concatenate %411, %423, %435, %456 in 1 : vector<16x32xf32>, vector<16x32xf32>, vector<16x32xf32>, vector<16x32xf32> -> vector<16x128xf32>
    %c0_219 = arith.constant 0 : index
    %c0_220 = arith.constant 0 : index
    %458 = vector.load %arg42[%c0_219, %c0_220] : memref<32x32xf32, #tpu.memory_space<vmem>>, vector<32x32xf32>
    %c0_221 = arith.constant 0 : index
    %c0_222 = arith.constant 0 : index
    %459 = vector.load %arg43[%c0_221, %c0_222] : memref<32x32xf32, #tpu.memory_space<vmem>>, vector<32x32xf32>
    %c0_223 = arith.constant 0 : index
    %c0_224 = arith.constant 0 : index
    %460 = vector.load %arg44[%c0_223, %c0_224] : memref<32x32xf32, #tpu.memory_space<vmem>>, vector<32x32xf32>
    %c0_225 = arith.constant 0 : index
    %c0_226 = arith.constant 0 : index
    %461 = vector.load %arg45[%c0_225, %c0_226] : memref<1x32xf32, #tpu.memory_space<vmem>>, vector<1x32xf32>
    %cst_227 = arith.constant 0.000000e+00 : f32
    %462 = vector.broadcast %cst_227 : f32 to vector<16x32xf32>
    %463 = vector.extract_strided_slice %457 {offsets = [0, 96], sizes = [16, 32], strides = [1, 1]} : vector<16x128xf32> to vector<16x32xf32>
    %cst_228 = arith.constant 0.000000e+00 : f32
    %464 = vector.broadcast %cst_228 : f32 to vector<1x32xf32>
    %465 = vector.extract_strided_slice %463 {offsets = [0, 0], sizes = [15, 32], strides = [1, 1]} : vector<16x32xf32> to vector<15x32xf32>
    %466 = tpu.concatenate %464, %465 in 0 : vector<1x32xf32>, vector<15x32xf32> -> vector<16x32xf32>
    %c1_i32_229 = arith.constant 1 : i32
    %467 = vector.broadcast %c1_i32_229 : i32 to vector<16x1xi32>
    %468 = arith.cmpi sge, %16, %467 : vector<16x1xi32>
    %cst_230 = arith.constant 0.000000e+00 : f32
    %469 = vector.broadcast %cst_230 : f32 to vector<16x32xf32>
    %470 = vector.shape_cast %468 : vector<16x1xi1> to vector<16x1xi1>
    %471 = vector.broadcast %470 : vector<16x1xi1> to vector<16x32xi1>
    %472 = arith.select %471, %466, %469 : vector<16x32xi1>, vector<16x32xf32>
    %cst_231 = arith.constant dense<0.000000e+00> : vector<16x32xf32>
    %473 = tpu.matmul %472, %458, %cst_231 {dimension_numbers = #tpu.dot_dimension_numbers<[1], [0], [0], [1], [0, 0, 1, 1], [], []>} : vector<16x32xf32>, vector<32x32xf32>, vector<16x32xf32> -> vector<16x32xf32>
    %474 = arith.addf %462, %473 : vector<16x32xf32>
    %475 = vector.extract_strided_slice %457 {offsets = [0, 0], sizes = [16, 32], strides = [1, 1]} : vector<16x128xf32> to vector<16x32xf32>
    %cst_232 = arith.constant dense<0.000000e+00> : vector<16x32xf32>
    %476 = tpu.matmul %475, %459, %cst_232 {dimension_numbers = #tpu.dot_dimension_numbers<[1], [0], [0], [1], [0, 0, 1, 1], [], []>} : vector<16x32xf32>, vector<32x32xf32>, vector<16x32xf32> -> vector<16x32xf32>
    %477 = arith.addf %474, %476 : vector<16x32xf32>
    %478 = vector.extract_strided_slice %457 {offsets = [0, 32], sizes = [16, 32], strides = [1, 1]} : vector<16x128xf32> to vector<16x32xf32>
    %cst_233 = arith.constant dense<0.000000e+00> : vector<16x32xf32>
    %479 = tpu.matmul %478, %460, %cst_233 {dimension_numbers = #tpu.dot_dimension_numbers<[1], [0], [0], [1], [0, 0, 1, 1], [], []>} : vector<16x32xf32>, vector<32x32xf32>, vector<16x32xf32> -> vector<16x32xf32>
    %480 = arith.addf %477, %479 : vector<16x32xf32>
    %481 = vector.broadcast %461 : vector<1x32xf32> to vector<16x32xf32>
    %482 = arith.addf %480, %481 : vector<16x32xf32>
    %cst_234 = arith.constant 0.000000e+00 : f32
    %483 = vector.broadcast %cst_234 : f32 to vector<16x32xf32>
    %cst_235 = arith.constant dense<0.000000e+00> : vector<16x32xf32>
    %484 = tpu.matmul %475, %458, %cst_235 {dimension_numbers = #tpu.dot_dimension_numbers<[1], [0], [0], [1], [0, 0, 1, 1], [], []>} : vector<16x32xf32>, vector<32x32xf32>, vector<16x32xf32> -> vector<16x32xf32>
    %485 = arith.addf %483, %484 : vector<16x32xf32>
    %cst_236 = arith.constant dense<0.000000e+00> : vector<16x32xf32>
    %486 = tpu.matmul %478, %459, %cst_236 {dimension_numbers = #tpu.dot_dimension_numbers<[1], [0], [0], [1], [0, 0, 1, 1], [], []>} : vector<16x32xf32>, vector<32x32xf32>, vector<16x32xf32> -> vector<16x32xf32>
    %487 = arith.addf %485, %486 : vector<16x32xf32>
    %488 = vector.extract_strided_slice %457 {offsets = [0, 64], sizes = [16, 32], strides = [1, 1]} : vector<16x128xf32> to vector<16x32xf32>
    %cst_237 = arith.constant dense<0.000000e+00> : vector<16x32xf32>
    %489 = tpu.matmul %488, %460, %cst_237 {dimension_numbers = #tpu.dot_dimension_numbers<[1], [0], [0], [1], [0, 0, 1, 1], [], []>} : vector<16x32xf32>, vector<32x32xf32>, vector<16x32xf32> -> vector<16x32xf32>
    %490 = arith.addf %487, %489 : vector<16x32xf32>
    %491 = vector.broadcast %461 : vector<1x32xf32> to vector<16x32xf32>
    %492 = arith.addf %490, %491 : vector<16x32xf32>
    %cst_238 = arith.constant 0.000000e+00 : f32
    %493 = vector.broadcast %cst_238 : f32 to vector<16x32xf32>
    %cst_239 = arith.constant dense<0.000000e+00> : vector<16x32xf32>
    %494 = tpu.matmul %478, %458, %cst_239 {dimension_numbers = #tpu.dot_dimension_numbers<[1], [0], [0], [1], [0, 0, 1, 1], [], []>} : vector<16x32xf32>, vector<32x32xf32>, vector<16x32xf32> -> vector<16x32xf32>
    %495 = arith.addf %493, %494 : vector<16x32xf32>
    %cst_240 = arith.constant dense<0.000000e+00> : vector<16x32xf32>
    %496 = tpu.matmul %488, %459, %cst_240 {dimension_numbers = #tpu.dot_dimension_numbers<[1], [0], [0], [1], [0, 0, 1, 1], [], []>} : vector<16x32xf32>, vector<32x32xf32>, vector<16x32xf32> -> vector<16x32xf32>
    %497 = arith.addf %495, %496 : vector<16x32xf32>
    %498 = vector.extract_strided_slice %457 {offsets = [0, 96], sizes = [16, 32], strides = [1, 1]} : vector<16x128xf32> to vector<16x32xf32>
    %cst_241 = arith.constant dense<0.000000e+00> : vector<16x32xf32>
    %499 = tpu.matmul %498, %460, %cst_241 {dimension_numbers = #tpu.dot_dimension_numbers<[1], [0], [0], [1], [0, 0, 1, 1], [], []>} : vector<16x32xf32>, vector<32x32xf32>, vector<16x32xf32> -> vector<16x32xf32>
    %500 = arith.addf %497, %499 : vector<16x32xf32>
    %501 = vector.broadcast %461 : vector<1x32xf32> to vector<16x32xf32>
    %502 = arith.addf %500, %501 : vector<16x32xf32>
    %cst_242 = arith.constant 0.000000e+00 : f32
    %503 = vector.broadcast %cst_242 : f32 to vector<16x32xf32>
    %cst_243 = arith.constant dense<0.000000e+00> : vector<16x32xf32>
    %504 = tpu.matmul %488, %458, %cst_243 {dimension_numbers = #tpu.dot_dimension_numbers<[1], [0], [0], [1], [0, 0, 1, 1], [], []>} : vector<16x32xf32>, vector<32x32xf32>, vector<16x32xf32> -> vector<16x32xf32>
    %505 = arith.addf %503, %504 : vector<16x32xf32>
    %cst_244 = arith.constant dense<0.000000e+00> : vector<16x32xf32>
    %506 = tpu.matmul %498, %459, %cst_244 {dimension_numbers = #tpu.dot_dimension_numbers<[1], [0], [0], [1], [0, 0, 1, 1], [], []>} : vector<16x32xf32>, vector<32x32xf32>, vector<16x32xf32> -> vector<16x32xf32>
    %507 = arith.addf %505, %506 : vector<16x32xf32>
    %508 = vector.extract_strided_slice %457 {offsets = [0, 0], sizes = [16, 32], strides = [1, 1]} : vector<16x128xf32> to vector<16x32xf32>
    %cst_245 = arith.constant 0.000000e+00 : f32
    %509 = vector.broadcast %cst_245 : f32 to vector<1x32xf32>
    %510 = vector.extract_strided_slice %508 {offsets = [1, 0], sizes = [15, 32], strides = [1, 1]} : vector<16x32xf32> to vector<15x32xf32>
    %511 = tpu.concatenate %510, %509 in 0 : vector<15x32xf32>, vector<1x32xf32> -> vector<16x32xf32>
    %c7_i32_246 = arith.constant 7 : i32
    %512 = vector.broadcast %c7_i32_246 : i32 to vector<16x1xi32>
    %513 = arith.cmpi slt, %16, %512 : vector<16x1xi32>
    %cst_247 = arith.constant 0.000000e+00 : f32
    %514 = vector.broadcast %cst_247 : f32 to vector<16x32xf32>
    %515 = vector.shape_cast %513 : vector<16x1xi1> to vector<16x1xi1>
    %516 = vector.broadcast %515 : vector<16x1xi1> to vector<16x32xi1>
    %517 = arith.select %516, %511, %514 : vector<16x32xi1>, vector<16x32xf32>
    %cst_248 = arith.constant dense<0.000000e+00> : vector<16x32xf32>
    %518 = tpu.matmul %517, %460, %cst_248 {dimension_numbers = #tpu.dot_dimension_numbers<[1], [0], [0], [1], [0, 0, 1, 1], [], []>} : vector<16x32xf32>, vector<32x32xf32>, vector<16x32xf32> -> vector<16x32xf32>
    %519 = arith.addf %507, %518 : vector<16x32xf32>
    %520 = vector.broadcast %461 : vector<1x32xf32> to vector<16x32xf32>
    %521 = arith.addf %519, %520 : vector<16x32xf32>
    %522 = tpu.concatenate %482, %492, %502, %521 in 1 : vector<16x32xf32>, vector<16x32xf32>, vector<16x32xf32>, vector<16x32xf32> -> vector<16x128xf32>
    %c0_249 = arith.constant 0 : index
    %c0_250 = arith.constant 0 : index
    %523 = vector.load %arg46[%c0_249, %c0_250] : memref<16x128xf32, #tpu.memory_space<vmem>>, vector<16x128xf32>
    tpu.vector_store %arg46[%c0_249, %c0_250], %522 {strides = array<i32>} : memref<16x128xf32, #tpu.memory_space<vmem>>, vector<16x128xf32>,
    return
  }
  func.func @transform_0(%arg0: i32) -> (i32, i32) {
    %c0_i32 = arith.constant 0 : i32
    %c0_i32_0 = arith.constant 0 : i32
    return %arg0, %c0_i32 : i32, i32
  }
  func.func @transform_1(%arg0: i32) -> (i32, i32) {
    %c0_i32 = arith.constant 0 : i32
    %c0_i32_0 = arith.constant 0 : i32
    %c0_i32_1 = arith.constant 0 : i32
    return %c0_i32, %c0_i32_0 : i32, i32
  }
  func.func @transform_2(%arg0: i32) -> (i32, i32) {
    %c0_i32 = arith.constant 0 : i32
    %c0_i32_0 = arith.constant 0 : i32
    %c0_i32_1 = arith.constant 0 : i32
    return %c0_i32, %c0_i32_0 : i32, i32
  }
  func.func @transform_3(%arg0: i32) -> (i32, i32) {
    %c0_i32 = arith.constant 0 : i32
    %c0_i32_0 = arith.constant 0 : i32
    %c0_i32_1 = arith.constant 0 : i32
    return %c0_i32, %c0_i32_0 : i32, i32
  }
  func.func @transform_4(%arg0: i32) -> (i32, i32) {
    %c0_i32 = arith.constant 0 : i32
    %c0_i32_0 = arith.constant 0 : i32
    %c0_i32_1 = arith.constant 0 : i32
    return %c0_i32, %c0_i32_0 : i32, i32
  }
  func.func @transform_5(%arg0: i32) -> (i32, i32) {
    %c0_i32 = arith.constant 0 : i32
    %c0_i32_0 = arith.constant 0 : i32
    %c0_i32_1 = arith.constant 0 : i32
    return %c0_i32, %c0_i32_0 : i32, i32
  }
  func.func @transform_6(%arg0: i32) -> (i32, i32) {
    %c0_i32 = arith.constant 0 : i32
    %c0_i32_0 = arith.constant 0 : i32
    %c0_i32_1 = arith.constant 0 : i32
    return %c0_i32, %c0_i32_0 : i32, i32
  }
  func.func @transform_7(%arg0: i32) -> (i32, i32) {
    %c0_i32 = arith.constant 0 : i32
    %c0_i32_0 = arith.constant 0 : i32
    %c0_i32_1 = arith.constant 0 : i32
    return %c0_i32, %c0_i32_0 : i32, i32
  }
  func.func @transform_8(%arg0: i32) -> (i32, i32) {
    %c0_i32 = arith.constant 0 : i32
    %c0_i32_0 = arith.constant 0 : i32
    %c0_i32_1 = arith.constant 0 : i32
    return %c0_i32, %c0_i32_0 : i32, i32
  }
  func.func @transform_9(%arg0: i32) -> (i32, i32) {
    %c0_i32 = arith.constant 0 : i32
    %c0_i32_0 = arith.constant 0 : i32
    %c0_i32_1 = arith.constant 0 : i32
    return %c0_i32, %c0_i32_0 : i32, i32
  }
  func.func @transform_10(%arg0: i32) -> (i32, i32) {
    %c0_i32 = arith.constant 0 : i32
    %c0_i32_0 = arith.constant 0 : i32
    %c0_i32_1 = arith.constant 0 : i32
    return %c0_i32, %c0_i32_0 : i32, i32
  }
  func.func @transform_11(%arg0: i32) -> (i32, i32) {
    %c0_i32 = arith.constant 0 : i32
    %c0_i32_0 = arith.constant 0 : i32
    %c0_i32_1 = arith.constant 0 : i32
    return %c0_i32, %c0_i32_0 : i32, i32
  }
  func.func @transform_12(%arg0: i32) -> (i32, i32) {
    %c0_i32 = arith.constant 0 : i32
    %c0_i32_0 = arith.constant 0 : i32
    %c0_i32_1 = arith.constant 0 : i32
    return %c0_i32, %c0_i32_0 : i32, i32
  }
  func.func @transform_13(%arg0: i32) -> (i32, i32) {
    %c0_i32 = arith.constant 0 : i32
    %c0_i32_0 = arith.constant 0 : i32
    %c0_i32_1 = arith.constant 0 : i32
    return %c0_i32, %c0_i32_0 : i32, i32
  }
  func.func @transform_14(%arg0: i32) -> (i32, i32) {
    %c0_i32 = arith.constant 0 : i32
    %c0_i32_0 = arith.constant 0 : i32
    %c0_i32_1 = arith.constant 0 : i32
    return %c0_i32, %c0_i32_0 : i32, i32
  }
  func.func @transform_15(%arg0: i32) -> (i32, i32) {
    %c0_i32 = arith.constant 0 : i32
    %c0_i32_0 = arith.constant 0 : i32
    %c0_i32_1 = arith.constant 0 : i32
    return %c0_i32, %c0_i32_0 : i32, i32
  }
  func.func @transform_16(%arg0: i32) -> (i32, i32) {
    %c0_i32 = arith.constant 0 : i32
    %c0_i32_0 = arith.constant 0 : i32
    %c0_i32_1 = arith.constant 0 : i32
    return %c0_i32, %c0_i32_0 : i32, i32
  }
  func.func @transform_17(%arg0: i32) -> (i32, i32) {
    %c0_i32 = arith.constant 0 : i32
    %c0_i32_0 = arith.constant 0 : i32
    %c0_i32_1 = arith.constant 0 : i32
    return %c0_i32, %c0_i32_0 : i32, i32
  }
  func.func @transform_18(%arg0: i32) -> (i32, i32) {
    %c0_i32 = arith.constant 0 : i32
    %c0_i32_0 = arith.constant 0 : i32
    %c0_i32_1 = arith.constant 0 : i32
    return %c0_i32, %c0_i32_0 : i32, i32
  }
  func.func @transform_19(%arg0: i32) -> (i32, i32) {
    %c0_i32 = arith.constant 0 : i32
    %c0_i32_0 = arith.constant 0 : i32
    %c0_i32_1 = arith.constant 0 : i32
    return %c0_i32, %c0_i32_0 : i32, i32
  }
  func.func @transform_20(%arg0: i32) -> (i32, i32) {
    %c0_i32 = arith.constant 0 : i32
    %c0_i32_0 = arith.constant 0 : i32
    %c0_i32_1 = arith.constant 0 : i32
    return %c0_i32, %c0_i32_0 : i32, i32
  }
  func.func @transform_21(%arg0: i32) -> (i32, i32) {
    %c0_i32 = arith.constant 0 : i32
    %c0_i32_0 = arith.constant 0 : i32
    %c0_i32_1 = arith.constant 0 : i32
    return %c0_i32, %c0_i32_0 : i32, i32
  }
  func.func @transform_22(%arg0: i32) -> (i32, i32) {
    %c0_i32 = arith.constant 0 : i32
    %c0_i32_0 = arith.constant 0 : i32
    %c0_i32_1 = arith.constant 0 : i32
    return %c0_i32, %c0_i32_0 : i32, i32
  }
  func.func @transform_23(%arg0: i32) -> (i32, i32) {
    %c0_i32 = arith.constant 0 : i32
    %c0_i32_0 = arith.constant 0 : i32
    %c0_i32_1 = arith.constant 0 : i32
    return %c0_i32, %c0_i32_0 : i32, i32
  }
  func.func @transform_24(%arg0: i32) -> (i32, i32) {
    %c0_i32 = arith.constant 0 : i32
    %c0_i32_0 = arith.constant 0 : i32
    %c0_i32_1 = arith.constant 0 : i32
    return %c0_i32, %c0_i32_0 : i32, i32
  }
  func.func @transform_25(%arg0: i32) -> (i32, i32) {
    %c0_i32 = arith.constant 0 : i32
    %c0_i32_0 = arith.constant 0 : i32
    %c0_i32_1 = arith.constant 0 : i32
    return %c0_i32, %c0_i32_0 : i32, i32
  }
  func.func @transform_26(%arg0: i32) -> (i32, i32) {
    %c0_i32 = arith.constant 0 : i32
    %c0_i32_0 = arith.constant 0 : i32
    %c0_i32_1 = arith.constant 0 : i32
    return %c0_i32, %c0_i32_0 : i32, i32
  }
  func.func @transform_27(%arg0: i32) -> (i32, i32) {
    %c0_i32 = arith.constant 0 : i32
    %c0_i32_0 = arith.constant 0 : i32
    %c0_i32_1 = arith.constant 0 : i32
    return %c0_i32, %c0_i32_0 : i32, i32
  }
  func.func @transform_28(%arg0: i32) -> (i32, i32) {
    %c0_i32 = arith.constant 0 : i32
    %c0_i32_0 = arith.constant 0 : i32
    %c0_i32_1 = arith.constant 0 : i32
    return %c0_i32, %c0_i32_0 : i32, i32
  }
  func.func @transform_29(%arg0: i32) -> (i32, i32) {
    %c0_i32 = arith.constant 0 : i32
    %c0_i32_0 = arith.constant 0 : i32
    %c0_i32_1 = arith.constant 0 : i32
    return %c0_i32, %c0_i32_0 : i32, i32
  }
  func.func @transform_30(%arg0: i32) -> (i32, i32) {
    %c0_i32 = arith.constant 0 : i32
    %c0_i32_0 = arith.constant 0 : i32
    %c0_i32_1 = arith.constant 0 : i32
    return %c0_i32, %c0_i32_0 : i32, i32
  }
  func.func @transform_31(%arg0: i32) -> (i32, i32) {
    %c0_i32 = arith.constant 0 : i32
    %c0_i32_0 = arith.constant 0 : i32
    %c0_i32_1 = arith.constant 0 : i32
    return %c0_i32, %c0_i32_0 : i32, i32
  }
  func.func @transform_32(%arg0: i32) -> (i32, i32) {
    %c0_i32 = arith.constant 0 : i32
    %c0_i32_0 = arith.constant 0 : i32
    %c0_i32_1 = arith.constant 0 : i32
    return %c0_i32, %c0_i32_0 : i32, i32
  }
  func.func @transform_33(%arg0: i32) -> (i32, i32) {
    %c0_i32 = arith.constant 0 : i32
    %c0_i32_0 = arith.constant 0 : i32
    %c0_i32_1 = arith.constant 0 : i32
    return %c0_i32, %c0_i32_0 : i32, i32
  }
  func.func @transform_34(%arg0: i32) -> (i32, i32) {
    %c0_i32 = arith.constant 0 : i32
    %c0_i32_0 = arith.constant 0 : i32
    %c0_i32_1 = arith.constant 0 : i32
    return %c0_i32, %c0_i32_0 : i32, i32
  }
  func.func @transform_35(%arg0: i32) -> (i32, i32) {
    %c0_i32 = arith.constant 0 : i32
    %c0_i32_0 = arith.constant 0 : i32
    %c0_i32_1 = arith.constant 0 : i32
    return %c0_i32, %c0_i32_0 : i32, i32
  }
  func.func @transform_36(%arg0: i32) -> (i32, i32) {
    %c0_i32 = arith.constant 0 : i32
    %c0_i32_0 = arith.constant 0 : i32
    %c0_i32_1 = arith.constant 0 : i32
    return %c0_i32, %c0_i32_0 : i32, i32
  }
  func.func @transform_37(%arg0: i32) -> (i32, i32) {
    %c0_i32 = arith.constant 0 : i32
    %c0_i32_0 = arith.constant 0 : i32
    %c0_i32_1 = arith.constant 0 : i32
    return %c0_i32, %c0_i32_0 : i32, i32
  }
  func.func @transform_38(%arg0: i32) -> (i32, i32) {
    %c0_i32 = arith.constant 0 : i32
    %c0_i32_0 = arith.constant 0 : i32
    %c0_i32_1 = arith.constant 0 : i32
    return %c0_i32, %c0_i32_0 : i32, i32
  }
  func.func @transform_39(%arg0: i32) -> (i32, i32) {
    %c0_i32 = arith.constant 0 : i32
    %c0_i32_0 = arith.constant 0 : i32
    %c0_i32_1 = arith.constant 0 : i32
    return %c0_i32, %c0_i32_0 : i32, i32
  }
  func.func @transform_40(%arg0: i32) -> (i32, i32) {
    %c0_i32 = arith.constant 0 : i32
    %c0_i32_0 = arith.constant 0 : i32
    %c0_i32_1 = arith.constant 0 : i32
    return %c0_i32, %c0_i32_0 : i32, i32
  }
  func.func @transform_41(%arg0: i32) -> (i32, i32) {
    %c0_i32 = arith.constant 0 : i32
    %c0_i32_0 = arith.constant 0 : i32
    %c0_i32_1 = arith.constant 0 : i32
    return %c0_i32, %c0_i32_0 : i32, i32
  }
  func.func @transform_42(%arg0: i32) -> (i32, i32) {
    %c0_i32 = arith.constant 0 : i32
    %c0_i32_0 = arith.constant 0 : i32
    %c0_i32_1 = arith.constant 0 : i32
    return %c0_i32, %c0_i32_0 : i32, i32
  }
  func.func @transform_43(%arg0: i32) -> (i32, i32) {
    %c0_i32 = arith.constant 0 : i32
    %c0_i32_0 = arith.constant 0 : i32
    %c0_i32_1 = arith.constant 0 : i32
    return %c0_i32, %c0_i32_0 : i32, i32
  }
  func.func @transform_44(%arg0: i32) -> (i32, i32) {
    %c0_i32 = arith.constant 0 : i32
    %c0_i32_0 = arith.constant 0 : i32
    %c0_i32_1 = arith.constant 0 : i32
    return %c0_i32, %c0_i32_0 : i32, i32
  }
  func.func @transform_45(%arg0: i32) -> (i32, i32) {
    %c0_i32 = arith.constant 0 : i32
    %c0_i32_0 = arith.constant 0 : i32
    return %arg0, %c0_i32 : i32, i32
  }
}

</mosaic_0001>

<bundles_post_ra>
// kernel: tpu_custom_call.1
= control target key start
LH: loop header
LB: loop body
LE: loop exit
PB: predicated region body
PF: predicated region fallthrough
CT: control target
= control target key end

     0   :  { %s9543_s6 = smov 1   ;;  %s9544_s10 = smov 2   ;;  %s10843_s0 = inlined_call_operand.smem [shape: u32[46], index: -1, kind: input, shape index: {}] }
   0x1   :  { %s9647_s5 = sld [smem:[%s10843_s0]]   ;;  %s9545_s14 = smov 3  }
   0x2   :  { %s9652_s9 = sld [smem:[%s10843_s0 + %s9543_s6]]   ;;  %s9546_s18 = smov 4  }
   0x3   :  { %s9657_s13 = sld [smem:[%s10843_s0 + %s9544_s10]]   ;;  %s9547_s22 = smov 5  }
   0x4   :  { %s9662_s17 = sld [smem:[%s10843_s0 + %s9545_s14]]   ;;  %s9548_s26 = smov 6  }
   0x5   :  { %s9667_s21 = sld [smem:[%s10843_s0 + %s9546_s18]]   ;;  %s9549_s30 = smov 7  }
   0x6   :  { %s9672_s25 = sld [smem:[%s10843_s0 + %s9547_s22]]   ;;  %s9550_s4 = smov 8  }
   0x7   :  { %10872 = sst [smem:[#allocation96_spill]] %s9647_s5  ;;  %s9551_s10 = smov 9  }
   0x8   :  { %s9677_s29 = sld [smem:[%s10843_s0 + %s9548_s26]]   ;;  %s9552_s15 = smov 10  }
   0x9   :  { %10873 = sst [smem:[#allocation97_spill]] %s9657_s13  ;;  %s9553_s20 = smov 11  }
   0xa   :  { %s9682_s3 = sld [smem:[%s10843_s0 + %s9549_s30]]   ;;  %s9554_s26 = smov 12  }
   0xb   :  { %10874 = sst [smem:[#allocation98_spill]] %s9667_s21  ;;  %s9555_s1 = smov 13  }
   0xc   :  { %s9687_s8 = sld [smem:[%s10843_s0 + %s9550_s4]]   ;;  %s9556_s7 = smov 14  }
   0xd   :  { %s9692_s14 = sld [smem:[%s10843_s0 + %s9551_s10]]   ;;  %s9558_s22 = smov 16  }
   0xe   :  { %10875 = sst [smem:[#allocation99_spill]] %s9677_s29  ;;  %s9559_s28 = smov 17  }
   0xf   :  { %s9697_s19 = sld [smem:[%s10843_s0 + %s9552_s15]]   ;;  %s9557_s15 = smov 15  }
  0x10   :  { %s9702_s24 = sld [smem:[%s10843_s0 + %s9553_s20]]  }
  0x11   :  { %s9707_s30 = sld [smem:[%s10843_s0 + %s9554_s26]]  }
  0x12   :  { %10876 = sst [smem:[#allocation100_spill]] %s9687_s8 }
  0x13   :  { %s9712_s6 = sld [smem:[%s10843_s0 + %s9555_s1]]  }
  0x14   :  { %s9717_s12 = sld [smem:[%s10843_s0 + %s9556_s7]]   ;;  %s9560_s7 = smov 18  }
  0x15   :  { %10877 = sst [smem:[#allocation101_spill]] %s9697_s19 }
  0x16   :  { %s9722_s20 = sld [smem:[%s10843_s0 + %s9557_s15]]   ;;  %s9561_s15 = smov 19  }
  0x17   :  { %10878 = sst [smem:[#allocation102_spill]] %s9707_s30 }
  0x18   :  { %s9727_s27 = sld [smem:[%s10843_s0 + %s9558_s22]]   ;;  %s9562_s22 = smov 20  }
  0x19   :  { %s9732_s4 = sld [smem:[%s10843_s0 + %s9559_s28]]   ;;  %s9563_s28 = smov 21  }
  0x1a   :  { %10879 = sst [smem:[#allocation103_spill]] %s9717_s12 }
  0x1b   :  { %s9737_s12 = sld [smem:[%s10843_s0 + %s9560_s7]]   ;;  %s9564_s7 = smov 22  }
  0x1c   :  { %s9742_s30 = sld [smem:[%s10843_s0 + %s9561_s15]]   ;;  %s9565_s15 = smov 23  }
  0x1d   :  { %s9752_s19 = sld [smem:[%s10843_s0 + %s9563_s28]]   ;;  %s9567_s28 = smov 25  }
  0x1e   :  { %10880 = sst [smem:[#allocation104_spill]] %s9727_s27 }
  0x1f   :  { %s9747_s27 = sld [smem:[%s10843_s0 + %s9562_s22]]   ;;  %s9566_s22 = smov 24  }
  0x20   :  { %s9762_s8 = sld [smem:[%s10843_s0 + %s9565_s15]]   ;;  %s9569_s15 = smov 27  }
  0x21   :  { %10881 = sst [smem:[#allocation105_spill]] %s9737_s12 }
  0x22   :  { %s9757_s12 = sld [smem:[%s10843_s0 + %s9564_s7]]   ;;  %s9568_s7 = smov 26  }
  0x23   :  { %s9772_s29 = sld [smem:[%s10843_s0 + %s9567_s28]]   ;;  %s9571_s28 = smov 29  }
  0x24   :  { %s9782_s21 = sld [smem:[%s10843_s0 + %s9569_s15]]   ;;  %s9573_s15 = smov 31  }
  0x25   :  { %10882 = sst [smem:[#allocation106_spill]] %s9747_s27 }
  0x26   :  { %s9767_s27 = sld [smem:[%s10843_s0 + %s9566_s22]]   ;;  %s9570_s22 = smov 28  }
  0x27   :  { %s9792_s13 = sld [smem:[%s10843_s0 + %s9571_s28]]   ;;  %s9575_s28 = smov 33  }
  0x28   :  { %10883 = sst [smem:[#allocation107_spill]] %s9757_s12 }
  0x29   :  { %s9777_s12 = sld [smem:[%s10843_s0 + %s9568_s7]]   ;;  %s9572_s7 = smov 30  }
  0x2a   :  { %s9802_s5 = sld [smem:[%s10843_s0 + %s9573_s15]]   ;;  %s9577_s15 = smov 35  }
  0x2c   :  { %10884 = sst [smem:[#allocation108_spill]] %s9767_s27 }
  0x2d   :  { %s9787_s27 = sld [smem:[%s10843_s0 + %s9570_s22]]   ;;  %s9574_s22 = smov 32  }
  0x2e   :  { %10887 = sst [smem:[#allocation111_spill]] %s9792_s13 }
  0x2f   :  { %10885 = sst [smem:[#allocation109_spill]] %s9777_s12 }
  0x30   :  { %s9797_s12 = sld [smem:[%s10843_s0 + %s9572_s7]]   ;;  %s9576_s7 = smov 34  }
  0x31   :  { %10889 = sst [smem:[#allocation113_spill]] %s9802_s5 }
  0x32   :  { %s9812_s13 = sld [smem:[%s10843_s0 + %s9575_s28]]   ;;  %s9579_s28 = smov 37  }
  0x33   :  { %10886 = sst [smem:[#allocation110_spill]] %s9787_s27 }
  0x34   :  { %s9807_s27 = sld [smem:[%s10843_s0 + %s9574_s22]]   ;;  %s9578_s22 = smov 36  }
  0x35   :  { %s9822_s5 = sld [smem:[%s10843_s0 + %s9577_s15]]   ;;  %s9581_s15 = smov 39  }
  0x36   :  { %10888 = sst [smem:[#allocation112_spill]] %s9797_s12 }
  0x37   :  { %s9817_s12 = sld [smem:[%s10843_s0 + %s9576_s7]]   ;;  %s9580_s7 = smov 38  }
  0x38   :  { %10891 = sst [smem:[#allocation115_spill]] %s9812_s13 }
  0x39   :  { %s9832_s13 = sld [smem:[%s10843_s0 + %s9579_s28]]   ;;  %s9583_s28 = smov 41  }
  0x3a   :  { %10890 = sst [smem:[#allocation114_spill]] %s9807_s27 }
  0x3b   :  { %10893 = sst [smem:[#allocation117_spill]] %s9822_s5 }
  0x3c   :  { %s9827_s27 = sld [smem:[%s10843_s0 + %s9578_s22]]   ;;  %s9582_s22 = smov 40  }
  0x3d   :  { %10892 = sst [smem:[#allocation116_spill]] %s9817_s12 }
  0x3e   :  { %s9837_s12 = sld [smem:[%s10843_s0 + %s9580_s7]]   ;;  %s9584_s7 = smov 42  }
  0x3f   :  { %10895 = sst [smem:[#allocation119_spill]] %s9832_s13 }
  0x40   :  { %s9842_s5 = sld [smem:[%s10843_s0 + %s9581_s15]]   ;;  %s9585_s15 = smov 43  }
  0x41   :  { %s9852_s13 = sld [smem:[%s10843_s0 + %s9583_s28]]   ;;  %s9587_s28 = smov 45  }
  0x42   :  { %10894 = sst [smem:[#allocation118_spill]] %s9827_s27 }
  0x43   :  { %s9847_s27 = sld [smem:[%s10843_s0 + %s9582_s22]]   ;;  %s9586_s22 = smov 44  }
  0x44   :  { %10896 = sst [smem:[#allocation120_spill]] %s9837_s12 }
  0x45   :  { %s9857_s12 = sld [smem:[%s10843_s0 + %s9584_s7]]  }
  0x46   :  { %10897 = sst [smem:[#allocation121_spill]] %s9842_s5 }
  0x47   :  { %10899 = sst [smem:[#allocation123_spill]] %s9852_s13 }
  0x48   :  { %s9862_s5 = sld [smem:[%s10843_s0 + %s9585_s15]]  }
  0x49   :  { %10898 = sst [smem:[#allocation122_spill]] %s9847_s27 }
  0x4a   :  { %s9867_s27 = sld [smem:[%s10843_s0 + %s9586_s22]]  }
  0x4b   :  { %s9872_s13 = sld [smem:[%s10843_s0 + %s9587_s28]]  }
  0x4c   :  { %96 = vsyncpa [#allocation3], 0 }
  0x4d   :  { %97 = vsyncpa [#allocation6], 0 }
  0x4e   :  { %98 = vsyncpa [#allocation9], 0 }
  0x4f   :  { %99 = vsyncpa [#allocation12], 0 }
  0x50   :  { %100 = vsyncpa [#allocation15], 0 }
  0x51   :  { %101 = vsyncpa [#allocation18], 0 }
  0x52   :  { %102 = vsyncpa [#allocation21], 0 }
  0x53   :  { %103 = vsyncpa [#allocation24], 0 }
  0x54   :  { %104 = vsyncpa [#allocation27], 0 }
  0x55   :  { %105 = vsyncpa [#allocation30], 0 }
  0x56   :  { %106 = vsyncpa [#allocation33], 0 }
  0x57   :  { %107 = vsyncpa [#allocation36], 0 }
  0x58   :  { %108 = vsyncpa [#allocation39], 0 }
  0x59   :  { %109 = vsyncpa [#allocation42], 0 }
  0x5a   :  { %110 = vsyncpa [#allocation45], 0 }
  0x5b   :  { %111 = vsyncpa [#allocation48], 0 }
  0x5c   :  { %112 = vsyncpa [#allocation51], 0 }
  0x5d   :  { %113 = vsyncpa [#allocation54], 0 }
  0x5e   :  { %114 = vsyncpa [#allocation57], 0 }
  0x5f   :  { %115 = vsyncpa [#allocation60], 0 }
  0x60   :  { %116 = vsyncpa [#allocation63], 0 }
  0x61   :  { %117 = vsyncpa [#allocation66], 0 }
  0x62   :  { %118 = vsyncpa [#allocation69], 0 }
  0x63   :  { %119 = vsyncpa [#allocation4], 0  ;;  %s9588_s0 = smov [#allocation5]   ;;  %s9589_s10 = smov [#allocation8]  }
  0x64   :  { %s137_s7 = sshll.u32 %s9588_s0, 4  ;;  %s161_s11 = sshll.u32 %s9589_s10, 4  ;;  %s138_s7 = int_to_ptr.vmem [resolvable:$true] %s137_s7  ;;  %s9874_s11 = int_to_ptr.vmem [resolvable:$true] %s161_s11 }
  0x65   :  { %s8483_s15 = scalar_lea.hbm %s9652_s9, 512 }
  0x66   :  { %p8484_p0 = scmp.ne.s32.totalorder %s9652_s9, %s8483_s15  ;;  %p8487_p1 = scmp.lt.u32.totalorder %s8483_s15, %s9652_s9 }
  0x68   :  { %p8489_p2 = pnand %p8487_p1, %p8484_p0 }
  0x6a   :  { %8492 = shalt.err (!%p8489_p2)
}
  0x6b   :  { %s8493_s16 = scalar_lea.vmem %s138_s7, 512  ;;  %p8498_p4 = scmp.lt.s32.totalorder %s138_s7, %s138_s7 }
  0x6c   :  { %p8494_p3 = scmp.ne.s32.totalorder %s138_s7, %s8493_s16  ;;  %p8499_p5 = scmp.lt.s32.totalorder %s8493_s16, %s8493_s16 }
  0x6e   :  { %p8500_p6 = por %p8499_p5, %p8498_p4 }
  0x70   :  { %p8501_p7 = pnand %p8500_p6, %p8494_p3 }
  0x72   :  { %8504 = shalt.err (!%p8501_p7)
}
  0x73   :  { %s9590_s18 = smov 128   ;;  %s9591_s22 = smov 8  }
  0x74   :  { %143 = dma.hbm_to_vmem [thread:$0]  %s9652_s9, 512, %s138_s7, [#allocation6], %s9590_s18, %s9590_s18, %s9591_s22  }
  0x75   :  { %s8505_s23 = scalar_lea.hbm %s9662_s17, 512 }
  0x76   :  { %p8506_p8 = scmp.ne.s32.totalorder %s9662_s17, %s8505_s23  ;;  %p8509_p9 = scmp.lt.u32.totalorder %s8505_s23, %s9662_s17 }
  0x78   :  { %p8511_p10 = pnand %p8509_p9, %p8506_p8 }
  0x7a   :  { %8514 = shalt.err (!%p8511_p10)
}
  0x7b   :  { %s8515_s26 = scalar_lea.vmem %s9874_s11, 512  ;;  %p8520_p12 = scmp.lt.s32.totalorder %s9874_s11, %s9874_s11 }
  0x7c   :  { %p8516_p11 = scmp.ne.s32.totalorder %s9874_s11, %s8515_s26  ;;  %p8521_p13 = scmp.lt.s32.totalorder %s8515_s26, %s8515_s26 }
  0x7e   :  { %p8522_p0 = por %p8521_p13, %p8520_p12 }
  0x80   :  { %p8523_p1 = pnand %p8522_p0, %p8516_p11 }
  0x82   :  { %8526 = shalt.err (!%p8523_p1)
}
  0x83   :  { %167 = dma.hbm_to_vmem [thread:$0]  %s9662_s17, 512, %s9874_s11, [#allocation9], %s9590_s18, %s9590_s18, %s9591_s22  }
  0x84   :  { %s9592_s9 = smov [#allocation11]   ;;  %s9593_s1 = smov [#allocation14]  }
  0x85   :  { %s183_s28 = sshll.u32 %s9592_s9, 4  ;;  %s207_s2 = sshll.u32 %s9593_s1, 4  ;;  %s184_s28 = int_to_ptr.vmem [resolvable:$true] %s183_s28  ;;  %s9895_s2 = int_to_ptr.vmem [resolvable:$true] %s207_s2 }
  0x86   :  { %s8527_s0 = scalar_lea.hbm %s9672_s25, 512 }
  0x87   :  { %p8528_p2 = scmp.ne.s32.totalorder %s9672_s25, %s8527_s0  ;;  %p8531_p3 = scmp.lt.u32.totalorder %s8527_s0, %s9672_s25 }
  0x89   :  { %p8533_p4 = pnand %p8531_p3, %p8528_p2 }
  0x8b   :  { %8536 = shalt.err (!%p8533_p4)
}
  0x8c   :  { %s8537_s7 = scalar_lea.vmem %s184_s28, 512  ;;  %p8542_p6 = scmp.lt.s32.totalorder %s184_s28, %s184_s28 }
  0x8d   :  { %p8538_p5 = scmp.ne.s32.totalorder %s184_s28, %s8537_s7  ;;  %p8543_p7 = scmp.lt.s32.totalorder %s8537_s7, %s8537_s7 }
  0x8f   :  { %p8544_p8 = por %p8543_p7, %p8542_p6 }
  0x91   :  { %p8545_p9 = pnand %p8544_p8, %p8538_p5 }
  0x93   :  { %8548 = shalt.err (!%p8545_p9)
}
  0x94   :  { %189 = dma.hbm_to_vmem [thread:$0]  %s9672_s25, 512, %s184_s28, [#allocation12], %s9590_s18, %s9590_s18, %s9591_s22  }
  0x95   :  { %s8549_s17 = scalar_lea.hbm %s9682_s3, 512 }
  0x96   :  { %p8550_p10 = scmp.ne.s32.totalorder %s9682_s3, %s8549_s17  ;;  %p8553_p11 = scmp.lt.u32.totalorder %s8549_s17, %s9682_s3 }
  0x98   :  { %p8555_p12 = pnand %p8553_p11, %p8550_p10 }
  0x9a   :  { %8558 = shalt.err (!%p8555_p12)
}
  0x9b   :  { %s8559_s10 = scalar_lea.vmem %s9895_s2, 512  ;;  %p8564_p0 = scmp.lt.s32.totalorder %s9895_s2, %s9895_s2 }
  0x9c   :  { %p8560_p13 = scmp.ne.s32.totalorder %s9895_s2, %s8559_s10  ;;  %p8565_p1 = scmp.lt.s32.totalorder %s8559_s10, %s8559_s10 }
  0x9e   :  { %p8566_p2 = por %p8565_p1, %p8564_p0 }
  0xa0   :  { %p8567_p3 = pnand %p8566_p2, %p8560_p13 }
  0xa2   :  { %8570 = shalt.err (!%p8567_p3)
}
  0xa3   :  { %213 = dma.hbm_to_vmem [thread:$0]  %s9682_s3, 512, %s9895_s2, [#allocation15], %s9590_s18, %s9590_s18, %s9591_s22  }
  0xa4   :  { %s9594_s25 = smov [#allocation17]   ;;  %s9595_s15 = smov [#allocation20]  }
  0xa5   :  { %s229_s11 = sshll.u32 %s9594_s25, 4  ;;  %s251_s16 = sshll.u32 %s9595_s15, 4  ;;  %s230_s11 = int_to_ptr.vmem [resolvable:$true] %s229_s11  ;;  %s9916_s16 = int_to_ptr.vmem [resolvable:$true] %s251_s16 }
  0xa6   :  { %s8571_s23 = scalar_lea.hbm %s9692_s14, 512 }
  0xa7   :  { %p8572_p4 = scmp.ne.s32.totalorder %s9692_s14, %s8571_s23  ;;  %p8575_p5 = scmp.lt.u32.totalorder %s8571_s23, %s9692_s14 }
  0xa9   :  { %p8577_p6 = pnand %p8575_p5, %p8572_p4 }
  0xab   :  { %8580 = shalt.err (!%p8577_p6)
}
  0xac   :  { %s8581_s26 = scalar_lea.vmem %s230_s11, 512  ;;  %p8586_p8 = scmp.lt.s32.totalorder %s230_s11, %s230_s11 }
  0xad   :  { %p8582_p7 = scmp.ne.s32.totalorder %s230_s11, %s8581_s26  ;;  %p8587_p9 = scmp.lt.s32.totalorder %s8581_s26, %s8581_s26 }
  0xaf   :  { %p8588_p10 = por %p8587_p9, %p8586_p8 }
  0xb1   :  { %p8589_p11 = pnand %p8588_p10, %p8582_p7 }
  0xb3   :  { %8592 = shalt.err (!%p8589_p11)
}
  0xb4   :  { %235 = dma.hbm_to_vmem [thread:$0]  %s9692_s14, 512, %s230_s11, [#allocation18], %s9590_s18, %s9590_s18, %s9591_s22  }
  0xb5   :  { %s8593_s3 = scalar_lea.hbm %s9702_s24, 512 }
  0xb6   :  { %p8594_p12 = scmp.ne.s32.totalorder %s9702_s24, %s8593_s3  ;;  %p8597_p13 = scmp.lt.u32.totalorder %s8593_s3, %s9702_s24 }
  0xb8   :  { %p8599_p0 = pnand %p8597_p13, %p8594_p12 }
  0xba   :  { %8602 = shalt.err (!%p8599_p0)
}
  0xbb   :  { %s8603_s9 = scalar_lea.vmem %s9916_s16, 512  ;;  %p8608_p2 = scmp.lt.s32.totalorder %s9916_s16, %s9916_s16 }
  0xbc   :  { %p8604_p1 = scmp.ne.s32.totalorder %s9916_s16, %s8603_s9  ;;  %p8609_p3 = scmp.lt.s32.totalorder %s8603_s9, %s8603_s9 }
  0xbe   :  { %p8610_p4 = por %p8609_p3, %p8608_p2 }
  0xc0   :  { %p8611_p5 = pnand %p8610_p4, %p8604_p1 }
  0xc2   :  { %8614 = shalt.err (!%p8611_p5)
}
  0xc3   :  { %257 = dma.hbm_to_vmem [thread:$0]  %s9702_s24, 512, %s9916_s16, [#allocation21], %s9590_s18, %s9590_s18, %s9591_s22  }
  0xc4   :  { %s9596_s14 = smov [#allocation23]   ;;  %s9597_s1 = smov [#allocation26]  }
  0xc5   :  { %s275_s28 = sshll.u32 %s9596_s14, 4  ;;  %s297_s2 = sshll.u32 %s9597_s1, 4  ;;  %s276_s28 = int_to_ptr.vmem [resolvable:$true] %s275_s28  ;;  %s9937_s2 = int_to_ptr.vmem [resolvable:$true] %s297_s2 }
  0xc6   :  { %s8615_s0 = scalar_lea.hbm %s9712_s6, 512 }
  0xc7   :  { %p8616_p6 = scmp.ne.s32.totalorder %s9712_s6, %s8615_s0  ;;  %p8619_p7 = scmp.lt.u32.totalorder %s8615_s0, %s9712_s6 }
  0xc9   :  { %p8621_p8 = pnand %p8619_p7, %p8616_p6 }
  0xcb   :  { %8624 = shalt.err (!%p8621_p8)
}
  0xcc   :  { %s8625_s7 = scalar_lea.vmem %s276_s28, 512  ;;  %p8630_p10 = scmp.lt.s32.totalorder %s276_s28, %s276_s28 }
  0xcd   :  { %p8626_p9 = scmp.ne.s32.totalorder %s276_s28, %s8625_s7  ;;  %p8631_p11 = scmp.lt.s32.totalorder %s8625_s7, %s8625_s7 }
  0xcf   :  { %p8632_p12 = por %p8631_p11, %p8630_p10 }
  0xd1   :  { %p8633_p13 = pnand %p8632_p12, %p8626_p9 }
  0xd3   :  { %8636 = shalt.err (!%p8633_p13)
}
  0xd4   :  { %281 = dma.hbm_to_vmem [thread:$0]  %s9712_s6, 512, %s276_s28, [#allocation24], %s9590_s18, %s9590_s18, %s9591_s22  }
  0xd5   :  { %s8637_s24 = scalar_lea.hbm %s9722_s20, 512 }
  0xd6   :  { %p8638_p0 = scmp.ne.s32.totalorder %s9722_s20, %s8637_s24  ;;  %p8641_p1 = scmp.lt.u32.totalorder %s8637_s24, %s9722_s20 }
  0xd8   :  { %p8643_p2 = pnand %p8641_p1, %p8638_p0 }
  0xda   :  { %8646 = shalt.err (!%p8643_p2)
}
  0xdb   :  { %s8647_s17 = scalar_lea.vmem %s9937_s2, 512  ;;  %p8652_p4 = scmp.lt.s32.totalorder %s9937_s2, %s9937_s2 }
  0xdc   :  { %p8648_p3 = scmp.ne.s32.totalorder %s9937_s2, %s8647_s17  ;;  %p8653_p5 = scmp.lt.s32.totalorder %s8647_s17, %s8647_s17 }
  0xde   :  { %p8654_p6 = por %p8653_p5, %p8652_p4 }
  0xe0   :  { %p8655_p7 = pnand %p8654_p6, %p8648_p3 }
  0xe2   :  { %8658 = shalt.err (!%p8655_p7)
}
  0xe3   :  { %303 = dma.hbm_to_vmem [thread:$0]  %s9722_s20, 512, %s9937_s2, [#allocation27], %s9590_s18, %s9590_s18, %s9591_s22  }
  0xe4   :  { %s9598_s6 = smov [#allocation29]   ;;  %s9599_s25 = smov [#allocation32]  }
  0xe5   :  { %s319_s10 = sshll.u32 %s9598_s6, 4  ;;  %s343_s11 = sshll.u32 %s9599_s25, 4  ;;  %s320_s10 = int_to_ptr.vmem [resolvable:$true] %s319_s10  ;;  %s9958_s11 = int_to_ptr.vmem [resolvable:$true] %s343_s11 }
  0xe6   :  { %s8659_s15 = scalar_lea.hbm %s9732_s4, 512 }
  0xe7   :  { %p8660_p8 = scmp.ne.s32.totalorder %s9732_s4, %s8659_s15  ;;  %p8663_p9 = scmp.lt.u32.totalorder %s8659_s15, %s9732_s4 }
  0xe9   :  { %p8665_p10 = pnand %p8663_p9, %p8660_p8 }
  0xeb   :  { %8668 = shalt.err (!%p8665_p10)
}
  0xec   :  { %s8669_s16 = scalar_lea.vmem %s320_s10, 512  ;;  %p8674_p12 = scmp.lt.s32.totalorder %s320_s10, %s320_s10 }
  0xed   :  { %p8670_p11 = scmp.ne.s32.totalorder %s320_s10, %s8669_s16  ;;  %p8675_p13 = scmp.lt.s32.totalorder %s8669_s16, %s8669_s16 }
  0xef   :  { %p8676_p0 = por %p8675_p13, %p8674_p12 }
  0xf1   :  { %p8677_p1 = pnand %p8676_p0, %p8670_p11 }
  0xf3   :  { %8680 = shalt.err (!%p8677_p1)
}
  0xf4   :  { %325 = dma.hbm_to_vmem [thread:$0]  %s9732_s4, 512, %s320_s10, [#allocation30], %s9590_s18, %s9590_s18, %s9591_s22  }
  0xf5   :  { %s8681_s20 = scalar_lea.hbm %s9742_s30, 512 }
  0xf6   :  { %p8682_p2 = scmp.ne.s32.totalorder %s9742_s30, %s8681_s20  ;;  %p8685_p3 = scmp.lt.u32.totalorder %s8681_s20, %s9742_s30 }
  0xf8   :  { %p8687_p4 = pnand %p8685_p3, %p8682_p2 }
  0xfa   :  { %8690 = shalt.err (!%p8687_p4)
}
  0xfb   :  { %s8691_s23 = scalar_lea.vmem %s9958_s11, 512  ;;  %p8696_p6 = scmp.lt.s32.totalorder %s9958_s11, %s9958_s11 }
  0xfc   :  { %p8692_p5 = scmp.ne.s32.totalorder %s9958_s11, %s8691_s23  ;;  %p8697_p7 = scmp.lt.s32.totalorder %s8691_s23, %s8691_s23 }
  0xfe   :  { %p8698_p8 = por %p8697_p7, %p8696_p6 }
 0x100   :  { %p8699_p9 = pnand %p8698_p8, %p8692_p5 }
 0x102   :  { %8702 = shalt.err (!%p8699_p9)
}
 0x103   :  { %349 = dma.hbm_to_vmem [thread:$0]  %s9742_s30, 512, %s9958_s11, [#allocation33], %s9590_s18, %s9590_s18, %s9591_s22  }
 0x104   :  { %s9600_s4 = smov [#allocation35]   ;;  %s9601_s3 = smov [#allocation38]  }
 0x105   :  { %s365_s26 = sshll.u32 %s9600_s4, 4  ;;  %s389_s9 = sshll.u32 %s9601_s3, 4  ;;  %s366_s26 = int_to_ptr.vmem [resolvable:$true] %s365_s26  ;;  %s9979_s9 = int_to_ptr.vmem [resolvable:$true] %s389_s9 }
 0x106   :  { %s8703_s14 = scalar_lea.hbm %s9752_s19, 512 }
 0x107   :  { %p8704_p10 = scmp.ne.s32.totalorder %s9752_s19, %s8703_s14  ;;  %p8707_p11 = scmp.lt.u32.totalorder %s8703_s14, %s9752_s19 }
 0x109   :  { %p8709_p12 = pnand %p8707_p11, %p8704_p10 }
 0x10b   :  { %8712 = shalt.err (!%p8709_p12)
}
 0x10c   :  { %s8713_s28 = scalar_lea.vmem %s366_s26, 512  ;;  %p8718_p0 = scmp.lt.s32.totalorder %s366_s26, %s366_s26 }
 0x10d   :  { %p8714_p13 = scmp.ne.s32.totalorder %s366_s26, %s8713_s28  ;;  %p8719_p1 = scmp.lt.s32.totalorder %s8713_s28, %s8713_s28 }
 0x10f   :  { %p8720_p2 = por %p8719_p1, %p8718_p0 }
 0x111   :  { %p8721_p3 = pnand %p8720_p2, %p8714_p13 }
 0x113   :  { %8724 = shalt.err (!%p8721_p3)
}
 0x114   :  { %371 = dma.hbm_to_vmem [thread:$0]  %s9752_s19, 512, %s366_s26, [#allocation36], %s9590_s18, %s9590_s18, %s9591_s22  }
 0x115   :  { %s8725_s30 = scalar_lea.hbm %s9762_s8, 512 }
 0x116   :  { %p8726_p4 = scmp.ne.s32.totalorder %s9762_s8, %s8725_s30  ;;  %p8729_p5 = scmp.lt.u32.totalorder %s8725_s30, %s9762_s8 }
 0x118   :  { %p8731_p6 = pnand %p8729_p5, %p8726_p4 }
 0x11a   :  { %8734 = shalt.err (!%p8731_p6)
}
 0x11b   :  { %s8735_s1 = scalar_lea.vmem %s9979_s9, 512  ;;  %p8740_p8 = scmp.lt.s32.totalorder %s9979_s9, %s9979_s9 }
 0x11c   :  { %p8736_p7 = scmp.ne.s32.totalorder %s9979_s9, %s8735_s1  ;;  %p8741_p9 = scmp.lt.s32.totalorder %s8735_s1, %s8735_s1 }
 0x11e   :  { %p8742_p10 = por %p8741_p9, %p8740_p8 }
 0x120   :  { %p8743_p11 = pnand %p8742_p10, %p8736_p7 }
 0x122   :  { %8746 = shalt.err (!%p8743_p11)
}
 0x123   :  { %395 = dma.hbm_to_vmem [thread:$0]  %s9762_s8, 512, %s9979_s9, [#allocation39], %s9590_s18, %s9590_s18, %s9591_s22  }
 0x124   :  { %s9602_s19 = smov [#allocation41]   ;;  %s9603_s0 = smov [#allocation44]  }
 0x125   :  { %s411_s2 = sshll.u32 %s9602_s19, 4  ;;  %s433_s7 = sshll.u32 %s9603_s0, 4  ;;  %s412_s2 = int_to_ptr.vmem [resolvable:$true] %s411_s2  ;;  %s10000_s7 = int_to_ptr.vmem [resolvable:$true] %s433_s7 }
 0x126   :  { %s8747_s24 = scalar_lea.hbm %s9772_s29, 512 }
 0x127   :  { %p8748_p12 = scmp.ne.s32.totalorder %s9772_s29, %s8747_s24  ;;  %p8751_p13 = scmp.lt.u32.totalorder %s8747_s24, %s9772_s29 }
 0x129   :  { %p8753_p0 = pnand %p8751_p13, %p8748_p12 }
 0x12b   :  { %8756 = shalt.err (!%p8753_p0)
}
 0x12c   :  { %s8757_s17 = scalar_lea.vmem %s412_s2, 512  ;;  %p8762_p2 = scmp.lt.s32.totalorder %s412_s2, %s412_s2 }
 0x12d   :  { %p8758_p1 = scmp.ne.s32.totalorder %s412_s2, %s8757_s17  ;;  %p8763_p3 = scmp.lt.s32.totalorder %s8757_s17, %s8757_s17 }
 0x12f   :  { %p8764_p4 = por %p8763_p3, %p8762_p2 }
 0x131   :  { %p8765_p5 = pnand %p8764_p4, %p8758_p1 }
 0x133   :  { %8768 = shalt.err (!%p8765_p5)
}
 0x134   :  { %417 = dma.hbm_to_vmem [thread:$0]  %s9772_s29, 512, %s412_s2, [#allocation42], %s9590_s18, %s9590_s18, %s9591_s22  }
 0x135   :  { %s8769_s8 = scalar_lea.hbm %s9782_s21, 512 }
 0x136   :  { %p8770_p6 = scmp.ne.s32.totalorder %s9782_s21, %s8769_s8  ;;  %p8773_p7 = scmp.lt.u32.totalorder %s8769_s8, %s9782_s21 }
 0x138   :  { %p8775_p8 = pnand %p8773_p7, %p8770_p6 }
 0x13a   :  { %8778 = shalt.err (!%p8775_p8)
}
 0x13b   :  { %s8779_s6 = scalar_lea.vmem %s10000_s7, 512  ;;  %p8784_p10 = scmp.lt.s32.totalorder %s10000_s7, %s10000_s7 }
 0x13c   :  { %p8780_p9 = scmp.ne.s32.totalorder %s10000_s7, %s8779_s6  ;;  %p8785_p11 = scmp.lt.s32.totalorder %s8779_s6, %s8779_s6 }
 0x13e   :  { %p8786_p12 = por %p8785_p11, %p8784_p10 }
 0x140   :  { %p8787_p13 = pnand %p8786_p12, %p8780_p9 }
 0x142   :  { %8790 = shalt.err (!%p8787_p13)
}
 0x143   :  { %s10900_s29 = sld [smem:[#allocation111_spill]]  ;;  %s9604_s10 = smov [#allocation47]  }
 0x144   :  { %439 = dma.hbm_to_vmem [thread:$0]  %s9782_s21, 512, %s10000_s7, [#allocation45], %s9590_s18, %s9590_s18, %s9591_s22  }
 0x145   :  { %s457_s25 = sshll.u32 %s9604_s10, 4  ;;  %s9605_s11 = smov [#allocation50]   ;;  %s458_s25 = int_to_ptr.vmem [resolvable:$true] %s457_s25 }
 0x146   :  { %s479_s15 = sshll.u32 %s9605_s11, 4  ;;  %s10021_s15 = int_to_ptr.vmem [resolvable:$true] %s479_s15 }
 0x149   :  { %s8791_s16 = scalar_lea.hbm %s10900_s29, 512 }
 0x14a   :  { %p8792_p0 = scmp.ne.s32.totalorder %s10900_s29, %s8791_s16  ;;  %p8795_p1 = scmp.lt.u32.totalorder %s8791_s16, %s10900_s29 }
 0x14c   :  { %p8797_p2 = pnand %p8795_p1, %p8792_p0 }
 0x14e   :  { %8800 = shalt.err (!%p8797_p2)
}
 0x14f   :  { %s8801_s20 = scalar_lea.vmem %s458_s25, 512  ;;  %p8806_p4 = scmp.lt.s32.totalorder %s458_s25, %s458_s25 }
 0x150   :  { %p8802_p3 = scmp.ne.s32.totalorder %s458_s25, %s8801_s20  ;;  %p8807_p5 = scmp.lt.s32.totalorder %s8801_s20, %s8801_s20 }
 0x152   :  { %p8808_p6 = por %p8807_p5, %p8806_p4 }
 0x154   :  { %p8809_p7 = pnand %p8808_p6, %p8802_p3 }
 0x156   :  { %8812 = shalt.err (!%p8809_p7)
}
 0x157   :  { %s10901_s21 = sld [smem:[#allocation113_spill]] }
 0x158   :  { %463 = dma.hbm_to_vmem [thread:$0]  %s10900_s29, 512, %s458_s25, [#allocation48], %s9590_s18, %s9590_s18, %s9591_s22  }
 0x15d   :  { %s8813_s23 = scalar_lea.hbm %s10901_s21, 512 }
 0x15e   :  { %p8814_p8 = scmp.ne.s32.totalorder %s10901_s21, %s8813_s23  ;;  %p8817_p9 = scmp.lt.u32.totalorder %s8813_s23, %s10901_s21 }
 0x160   :  { %p8819_p10 = pnand %p8817_p9, %p8814_p8 }
 0x162   :  { %8822 = shalt.err (!%p8819_p10)
}
 0x163   :  { %s8823_s4 = scalar_lea.vmem %s10021_s15, 512  ;;  %p8828_p12 = scmp.lt.s32.totalorder %s10021_s15, %s10021_s15 }
 0x164   :  { %p8824_p11 = scmp.ne.s32.totalorder %s10021_s15, %s8823_s4  ;;  %p8829_p13 = scmp.lt.s32.totalorder %s8823_s4, %s8823_s4 }
 0x166   :  { %p8830_p0 = por %p8829_p13, %p8828_p12 }
 0x168   :  { %p8831_p1 = pnand %p8830_p0, %p8824_p11 }
 0x16a   :  { %8834 = shalt.err (!%p8831_p1)
}
 0x16b   :  { %s10902_s26 = sld [smem:[#allocation115_spill]]  ;;  %s9606_s3 = smov [#allocation53]  }
 0x16c   :  { %485 = dma.hbm_to_vmem [thread:$0]  %s10901_s21, 512, %s10021_s15, [#allocation51], %s9590_s18, %s9590_s18, %s9591_s22  }
 0x16d   :  { %s501_s9 = sshll.u32 %s9606_s3, 4  ;;  %s9607_s14 = smov [#allocation56]   ;;  %s502_s9 = int_to_ptr.vmem [resolvable:$true] %s501_s9 }
 0x16e   :  { %s525_s28 = sshll.u32 %s9607_s14, 4  ;;  %s10042_s28 = int_to_ptr.vmem [resolvable:$true] %s525_s28 }
 0x171   :  { %s8835_s30 = scalar_lea.hbm %s10902_s26, 512 }
 0x172   :  { %p8836_p2 = scmp.ne.s32.totalorder %s10902_s26, %s8835_s30  ;;  %p8839_p3 = scmp.lt.u32.totalorder %s8835_s30, %s10902_s26 }
 0x174   :  { %p8841_p4 = pnand %p8839_p3, %p8836_p2 }
 0x176   :  { %8844 = shalt.err (!%p8841_p4)
}
 0x177   :  { %s8845_s1 = scalar_lea.vmem %s502_s9, 512  ;;  %p8850_p6 = scmp.lt.s32.totalorder %s502_s9, %s502_s9 }
 0x178   :  { %p8846_p5 = scmp.ne.s32.totalorder %s502_s9, %s8845_s1  ;;  %p8851_p7 = scmp.lt.s32.totalorder %s8845_s1, %s8845_s1 }
 0x17a   :  { %p8852_p8 = por %p8851_p7, %p8850_p6 }
 0x17c   :  { %p8853_p9 = pnand %p8852_p8, %p8846_p5 }
 0x17e   :  { %8856 = shalt.err (!%p8853_p9)
}
 0x17f   :  { %s10903_s19 = sld [smem:[#allocation117_spill]] }
 0x180   :  { %507 = dma.hbm_to_vmem [thread:$0]  %s10902_s26, 512, %s502_s9, [#allocation54], %s9590_s18, %s9590_s18, %s9591_s22  }
 0x185   :  { %s8857_s2 = scalar_lea.hbm %s10903_s19, 512 }
 0x186   :  { %p8858_p10 = scmp.ne.s32.totalorder %s10903_s19, %s8857_s2  ;;  %p8861_p11 = scmp.lt.u32.totalorder %s8857_s2, %s10903_s19 }
 0x188   :  { %p8863_p12 = pnand %p8861_p11, %p8858_p10 }
 0x18a   :  { %8866 = shalt.err (!%p8863_p12)
}
 0x18b   :  { %s8867_s0 = scalar_lea.vmem %s10042_s28, 512  ;;  %p8872_p0 = scmp.lt.s32.totalorder %s10042_s28, %s10042_s28 }
 0x18c   :  { %p8868_p13 = scmp.ne.s32.totalorder %s10042_s28, %s8867_s0  ;;  %p8873_p1 = scmp.lt.s32.totalorder %s8867_s0, %s8867_s0 }
 0x18e   :  { %p8874_p2 = por %p8873_p1, %p8872_p0 }
 0x190   :  { %p8875_p3 = pnand %p8874_p2, %p8868_p13 }
 0x192   :  { %8878 = shalt.err (!%p8875_p3)
}
 0x193   :  { %s10904_s7 = sld [smem:[#allocation119_spill]]  ;;  %s9608_s24 = smov [#allocation59]  }
 0x194   :  { %531 = dma.hbm_to_vmem [thread:$0]  %s10903_s19, 512, %s10042_s28, [#allocation57], %s9590_s18, %s9590_s18, %s9591_s22  }
 0x195   :  { %s547_s17 = sshll.u32 %s9608_s24, 4  ;;  %s9609_s8 = smov [#allocation62]   ;;  %s548_s17 = int_to_ptr.vmem [resolvable:$true] %s547_s17 }
 0x196   :  { %s571_s6 = sshll.u32 %s9609_s8, 4  ;;  %s10063_s6 = int_to_ptr.vmem [resolvable:$true] %s571_s6 }
 0x199   :  { %s8879_s29 = scalar_lea.hbm %s10904_s7, 512 }
 0x19a   :  { %p8880_p4 = scmp.ne.s32.totalorder %s10904_s7, %s8879_s29  ;;  %p8883_p5 = scmp.lt.u32.totalorder %s8879_s29, %s10904_s7 }
 0x19c   :  { %p8885_p6 = pnand %p8883_p5, %p8880_p4 }
 0x19e   :  { %8888 = shalt.err (!%p8885_p6)
}
 0x19f   :  { %s8889_s10 = scalar_lea.vmem %s548_s17, 512  ;;  %p8894_p8 = scmp.lt.s32.totalorder %s548_s17, %s548_s17 }
 0x1a0   :  { %p8890_p7 = scmp.ne.s32.totalorder %s548_s17, %s8889_s10  ;;  %p8895_p9 = scmp.lt.s32.totalorder %s8889_s10, %s8889_s10 }
 0x1a2   :  { %p8896_p10 = por %p8895_p9, %p8894_p8 }
 0x1a4   :  { %p8897_p11 = pnand %p8896_p10, %p8890_p7 }
 0x1a6   :  { %8900 = shalt.err (!%p8897_p11)
}
 0x1a7   :  { %s10905_s25 = sld [smem:[#allocation121_spill]] }
 0x1a8   :  { %553 = dma.hbm_to_vmem [thread:$0]  %s10904_s7, 512, %s548_s17, [#allocation60], %s9590_s18, %s9590_s18, %s9591_s22  }
 0x1ad   :  { %s8901_s11 = scalar_lea.hbm %s10905_s25, 512 }
 0x1ae   :  { %p8902_p12 = scmp.ne.s32.totalorder %s10905_s25, %s8901_s11  ;;  %p8905_p13 = scmp.lt.u32.totalorder %s8901_s11, %s10905_s25 }
 0x1b0   :  { %p8907_p0 = pnand %p8905_p13, %p8902_p12 }
 0x1b2   :  { %8910 = shalt.err (!%p8907_p0)
}
 0x1b3   :  { %s8911_s15 = scalar_lea.vmem %s10063_s6, 512  ;;  %p8916_p2 = scmp.lt.s32.totalorder %s10063_s6, %s10063_s6 }
 0x1b4   :  { %p8912_p1 = scmp.ne.s32.totalorder %s10063_s6, %s8911_s15  ;;  %p8917_p3 = scmp.lt.s32.totalorder %s8911_s15, %s8911_s15 }
 0x1b6   :  { %p8918_p4 = por %p8917_p3, %p8916_p2 }
 0x1b8   :  { %p8919_p5 = pnand %p8918_p4, %p8912_p1 }
 0x1ba   :  { %8922 = shalt.err (!%p8919_p5)
}
 0x1bb   :  { %s10906_s16 = sld [smem:[#allocation123_spill]]  ;;  %s9610_s20 = smov [#allocation65]  }
 0x1bc   :  { %577 = dma.hbm_to_vmem [thread:$0]  %s10905_s25, 512, %s10063_s6, [#allocation63], %s9590_s18, %s9590_s18, %s9591_s22  }
 0x1bd   :  { %s593_s21 = sshll.u32 %s9610_s20, 4  ;;  %s9611_s23 = smov [#allocation68]   ;;  %s594_s21 = int_to_ptr.vmem [resolvable:$true] %s593_s21 }
 0x1be   :  { %s617_s4 = sshll.u32 %s9611_s23, 4  ;;  %s10084_s4 = int_to_ptr.vmem [resolvable:$true] %s617_s4 }
 0x1c1   :  { %s8923_s26 = scalar_lea.hbm %s10906_s16, 512 }
 0x1c2   :  { %p8924_p6 = scmp.ne.s32.totalorder %s10906_s16, %s8923_s26  ;;  %p8927_p7 = scmp.lt.u32.totalorder %s8923_s26, %s10906_s16 }
 0x1c4   :  { %p8929_p8 = pnand %p8927_p7, %p8924_p6 }
 0x1c6   :  { %8932 = shalt.err (!%p8929_p8)
}
 0x1c7   :  { %s8933_s3 = scalar_lea.vmem %s594_s21, 512  ;;  %p8938_p10 = scmp.lt.s32.totalorder %s594_s21, %s594_s21 }
 0x1c8   :  { %p8934_p9 = scmp.ne.s32.totalorder %s594_s21, %s8933_s3  ;;  %p8939_p11 = scmp.lt.s32.totalorder %s8933_s3, %s8933_s3 }
 0x1ca   :  { %p8940_p12 = por %p8939_p11, %p8938_p10 }
 0x1cc   :  { %p8941_p13 = pnand %p8940_p12, %p8934_p9 }
 0x1ce   :  { %8944 = shalt.err (!%p8941_p13)
}
 0x1cf   :  { %599 = dma.hbm_to_vmem [thread:$0]  %s10906_s16, 512, %s594_s21, [#allocation66], %s9590_s18, %s9590_s18, %s9591_s22  }
 0x1d0   :  { %s8945_s9 = scalar_lea.hbm %s9862_s5, 512 }
 0x1d1   :  { %p8946_p0 = scmp.ne.s32.totalorder %s9862_s5, %s8945_s9  ;;  %p8949_p1 = scmp.lt.u32.totalorder %s8945_s9, %s9862_s5 }
 0x1d3   :  { %p8951_p2 = pnand %p8949_p1, %p8946_p0 }
 0x1d5   :  { %8954 = shalt.err (!%p8951_p2)
}
 0x1d6   :  { %s8955_s14 = scalar_lea.vmem %s10084_s4, 512  ;;  %p8960_p4 = scmp.lt.s32.totalorder %s10084_s4, %s10084_s4 }
 0x1d7   :  { %p8956_p3 = scmp.ne.s32.totalorder %s10084_s4, %s8955_s14  ;;  %p8961_p5 = scmp.lt.s32.totalorder %s8955_s14, %s8955_s14 }
 0x1d9   :  { %p8962_p6 = por %p8961_p5, %p8960_p4 }
 0x1db   :  { %p8963_p7 = pnand %p8962_p6, %p8956_p3 }
 0x1dd   :  { %8966 = shalt.err (!%p8963_p7)
}
 0x1de   :  { %s10907_s28 = sld [smem:[#allocation96_spill]]  ;;  %s9612_s30 = smov [#allocation2]  }
 0x1df   :  { %623 = dma.hbm_to_vmem [thread:$0]  %s9862_s5, 512, %s10084_s4, [#allocation69], %s9590_s18, %s9590_s18, %s9591_s22  }
 0x1e0   :  { %s125_s1 = sshll.u32 %s9612_s30, 4  ;;  %s9613_s19 = smov [#allocation7]   ;;  %s126_s1 = int_to_ptr.vmem [resolvable:$true] %s125_s1 }
 0x1e1   :  { %s149_s2 = sshll.u32 %s9613_s19, 4  ;;  %s10105_s2 = int_to_ptr.vmem [resolvable:$true] %s149_s2 }
 0x1e4   :  { %s8967_s0 = scalar_lea.hbm %s10907_s28, 256 }
 0x1e5   :  { %p8968_p8 = scmp.ne.s32.totalorder %s10907_s28, %s8967_s0  ;;  %p8971_p9 = scmp.lt.u32.totalorder %s8967_s0, %s10907_s28 }
 0x1e7   :  { %p8973_p10 = pnand %p8971_p9, %p8968_p8 }
 0x1e9   :  { %8976 = shalt.err (!%p8973_p10)
}
 0x1ea   :  { %s8977_s7 = scalar_lea.vmem %s126_s1, 256  ;;  %p8982_p12 = scmp.lt.s32.totalorder %s126_s1, %s126_s1 }
 0x1eb   :  { %p8978_p11 = scmp.ne.s32.totalorder %s126_s1, %s8977_s7  ;;  %p8983_p13 = scmp.lt.s32.totalorder %s8977_s7, %s8977_s7 }
 0x1ed   :  { %p8984_p0 = por %p8983_p13, %p8982_p12 }
 0x1ef   :  { %p8985_p1 = pnand %p8984_p0, %p8978_p11 }
 0x1f1   :  { %8988 = shalt.err (!%p8985_p1)
}
 0x1f2   :  { %s10908_s5 = sld [smem:[#allocation97_spill]] }
 0x1f3   :  { %131 = dma.hbm_to_vmem [thread:$0]  %s10907_s28, 256, %s126_s1, [#allocation3], %s9590_s18, %s9590_s18, %s9591_s22  }
 0x1f8   :  { %s8989_s24 = scalar_lea.hbm %s10908_s5, 512 }
 0x1f9   :  { %p8990_p2 = scmp.ne.s32.totalorder %s10908_s5, %s8989_s24  ;;  %p8993_p3 = scmp.lt.u32.totalorder %s8989_s24, %s10908_s5 }
 0x1fb   :  { %p8995_p4 = pnand %p8993_p3, %p8990_p2 }
 0x1fd   :  { %8998 = shalt.err (!%p8995_p4)
}
 0x1fe   :  { %s8999_s17 = scalar_lea.vmem %s10105_s2, 512  ;;  %p9004_p6 = scmp.lt.s32.totalorder %s10105_s2, %s10105_s2 }
 0x1ff   :  { %p9000_p5 = scmp.ne.s32.totalorder %s10105_s2, %s8999_s17  ;;  %p9005_p7 = scmp.lt.s32.totalorder %s8999_s17, %s8999_s17 }
 0x201   :  { %p9006_p8 = por %p9005_p7, %p9004_p6 }
 0x203   :  { %p9007_p9 = pnand %p9006_p8, %p9000_p5 }
 0x205   :  { %9010 = shalt.err (!%p9007_p9)
}
 0x206   :  { %s10909_s8 = sld [smem:[#allocation98_spill]]  ;;  %s9614_s6 = smov [#allocation10]  }
 0x207   :  { %155 = dma.hbm_to_vmem [thread:$0]  %s10908_s5, 512, %s10105_s2, [#allocation6], %s9590_s18, %s9590_s18, %s9591_s22  }
 0x208   :  { %s174_s29 = sshll.u32 %s9614_s6, 4  ;;  %s9615_s10 = smov [#allocation13]   ;;  %s175_s29 = int_to_ptr.vmem [resolvable:$true] %s174_s29 }
 0x209   :  { %s195_s25 = sshll.u32 %s9615_s10, 4  ;;  %s10126_s25 = int_to_ptr.vmem [resolvable:$true] %s195_s25 }
 0x20c   :  { %s9011_s11 = scalar_lea.hbm %s10909_s8, 16 }
 0x20d   :  { %p9012_p10 = scmp.ne.s32.totalorder %s10909_s8, %s9011_s11  ;;  %p9015_p11 = scmp.lt.u32.totalorder %s9011_s11, %s10909_s8 }
 0x20f   :  { %p9017_p12 = pnand %p9015_p11, %p9012_p10 }
 0x211   :  { %9020 = shalt.err (!%p9017_p12)
}
 0x212   :  { %s9021_s15 = scalar_lea.vmem %s175_s29, 16  ;;  %s9025_s16 = scalar_lea.vmem %s175_s29, 32 }
 0x213   :  { %p9022_p13 = scmp.ne.s32.totalorder %s175_s29, %s9021_s15  ;;  %p9026_p0 = scmp.lt.s32.totalorder %s175_s29, %s175_s29 }
 0x214   :  { %p9027_p1 = scmp.lt.s32.totalorder %s9025_s16, %s9021_s15 }
 0x216   :  { %p9028_p2 = por %p9027_p1, %p9026_p0 }
 0x218   :  { %p9029_p3 = pnand %p9028_p2, %p9022_p13 }
 0x21a   :  { %9032 = shalt.err (!%p9029_p3)
}
 0x21b   :  { %s10910_s20 = sld [smem:[#allocation99_spill]] }
 0x21c   :  { %177 = dma.hbm_to_vmem [thread:$0]  %s10909_s8, 16, %s175_s29, [#allocation9]  }
 0x221   :  { %s9033_s21 = scalar_lea.hbm %s10910_s20, 512 }
 0x222   :  { %p9034_p4 = scmp.ne.s32.totalorder %s10910_s20, %s9033_s21  ;;  %p9037_p5 = scmp.lt.u32.totalorder %s9033_s21, %s10910_s20 }
 0x224   :  { %p9039_p6 = pnand %p9037_p5, %p9034_p4 }
 0x226   :  { %9042 = shalt.err (!%p9039_p6)
}
 0x227   :  { %s9043_s23 = scalar_lea.vmem %s10126_s25, 512  ;;  %p9048_p8 = scmp.lt.s32.totalorder %s10126_s25, %s10126_s25 }
 0x228   :  { %p9044_p7 = scmp.ne.s32.totalorder %s10126_s25, %s9043_s23  ;;  %p9049_p9 = scmp.lt.s32.totalorder %s9043_s23, %s9043_s23 }
 0x22a   :  { %p9050_p10 = por %p9049_p9, %p9048_p8 }
 0x22c   :  { %p9051_p11 = pnand %p9050_p10, %p9044_p7 }
 0x22e   :  { %9054 = shalt.err (!%p9051_p11)
}
 0x22f   :  { %s10911_s4 = sld [smem:[#allocation100_spill]]  ;;  %s9616_s26 = smov [#allocation16]  }
 0x230   :  { %201 = dma.hbm_to_vmem [thread:$0]  %s10910_s20, 512, %s10126_s25, [#allocation12], %s9590_s18, %s9590_s18, %s9591_s22  }
 0x231   :  { %s220_s3 = sshll.u32 %s9616_s26, 4  ;;  %s9617_s9 = smov [#allocation19]   ;;  %s221_s3 = int_to_ptr.vmem [resolvable:$true] %s220_s3 }
 0x232   :  { %s242_s14 = sshll.u32 %s9617_s9, 4  ;;  %s243_s14 = int_to_ptr.vmem [resolvable:$true] %s242_s14 }
 0x235   :  { %s9055_s28 = scalar_lea.hbm %s10911_s4, 16 }
 0x236   :  { %p9056_p12 = scmp.ne.s32.totalorder %s10911_s4, %s9055_s28  ;;  %p9059_p13 = scmp.lt.u32.totalorder %s9055_s28, %s10911_s4 }
 0x238   :  { %p9061_p0 = pnand %p9059_p13, %p9056_p12 }
 0x23a   :  { %9064 = shalt.err (!%p9061_p0)
}
 0x23b   :  { %s9065_s30 = scalar_lea.vmem %s221_s3, 16  ;;  %s9069_s1 = scalar_lea.vmem %s221_s3, 32 }
 0x23c   :  { %p9066_p1 = scmp.ne.s32.totalorder %s221_s3, %s9065_s30  ;;  %p9070_p2 = scmp.lt.s32.totalorder %s221_s3, %s221_s3 }
 0x23d   :  { %p9071_p3 = scmp.lt.s32.totalorder %s9069_s1, %s9065_s30 }
 0x23f   :  { %p9072_p4 = por %p9071_p3, %p9070_p2 }
 0x241   :  { %p9073_p5 = pnand %p9072_p4, %p9066_p1 }
 0x243   :  { %9076 = shalt.err (!%p9073_p5)
}
 0x244   :  { %s10912_s19 = sld [smem:[#allocation101_spill]] }
 0x245   :  { %223 = dma.hbm_to_vmem [thread:$0]  %s10911_s4, 16, %s221_s3, [#allocation15]  }
 0x24a   :  { %s9077_s2 = scalar_lea.hbm %s10912_s19, 16 }
 0x24b   :  { %p9078_p6 = scmp.ne.s32.totalorder %s10912_s19, %s9077_s2  ;;  %p9081_p7 = scmp.lt.u32.totalorder %s9077_s2, %s10912_s19 }
 0x24d   :  { %p9083_p8 = pnand %p9081_p7, %p9078_p6 }
 0x24f   :  { %9086 = shalt.err (!%p9083_p8)
}
 0x250   :  { %s9087_s0 = scalar_lea.vmem %s243_s14, 16  ;;  %s9091_s7 = scalar_lea.vmem %s243_s14, 32 }
 0x251   :  { %p9088_p9 = scmp.ne.s32.totalorder %s243_s14, %s9087_s0  ;;  %p9092_p10 = scmp.lt.s32.totalorder %s243_s14, %s243_s14 }
 0x252   :  { %p9093_p11 = scmp.lt.s32.totalorder %s9091_s7, %s9087_s0 }
 0x254   :  { %p9094_p12 = por %p9093_p11, %p9092_p10 }
 0x256   :  { %p9095_p13 = pnand %p9094_p12, %p9088_p9 }
 0x258   :  { %9098 = shalt.err (!%p9095_p13)
}
 0x259   :  { %s10913_s5 = sld [smem:[#allocation102_spill]]  ;;  %s9618_s24 = smov [#allocation22]  }
 0x25a   :  { %245 = dma.hbm_to_vmem [thread:$0]  %s10912_s19, 16, %s243_s14, [#allocation18]  }
 0x25b   :  { %s263_s17 = sshll.u32 %s9618_s24, 4  ;;  %s9619_s8 = smov [#allocation25]   ;;  %s264_s17 = int_to_ptr.vmem [resolvable:$true] %s263_s17 }
 0x25c   :  { %s288_s6 = sshll.u32 %s9619_s8, 4  ;;  %s289_s6 = int_to_ptr.vmem [resolvable:$true] %s288_s6 }
 0x25f   :  { %s9099_s29 = scalar_lea.hbm %s10913_s5, 512 }
 0x260   :  { %p9100_p0 = scmp.ne.s32.totalorder %s10913_s5, %s9099_s29  ;;  %p9103_p1 = scmp.lt.u32.totalorder %s9099_s29, %s10913_s5 }
 0x262   :  { %p9105_p2 = pnand %p9103_p1, %p9100_p0 }
 0x264   :  { %9108 = shalt.err (!%p9105_p2)
}
 0x265   :  { %s9109_s10 = scalar_lea.vmem %s264_s17, 512  ;;  %p9114_p4 = scmp.lt.s32.totalorder %s264_s17, %s264_s17 }
 0x266   :  { %p9110_p3 = scmp.ne.s32.totalorder %s264_s17, %s9109_s10  ;;  %p9115_p5 = scmp.lt.s32.totalorder %s9109_s10, %s9109_s10 }
 0x268   :  { %p9116_p6 = por %p9115_p5, %p9114_p4 }
 0x26a   :  { %p9117_p7 = pnand %p9116_p6, %p9110_p3 }
 0x26c   :  { %9120 = shalt.err (!%p9117_p7)
}
 0x26d   :  { %s10914_s25 = sld [smem:[#allocation103_spill]] }
 0x26e   :  { %269 = dma.hbm_to_vmem [thread:$0]  %s10913_s5, 512, %s264_s17, [#allocation21], %s9590_s18, %s9590_s18, %s9591_s22  }
 0x273   :  { %s9121_s11 = scalar_lea.hbm %s10914_s25, 16 }
 0x274   :  { %p9122_p8 = scmp.ne.s32.totalorder %s10914_s25, %s9121_s11  ;;  %p9125_p9 = scmp.lt.u32.totalorder %s9121_s11, %s10914_s25 }
 0x276   :  { %p9127_p10 = pnand %p9125_p9, %p9122_p8 }
 0x278   :  { %9130 = shalt.err (!%p9127_p10)
}
 0x279   :  { %s9131_s15 = scalar_lea.vmem %s289_s6, 16  ;;  %s9135_s16 = scalar_lea.vmem %s289_s6, 32 }
 0x27a   :  { %p9132_p11 = scmp.ne.s32.totalorder %s289_s6, %s9131_s15  ;;  %p9136_p12 = scmp.lt.s32.totalorder %s289_s6, %s289_s6 }
 0x27b   :  { %p9137_p13 = scmp.lt.s32.totalorder %s9135_s16, %s9131_s15 }
 0x27d   :  { %p9138_p0 = por %p9137_p13, %p9136_p12 }
 0x27f   :  { %p9139_p1 = pnand %p9138_p0, %p9132_p11 }
 0x281   :  { %9142 = shalt.err (!%p9139_p1)
}
 0x282   :  { %s10915_s20 = sld [smem:[#allocation104_spill]]  ;;  %s9620_s21 = smov [#allocation28]  }
 0x283   :  { %291 = dma.hbm_to_vmem [thread:$0]  %s10914_s25, 16, %s289_s6, [#allocation24]  }
 0x284   :  { %s310_s23 = sshll.u32 %s9620_s21, 4  ;;  %s9621_s4 = smov [#allocation31]   ;;  %s311_s23 = int_to_ptr.vmem [resolvable:$true] %s310_s23 }
 0x285   :  { %s331_s26 = sshll.u32 %s9621_s4, 4  ;;  %s10163_s26 = int_to_ptr.vmem [resolvable:$true] %s331_s26 }
 0x288   :  { %s9143_s3 = scalar_lea.hbm %s10915_s20, 16 }
 0x289   :  { %p9144_p2 = scmp.ne.s32.totalorder %s10915_s20, %s9143_s3  ;;  %p9147_p3 = scmp.lt.u32.totalorder %s9143_s3, %s10915_s20 }
 0x28b   :  { %p9149_p4 = pnand %p9147_p3, %p9144_p2 }
 0x28d   :  { %9152 = shalt.err (!%p9149_p4)
}
 0x28e   :  { %s9153_s9 = scalar_lea.vmem %s311_s23, 16  ;;  %s9157_s14 = scalar_lea.vmem %s311_s23, 32 }
 0x28f   :  { %p9154_p5 = scmp.ne.s32.totalorder %s311_s23, %s9153_s9  ;;  %p9158_p6 = scmp.lt.s32.totalorder %s311_s23, %s311_s23 }
 0x290   :  { %p9159_p7 = scmp.lt.s32.totalorder %s9157_s14, %s9153_s9 }
 0x292   :  { %p9160_p8 = por %p9159_p7, %p9158_p6 }
 0x294   :  { %p9161_p9 = pnand %p9160_p8, %p9154_p5 }
 0x296   :  { %9164 = shalt.err (!%p9161_p9)
}
 0x297   :  { %s10916_s28 = sld [smem:[#allocation105_spill]] }
 0x298   :  { %313 = dma.hbm_to_vmem [thread:$0]  %s10915_s20, 16, %s311_s23, [#allocation27]  }
 0x29d   :  { %s9165_s30 = scalar_lea.hbm %s10916_s28, 512 }
 0x29e   :  { %p9166_p10 = scmp.ne.s32.totalorder %s10916_s28, %s9165_s30  ;;  %p9169_p11 = scmp.lt.u32.totalorder %s9165_s30, %s10916_s28 }
 0x2a0   :  { %p9171_p12 = pnand %p9169_p11, %p9166_p10 }
 0x2a2   :  { %9174 = shalt.err (!%p9171_p12)
}
 0x2a3   :  { %s9175_s1 = scalar_lea.vmem %s10163_s26, 512  ;;  %p9180_p0 = scmp.lt.s32.totalorder %s10163_s26, %s10163_s26 }
 0x2a4   :  { %p9176_p13 = scmp.ne.s32.totalorder %s10163_s26, %s9175_s1  ;;  %p9181_p1 = scmp.lt.s32.totalorder %s9175_s1, %s9175_s1 }
 0x2a6   :  { %p9182_p2 = por %p9181_p1, %p9180_p0 }
 0x2a8   :  { %p9183_p3 = pnand %p9182_p2, %p9176_p13 }
 0x2aa   :  { %9186 = shalt.err (!%p9183_p3)
}
 0x2ab   :  { %s10917_s19 = sld [smem:[#allocation106_spill]]  ;;  %s9622_s2 = smov [#allocation34]  }
 0x2ac   :  { %337 = dma.hbm_to_vmem [thread:$0]  %s10916_s28, 512, %s10163_s26, [#allocation30], %s9590_s18, %s9590_s18, %s9591_s22  }
 0x2ad   :  { %s356_s0 = sshll.u32 %s9622_s2, 4  ;;  %s9623_s7 = smov [#allocation37]   ;;  %s357_s0 = int_to_ptr.vmem [resolvable:$true] %s356_s0 }
 0x2ae   :  { %s377_s5 = sshll.u32 %s9623_s7, 4  ;;  %s10181_s5 = int_to_ptr.vmem [resolvable:$true] %s377_s5 }
 0x2b1   :  { %s9187_s24 = scalar_lea.hbm %s10917_s19, 16 }
 0x2b2   :  { %p9188_p4 = scmp.ne.s32.totalorder %s10917_s19, %s9187_s24  ;;  %p9191_p5 = scmp.lt.u32.totalorder %s9187_s24, %s10917_s19 }
 0x2b4   :  { %p9193_p6 = pnand %p9191_p5, %p9188_p4 }
 0x2b6   :  { %9196 = shalt.err (!%p9193_p6)
}
 0x2b7   :  { %s9197_s17 = scalar_lea.vmem %s357_s0, 16  ;;  %s9201_s8 = scalar_lea.vmem %s357_s0, 32 }
 0x2b8   :  { %p9198_p7 = scmp.ne.s32.totalorder %s357_s0, %s9197_s17  ;;  %p9202_p8 = scmp.lt.s32.totalorder %s357_s0, %s357_s0 }
 0x2b9   :  { %p9203_p9 = scmp.lt.s32.totalorder %s9201_s8, %s9197_s17 }
 0x2bb   :  { %p9204_p10 = por %p9203_p9, %p9202_p8 }
 0x2bd   :  { %p9205_p11 = pnand %p9204_p10, %p9198_p7 }
 0x2bf   :  { %9208 = shalt.err (!%p9205_p11)
}
 0x2c0   :  { %s10918_s6 = sld [smem:[#allocation107_spill]] }
 0x2c1   :  { %359 = dma.hbm_to_vmem [thread:$0]  %s10917_s19, 16, %s357_s0, [#allocation33]  }
 0x2c6   :  { %s9209_s29 = scalar_lea.hbm %s10918_s6, 512 }
 0x2c7   :  { %p9210_p12 = scmp.ne.s32.totalorder %s10918_s6, %s9209_s29  ;;  %p9213_p13 = scmp.lt.u32.totalorder %s9209_s29, %s10918_s6 }
 0x2c9   :  { %p9215_p0 = pnand %p9213_p13, %p9210_p12 }
 0x2cb   :  { %9218 = shalt.err (!%p9215_p0)
}
 0x2cc   :  { %s9219_s10 = scalar_lea.vmem %s10181_s5, 512  ;;  %p9224_p2 = scmp.lt.s32.totalorder %s10181_s5, %s10181_s5 }
 0x2cd   :  { %p9220_p1 = scmp.ne.s32.totalorder %s10181_s5, %s9219_s10  ;;  %p9225_p3 = scmp.lt.s32.totalorder %s9219_s10, %s9219_s10 }
 0x2cf   :  { %p9226_p4 = por %p9225_p3, %p9224_p2 }
 0x2d1   :  { %p9227_p5 = pnand %p9226_p4, %p9220_p1 }
 0x2d3   :  { %9230 = shalt.err (!%p9227_p5)
}
 0x2d4   :  { %s10919_s25 = sld [smem:[#allocation108_spill]]  ;;  %s9624_s11 = smov [#allocation40]  }
 0x2d5   :  { %383 = dma.hbm_to_vmem [thread:$0]  %s10918_s6, 512, %s10181_s5, [#allocation36], %s9590_s18, %s9590_s18, %s9591_s22  }
 0x2d6   :  { %s402_s15 = sshll.u32 %s9624_s11, 4  ;;  %s9625_s16 = smov [#allocation43]   ;;  %s403_s15 = int_to_ptr.vmem [resolvable:$true] %s402_s15 }
 0x2d7   :  { %s424_s20 = sshll.u32 %s9625_s16, 4  ;;  %s425_s20 = int_to_ptr.vmem [resolvable:$true] %s424_s20 }
 0x2da   :  { %s9231_s21 = scalar_lea.hbm %s10919_s25, 16 }
 0x2db   :  { %p9232_p6 = scmp.ne.s32.totalorder %s10919_s25, %s9231_s21  ;;  %p9235_p7 = scmp.lt.u32.totalorder %s9231_s21, %s10919_s25 }
 0x2dd   :  { %p9237_p8 = pnand %p9235_p7, %p9232_p6 }
 0x2df   :  { %9240 = shalt.err (!%p9237_p8)
}
 0x2e0   :  { %s9241_s23 = scalar_lea.vmem %s403_s15, 16  ;;  %s9245_s4 = scalar_lea.vmem %s403_s15, 32 }
 0x2e1   :  { %p9242_p9 = scmp.ne.s32.totalorder %s403_s15, %s9241_s23  ;;  %p9246_p10 = scmp.lt.s32.totalorder %s403_s15, %s403_s15 }
 0x2e2   :  { %p9247_p11 = scmp.lt.s32.totalorder %s9245_s4, %s9241_s23 }
 0x2e4   :  { %p9248_p12 = por %p9247_p11, %p9246_p10 }
 0x2e6   :  { %p9249_p13 = pnand %p9248_p12, %p9242_p9 }
 0x2e8   :  { %9252 = shalt.err (!%p9249_p13)
}
 0x2e9   :  { %s10920_s26 = sld [smem:[#allocation109_spill]] }
 0x2ea   :  { %405 = dma.hbm_to_vmem [thread:$0]  %s10919_s25, 16, %s403_s15, [#allocation39]  }
 0x2ef   :  { %s9253_s3 = scalar_lea.hbm %s10920_s26, 16 }
 0x2f0   :  { %p9254_p0 = scmp.ne.s32.totalorder %s10920_s26, %s9253_s3  ;;  %p9257_p1 = scmp.lt.u32.totalorder %s9253_s3, %s10920_s26 }
 0x2f2   :  { %p9259_p2 = pnand %p9257_p1, %p9254_p0 }
 0x2f4   :  { %9262 = shalt.err (!%p9259_p2)
}
 0x2f5   :  { %s9263_s9 = scalar_lea.vmem %s425_s20, 16  ;;  %s9267_s14 = scalar_lea.vmem %s425_s20, 32 }
 0x2f6   :  { %p9264_p3 = scmp.ne.s32.totalorder %s425_s20, %s9263_s9  ;;  %p9268_p4 = scmp.lt.s32.totalorder %s425_s20, %s425_s20 }
 0x2f7   :  { %p9269_p5 = scmp.lt.s32.totalorder %s9267_s14, %s9263_s9 }
 0x2f9   :  { %p9270_p6 = por %p9269_p5, %p9268_p4 }
 0x2fb   :  { %p9271_p7 = pnand %p9270_p6, %p9264_p3 }
 0x2fd   :  { %9274 = shalt.err (!%p9271_p7)
}
 0x2fe   :  { %s10921_s28 = sld [smem:[#allocation110_spill]]  ;;  %s9626_s30 = smov [#allocation46]  }
 0x2ff   :  { %427 = dma.hbm_to_vmem [thread:$0]  %s10920_s26, 16, %s425_s20, [#allocation42]  }
 0x300   :  { %s445_s1 = sshll.u32 %s9626_s30, 4  ;;  %s9627_s19 = smov [#allocation49]   ;;  %s446_s1 = int_to_ptr.vmem [resolvable:$true] %s445_s1 }
 0x301   :  { %s470_s2 = sshll.u32 %s9627_s19, 4  ;;  %s471_s2 = int_to_ptr.vmem [resolvable:$true] %s470_s2 }
 0x304   :  { %s9275_s0 = scalar_lea.hbm %s10921_s28, 512 }
 0x305   :  { %p9276_p8 = scmp.ne.s32.totalorder %s10921_s28, %s9275_s0  ;;  %p9279_p9 = scmp.lt.u32.totalorder %s9275_s0, %s10921_s28 }
 0x307   :  { %p9281_p10 = pnand %p9279_p9, %p9276_p8 }
 0x309   :  { %9284 = shalt.err (!%p9281_p10)
}
 0x30a   :  { %s9285_s7 = scalar_lea.vmem %s446_s1, 512  ;;  %p9290_p12 = scmp.lt.s32.totalorder %s446_s1, %s446_s1 }
 0x30b   :  { %p9286_p11 = scmp.ne.s32.totalorder %s446_s1, %s9285_s7  ;;  %p9291_p13 = scmp.lt.s32.totalorder %s9285_s7, %s9285_s7 }
 0x30d   :  { %p9292_p0 = por %p9291_p13, %p9290_p12 }
 0x30f   :  { %p9293_p1 = pnand %p9292_p0, %p9286_p11 }
 0x311   :  { %9296 = shalt.err (!%p9293_p1)
}
 0x312   :  { %s10922_s5 = sld [smem:[#allocation112_spill]] }
 0x313   :  { %451 = dma.hbm_to_vmem [thread:$0]  %s10921_s28, 512, %s446_s1, [#allocation45], %s9590_s18, %s9590_s18, %s9591_s22  }
 0x318   :  { %s9297_s24 = scalar_lea.hbm %s10922_s5, 16 }
 0x319   :  { %p9298_p2 = scmp.ne.s32.totalorder %s10922_s5, %s9297_s24  ;;  %p9301_p3 = scmp.lt.u32.totalorder %s9297_s24, %s10922_s5 }
 0x31b   :  { %p9303_p4 = pnand %p9301_p3, %p9298_p2 }
 0x31d   :  { %9306 = shalt.err (!%p9303_p4)
}
 0x31e   :  { %s9307_s17 = scalar_lea.vmem %s471_s2, 16  ;;  %s9311_s8 = scalar_lea.vmem %s471_s2, 32 }
 0x31f   :  { %p9308_p5 = scmp.ne.s32.totalorder %s471_s2, %s9307_s17  ;;  %p9312_p6 = scmp.lt.s32.totalorder %s471_s2, %s471_s2 }
 0x320   :  { %p9313_p7 = scmp.lt.s32.totalorder %s9311_s8, %s9307_s17 }
 0x322   :  { %p9314_p8 = por %p9313_p7, %p9312_p6 }
 0x324   :  { %p9315_p9 = pnand %p9314_p8, %p9308_p5 }
 0x326   :  { %9318 = shalt.err (!%p9315_p9)
}
 0x327   :  { %s10923_s6 = sld [smem:[#allocation114_spill]]  ;;  %s9628_s29 = smov [#allocation52]  }
 0x328   :  { %473 = dma.hbm_to_vmem [thread:$0]  %s10922_s5, 16, %s471_s2, [#allocation48]  }
 0x329   :  { %s492_s10 = sshll.u32 %s9628_s29, 4  ;;  %s9629_s25 = smov [#allocation55]   ;;  %s493_s10 = int_to_ptr.vmem [resolvable:$true] %s492_s10 }
 0x32a   :  { %s513_s11 = sshll.u32 %s9629_s25, 4  ;;  %s10218_s11 = int_to_ptr.vmem [resolvable:$true] %s513_s11 }
 0x32d   :  { %s9319_s15 = scalar_lea.hbm %s10923_s6, 16 }
 0x32e   :  { %p9320_p10 = scmp.ne.s32.totalorder %s10923_s6, %s9319_s15  ;;  %p9323_p11 = scmp.lt.u32.totalorder %s9319_s15, %s10923_s6 }
 0x330   :  { %p9325_p12 = pnand %p9323_p11, %p9320_p10 }
 0x332   :  { %9328 = shalt.err (!%p9325_p12)
}
 0x333   :  { %s9329_s16 = scalar_lea.vmem %s493_s10, 16  ;;  %s9333_s20 = scalar_lea.vmem %s493_s10, 32 }
 0x334   :  { %p9330_p13 = scmp.ne.s32.totalorder %s493_s10, %s9329_s16  ;;  %p9334_p0 = scmp.lt.s32.totalorder %s493_s10, %s493_s10 }
 0x335   :  { %p9335_p1 = scmp.lt.s32.totalorder %s9333_s20, %s9329_s16 }
 0x337   :  { %p9336_p2 = por %p9335_p1, %p9334_p0 }
 0x339   :  { %p9337_p3 = pnand %p9336_p2, %p9330_p13 }
 0x33b   :  { %9340 = shalt.err (!%p9337_p3)
}
 0x33c   :  { %s10924_s21 = sld [smem:[#allocation116_spill]] }
 0x33d   :  { %495 = dma.hbm_to_vmem [thread:$0]  %s10923_s6, 16, %s493_s10, [#allocation51]  }
 0x342   :  { %s9341_s23 = scalar_lea.hbm %s10924_s21, 512 }
 0x343   :  { %p9342_p4 = scmp.ne.s32.totalorder %s10924_s21, %s9341_s23  ;;  %p9345_p5 = scmp.lt.u32.totalorder %s9341_s23, %s10924_s21 }
 0x345   :  { %p9347_p6 = pnand %p9345_p5, %p9342_p4 }
 0x347   :  { %9350 = shalt.err (!%p9347_p6)
}
 0x348   :  { %s9351_s4 = scalar_lea.vmem %s10218_s11, 512  ;;  %p9356_p8 = scmp.lt.s32.totalorder %s10218_s11, %s10218_s11 }
 0x349   :  { %p9352_p7 = scmp.ne.s32.totalorder %s10218_s11, %s9351_s4  ;;  %p9357_p9 = scmp.lt.s32.totalorder %s9351_s4, %s9351_s4 }
 0x34b   :  { %p9358_p10 = por %p9357_p9, %p9356_p8 }
 0x34d   :  { %p9359_p11 = pnand %p9358_p10, %p9352_p7 }
 0x34f   :  { %9362 = shalt.err (!%p9359_p11)
}
 0x350   :  { %s10925_s26 = sld [smem:[#allocation118_spill]]  ;;  %s9630_s3 = smov [#allocation58]  }
 0x351   :  { %519 = dma.hbm_to_vmem [thread:$0]  %s10924_s21, 512, %s10218_s11, [#allocation54], %s9590_s18, %s9590_s18, %s9591_s22  }
 0x352   :  { %s538_s9 = sshll.u32 %s9630_s3, 4  ;;  %s9631_s14 = smov [#allocation61]   ;;  %s539_s9 = int_to_ptr.vmem [resolvable:$true] %s538_s9 }
 0x353   :  { %s559_s28 = sshll.u32 %s9631_s14, 4  ;;  %s10236_s28 = int_to_ptr.vmem [resolvable:$true] %s559_s28 }
 0x356   :  { %s9363_s30 = scalar_lea.hbm %s10925_s26, 16 }
 0x357   :  { %p9364_p12 = scmp.ne.s32.totalorder %s10925_s26, %s9363_s30  ;;  %p9367_p13 = scmp.lt.u32.totalorder %s9363_s30, %s10925_s26 }
 0x359   :  { %p9369_p0 = pnand %p9367_p13, %p9364_p12 }
 0x35b   :  { %9372 = shalt.err (!%p9369_p0)
}
 0x35c   :  { %s9373_s1 = scalar_lea.vmem %s539_s9, 16  ;;  %s9377_s19 = scalar_lea.vmem %s539_s9, 32 }
 0x35d   :  { %p9374_p1 = scmp.ne.s32.totalorder %s539_s9, %s9373_s1  ;;  %p9378_p2 = scmp.lt.s32.totalorder %s539_s9, %s539_s9 }
 0x35e   :  { %p9379_p3 = scmp.lt.s32.totalorder %s9377_s19, %s9373_s1 }
 0x360   :  { %p9380_p4 = por %p9379_p3, %p9378_p2 }
 0x362   :  { %p9381_p5 = pnand %p9380_p4, %p9374_p1 }
 0x364   :  { %9384 = shalt.err (!%p9381_p5)
}
 0x365   :  { %s10926_s2 = sld [smem:[#allocation120_spill]] }
 0x366   :  { %541 = dma.hbm_to_vmem [thread:$0]  %s10925_s26, 16, %s539_s9, [#allocation57]  }
 0x36b   :  { %s9385_s0 = scalar_lea.hbm %s10926_s2, 512 }
 0x36c   :  { %p9386_p6 = scmp.ne.s32.totalorder %s10926_s2, %s9385_s0  ;;  %p9389_p7 = scmp.lt.u32.totalorder %s9385_s0, %s10926_s2 }
 0x36e   :  { %p9391_p8 = pnand %p9389_p7, %p9386_p6 }
 0x370   :  { %9394 = shalt.err (!%p9391_p8)
}
 0x371   :  { %s9395_s7 = scalar_lea.vmem %s10236_s28, 512  ;;  %p9400_p10 = scmp.lt.s32.totalorder %s10236_s28, %s10236_s28 }
 0x372   :  { %p9396_p9 = scmp.ne.s32.totalorder %s10236_s28, %s9395_s7  ;;  %p9401_p11 = scmp.lt.s32.totalorder %s9395_s7, %s9395_s7 }
 0x374   :  { %p9402_p12 = por %p9401_p11, %p9400_p10 }
 0x376   :  { %p9403_p13 = pnand %p9402_p12, %p9396_p9 }
 0x378   :  { %9406 = shalt.err (!%p9403_p13)
}
 0x379   :  { %s10927_s5 = sld [smem:[#allocation122_spill]]  ;;  %s9632_s24 = smov [#allocation64]  }
 0x37a   :  { %565 = dma.hbm_to_vmem [thread:$0]  %s10926_s2, 512, %s10236_s28, [#allocation60], %s9590_s18, %s9590_s18, %s9591_s22  }
 0x37b   :  { %s584_s17 = sshll.u32 %s9632_s24, 4  ;;  %s9633_s8 = smov [#allocation67]   ;;  %s585_s17 = int_to_ptr.vmem [resolvable:$true] %s584_s17 }
 0x37c   :  { %s605_s6 = sshll.u32 %s9633_s8, 4  ;;  %s10254_s6 = int_to_ptr.vmem [resolvable:$true] %s605_s6 }
 0x37f   :  { %s9407_s29 = scalar_lea.hbm %s10927_s5, 16 }
 0x380   :  { %p9408_p0 = scmp.ne.s32.totalorder %s10927_s5, %s9407_s29  ;;  %p9411_p1 = scmp.lt.u32.totalorder %s9407_s29, %s10927_s5 }
 0x382   :  { %p9413_p2 = pnand %p9411_p1, %p9408_p0 }
 0x384   :  { %9416 = shalt.err (!%p9413_p2)
}
 0x385   :  { %s9417_s10 = scalar_lea.vmem %s585_s17, 16  ;;  %s9421_s25 = scalar_lea.vmem %s585_s17, 32 }
 0x386   :  { %p9418_p3 = scmp.ne.s32.totalorder %s585_s17, %s9417_s10  ;;  %p9422_p4 = scmp.lt.s32.totalorder %s585_s17, %s585_s17 }
 0x387   :  { %p9423_p5 = scmp.lt.s32.totalorder %s9421_s25, %s9417_s10 }
 0x389   :  { %p9424_p6 = por %p9423_p5, %p9422_p4 }
 0x38b   :  { %p9425_p7 = pnand %p9424_p6, %p9418_p3 }
 0x38d   :  { %9428 = shalt.err (!%p9425_p7)
}
 0x38e   :  { %587 = dma.hbm_to_vmem [thread:$0]  %s10927_s5, 16, %s585_s17, [#allocation63]  }
 0x38f   :  { %s9429_s11 = scalar_lea.hbm %s9857_s12, 512 }
 0x390   :  { %p9430_p8 = scmp.ne.s32.totalorder %s9857_s12, %s9429_s11  ;;  %p9433_p9 = scmp.lt.u32.totalorder %s9429_s11, %s9857_s12 }
 0x392   :  { %p9435_p10 = pnand %p9433_p9, %p9430_p8 }
 0x394   :  { %9438 = shalt.err (!%p9435_p10)
}
 0x395   :  { %s9439_s15 = scalar_lea.vmem %s10254_s6, 512  ;;  %p9444_p12 = scmp.lt.s32.totalorder %s10254_s6, %s10254_s6 }
 0x396   :  { %p9440_p11 = scmp.ne.s32.totalorder %s10254_s6, %s9439_s15  ;;  %p9445_p13 = scmp.lt.s32.totalorder %s9439_s15, %s9439_s15 }
 0x398   :  { %p9446_p0 = por %p9445_p13, %p9444_p12 }
 0x39a   :  { %p9447_p1 = pnand %p9446_p0, %p9440_p11 }
 0x39c   :  { %9450 = shalt.err (!%p9447_p1)
}
 0x39d   :  { %611 = dma.hbm_to_vmem [thread:$0]  %s9857_s12, 512, %s10254_s6, [#allocation66], %s9590_s18, %s9590_s18, %s9591_s22  }
 0x39e   :  { %s9634_s16 = smov [#allocation70]   ;;  %s9451_s21 = scalar_lea.hbm %s9867_s27, 16 }
 0x39f   :  { %s630_s20 = sshll.u32 %s9634_s16, 4  ;;  %p9452_p2 = scmp.ne.s32.totalorder %s9867_s27, %s9451_s21  ;;  %s631_s20 = int_to_ptr.vmem [resolvable:$true] %s630_s20 }
 0x3a0   :  { %p9455_p3 = scmp.lt.u32.totalorder %s9451_s21, %s9867_s27 }
 0x3a2   :  { %p9457_p4 = pnand %p9455_p3, %p9452_p2 }
 0x3a4   :  { %9460 = shalt.err (!%p9457_p4)
}
 0x3a5   :  { %s9461_s23 = scalar_lea.vmem %s631_s20, 16  ;;  %s9465_s4 = scalar_lea.vmem %s631_s20, 32 }
 0x3a6   :  { %p9462_p5 = scmp.ne.s32.totalorder %s631_s20, %s9461_s23  ;;  %p9466_p6 = scmp.lt.s32.totalorder %s631_s20, %s631_s20 }
 0x3a7   :  { %p9467_p7 = scmp.lt.s32.totalorder %s9465_s4, %s9461_s23 }
 0x3a9   :  { %p9468_p8 = por %p9467_p7, %p9466_p6 }
 0x3ab   :  { %p9469_p9 = pnand %p9468_p8, %p9462_p5 }
 0x3ad   :  { %9472 = shalt.err (!%p9469_p9)
}
 0x3ae   :  { %633 = dma.hbm_to_vmem [thread:$0]  %s9867_s27, 16, %s631_s20, [#allocation69]  }
 0x3af   :  { %9495 = dma.done.wait [#allocation3], 256  }
 0x3b0   :  { %9496 = vsyncadd [#allocation3], 4294967040 }
 0x3b1   :  { %9497 = dma.done.wait [#allocation6], 1024  }
 0x3b2   :  { %9498 = vsyncadd [#allocation6], 4294966272 }
 0x3b3   :  { %9499 = dma.done.wait [#allocation9], 528  }
 0x3b4   :  { %9500 = vsyncadd [#allocation9], 4294966768 }
 0x3b5   :  { %9501 = dma.done.wait [#allocation12], 1024  }
 0x3b6   :  { %9502 = vsyncadd [#allocation12], 4294966272 }
 0x3b7   :  { %9503 = dma.done.wait [#allocation15], 528  }
 0x3b8   :  { %9504 = vsyncadd [#allocation15], 4294966768 }
 0x3b9   :  { %9505 = dma.done.wait [#allocation18], 528  }
 0x3ba   :  { %9506 = vsyncadd [#allocation18], 4294966768 }
 0x3bb   :  { %9507 = dma.done.wait [#allocation21], 1024  }
 0x3bc   :  { %9508 = vsyncadd [#allocation21], 4294966272 }
 0x3bd   :  { %9509 = dma.done.wait [#allocation24], 528  }
 0x3be   :  { %9510 = vsyncadd [#allocation24], 4294966768 }
 0x3bf   :  { %9511 = dma.done.wait [#allocation27], 528  }
 0x3c0   :  { %9512 = vsyncadd [#allocation27], 4294966768 }
 0x3c1   :  { %9513 = dma.done.wait [#allocation30], 1024  }
 0x3c2   :  { %9514 = vsyncadd [#allocation30], 4294966272 }
 0x3c3   :  { %9515 = dma.done.wait [#allocation33], 528  }
 0x3c4   :  { %9516 = vsyncadd [#allocation33], 4294966768 }
 0x3c5   :  { %9517 = dma.done.wait [#allocation36], 1024  }
 0x3c6   :  { %9518 = vsyncadd [#allocation36], 4294966272 }
 0x3c7   :  { %9519 = dma.done.wait [#allocation39], 528  }
 0x3c8   :  { %9520 = vsyncadd [#allocation39], 4294966768 }
 0x3c9   :  { %9521 = dma.done.wait [#allocation42], 528  }
 0x3ca   :  { %9522 = vsyncadd [#allocation42], 4294966768 }
 0x3cb   :  { %9523 = dma.done.wait [#allocation45], 1024  }
 0x3cc   :  { %9524 = vsyncadd [#allocation45], 4294966272 }
 0x3cd   :  { %9525 = dma.done.wait [#allocation48], 528  }
 0x3ce   :  { %9526 = vsyncadd [#allocation48], 4294966768 }
 0x3cf   :  { %9527 = dma.done.wait [#allocation51], 528  }
 0x3d0   :  { %9528 = vsyncadd [#allocation51], 4294966768 }
 0x3d1   :  { %9529 = dma.done.wait [#allocation54], 1024  }
 0x3d2   :  { %9530 = vsyncadd [#allocation54], 4294966272 }
 0x3d3   :  { %9531 = dma.done.wait [#allocation57], 528  }
 0x3d4   :  { %9532 = vsyncadd [#allocation57], 4294966768 }
 0x3d5   :  { %9533 = dma.done.wait [#allocation60], 1024  }
 0x3d6   :  { %9534 = vsyncadd [#allocation60], 4294966272 }
 0x3d7   :  { %9535 = dma.done.wait [#allocation63], 528  }
 0x3d8   :  { %9536 = vsyncadd [#allocation63], 4294966768 }
 0x3d9   :  { %9537 = dma.done.wait [#allocation66], 1024  }
 0x3da   :  { %9538 = vsyncadd [#allocation66], 4294966272 }
 0x3db   :  { %9539 = dma.done.wait [#allocation69], 528  }
 0x3dc   :  { %9540 = vsyncadd [#allocation69], 4294966768  ;;  %v769_v0 = vlaneseq  ;;  %vm828_vm0 = vcmask 261120   ;;  %v802_v2 = vld [vmem:[#allocation7] sm:$0xff]  ;;  %v803_v3 = vld [vmem:[#allocation7 + $0x8] sm:$0xff]  ;;  %vm813_vm1 = vcmask 1040384  }
 0x3dd   :  { %v804_v4 = vld [vmem:[#allocation7 + $0x10] sm:$0xff]  ;;  %v7811_v5 = vpack.c.bf16 %v803_v3, %v802_v2  ;;  %v805_v6 = vld [vmem:[#allocation7 + $0x18] sm:$0xff]  ;;  %v798_v10 = vld [vmem:[#allocation5] sm:$0xff]  ;;  %vm989_vm3 = vcmask 1046528   ;;  %vm1114_vm7 = vcmask 1042432   ;;  %vm1289_vm9 = vcmask 1044480  }
 0x3de   :  { %v770_v1 = vshrl.u32 %v769_v0, 7  ;;  %v796_v7 = vld [vmem:[#allocation2] sm:$0xff]  ;;  %v7815_v8 = vpack.c.bf16 %v805_v6, %v804_v4  ;;  %v799_v11 = vld [vmem:[#allocation5 + $0x8] sm:$0xff]  ;;  %v801_v16 = vld [vmem:[#allocation5 + $0x18] sm:$0xff]  ;;  %s9635_s12 = smov 32   ;;  %s9636_s27 = smov 96  }
 0x3df   :  { %v814_v9 = vrot.slane %v796_v7, 7  ;;  %7126 = vmatprep.mubr.msk.f32.mxu0 %vm828_vm0, %v796_v7  ;;  %7812 = vmatprep.subr.bf16.mxu0 %v7811_v5  ;;  %v7819_v13 = vpack.c.bf16 %v799_v11, %v798_v10  ;;  %v800_v15 = vld [vmem:[#allocation5 + $0x10] sm:$0xff]  ;;  %v797_v18 = vld [vmem:[#allocation2 + $0x8] sm:$0xff]  ;;  %v990_v23 = vrot.slane %v796_v7, 1  ;;  %v806_v25 = vld [vmem:[#allocation8] sm:$0xff]  ;;  %vm2263_vm13 = vcmask 1041408  }
 0x3e0   :  { %v10277_v12 = vand.u32 7, %v770_v1  ;;  %7814 = vmatpush3.bf16.msra.mxu0 %v7811_v5  ;;  %v771_v14 = vadd.s32 8, %v770_v1  ;;  %v815_v19 = vrot.slane %v797_v18, 7  ;;  %v7823_v20 = vpack.c.bf16 %v801_v16, %v800_v15  ;;  %v807_v26 = vld [vmem:[#allocation8 + $0x8] sm:$0xff]  ;;  %v808_v29 = vld [vmem:[#allocation8 + $0x10] sm:$0xff]  ;;  %v809_v30 = vld [vmem:[#allocation8 + $0x18] sm:$0xff] }
 0x3e1   :  { %7816 = vmatprep.subr.bf16.mxu0 %v7815_v8  ;;  %v819_v17 = vsel %vm813_vm1, 0.0, %v814_v9  ;;  %v991_v24 = vrot.slane %v797_v18, 1  ;;  %v7827_v28 = vpack.c.bf16 %v807_v26, %v806_v25  ;;  %v7831_v33 = vpack.c.bf16 %v809_v30, %v808_v29  ;;  %v1101_v37 = vld [vmem:[#allocation13] sm:$0xff]  ;;  %v1102_v38 = vld [vmem:[#allocation13 + $0x8] sm:$0xff]  ;;  %v1103_v40 = vld [vmem:[#allocation13 + $0x10] sm:$0xff]  ;;  %s9637_s26 = smov 64  }
 0x3e2   :  { %vm820_vm2 = vcmp.ge.s32.totalorder %v10277_v12, 1  ;;  %v10283_v22 = vand.u32 7, %v771_v14  ;;  %v816_v27 = vsel %vm813_vm1, %v814_v9, %v815_v19  ;;  %vm996_vm5 = vcmp.lt.s32.totalorder %v10277_v12, 7  ;;  %v1104_v41 = vld [vmem:[#allocation13 + $0x18] sm:$0xff]  ;;  %v1097_v43 = vld [vmem:[#allocation11] sm:$0xff]  ;;  %v1098_v44 = vld [vmem:[#allocation11 + $0x8] sm:$0xff] }
 0x3e3   :  { %v826_v21 = vsel %vm820_vm2, %v819_v17, 0.0  ;;  %v992_v31 = vsel %vm989_vm3, %v990_v23, %v991_v24  ;;  %v995_v35 = vsel %vm989_vm3, %v991_v24, 0.0  ;;  %v7835_v39 = vpack.c.bf16 %v1102_v38, %v1101_v37  ;;  %v1395_v46 = vld [vmem:[#allocation17] sm:$0xff]  ;;  %v1396_v47 = vld [vmem:[#allocation17 + $0x8] sm:$0xff]  ;;  %v6607_v49 = vld [vmem:[#allocation10] ss:$0 sm:$0xff] }
 0x3e4   :  { %7818 = vmatpush3.bf16.msra.mxu0 %v7815_v8  ;;  %vm821_vm4 = vcmp.ge.s32.totalorder %v10283_v22, 1  ;;  %v1002_v34 = vsel %vm996_vm5, %v992_v31, 0.0  ;;  %vm997_vm6 = vcmp.lt.s32.totalorder %v10283_v22, 7  ;;  %v7839_v42 = vpack.c.bf16 %v1104_v41, %v1103_v40  ;;  %v1099_v56 = vld [vmem:[#allocation11 + $0x10] sm:$0xff]  ;;  %v1100_v57 = vld [vmem:[#allocation11 + $0x18] sm:$0xff]  ;;  %v1105_v62 = vld [vmem:[#allocation14] sm:$0xff] }
 0x3e5   :  { %7820 = vmatprep.subr.bf16.mxu0 %v7819_v13  ;;  %v827_v32 = vsel %vm821_vm4, %v816_v27, 0.0  ;;  %v1003_v36 = vsel %vm997_vm6, %v995_v35, 0.0  ;;  %7836 = vmatprep.subr.bf16.mxu1 %v7835_v39  ;;  %v7843_v45 = vpack.c.bf16 %v1098_v44, %v1097_v43  ;;  %v7859_v48 = vpack.c.bf16 %v1396_v47, %v1395_v46  ;;  %v1106_v63 = vld [vmem:[#allocation14 + $0x8] sm:$0xff]  ;;  %v1107_v6 = vld [vmem:[#allocation14 + $0x10] sm:$0xff]  ;;  %v1108_v7 = vld [vmem:[#allocation14 + $0x18] sm:$0xff]  ;;  %s9638_s3 = smov [#allocation71]  }
 0x3e6   :  { %7838 = vmatpush3.bf16.msra.mxu1 %v7835_v39  ;;  %v7847_v60 = vpack.c.bf16 %v1100_v57, %v1099_v56  ;;  %vm1121_vm8 = vcmp.ge.s32.totalorder %v10277_v12, 3  ;;  %v7851_v5 = vpack.c.bf16 %v1106_v63, %v1105_v62  ;;  %vm1122_vm10 = vcmp.ge.s32.totalorder %v10283_v22, 3  ;;  %v1397_v16 = vld [vmem:[#allocation17 + $0x10] sm:$0xff]  ;;  %v1398_v17 = vld [vmem:[#allocation17 + $0x18] sm:$0xff]  ;;  %v1495_v27 = vld [vmem:[#allocation22] sm:$0xff]  ;;  %s6522_s9 = sshll.u32 %s9638_s3, 4  ;;  %s6523_s9 = int_to_ptr.vmem [resolvable:$true] %s6522_s9 }
 0x3e7   :  { %7127 = vmatmul.mubr.msk.f32.vlgmr.msra.gmra.mrb[0].mxu0 %vm828_vm0, %v797_v18  ;;  %7840 = vmatprep.subr.bf16.mxu1 %v7839_v42  ;;  %vm1296_vm11 = vcmp.lt.s32.totalorder %v10277_v12, 5  ;;  %v7855_v10 = vpack.c.bf16 %v1108_v7, %v1107_v6  ;;  %vm1297_vm12 = vcmp.lt.s32.totalorder %v10283_v22, 5  ;;  %v7863_v18 = vpack.c.bf16 %v1398_v17, %v1397_v16  ;;  %v6614_v19 = vld [vmem:[#allocation16] ss:$0 sm:$0xff]  ;;  %v1497_v30 = vld [vmem:[#allocation22 + $0x10] sm:$0xff]  ;;  %v1499_v56 = vld [vmem:[#allocation23] sm:$0xff]  ;;  %p9478_p11 = scmp.lt.s32.totalorder %s6523_s9, %s6523_s9 }
 0x3e8   :  { %7822 = vmatpush3.bf16.msra.mxu0 %v7819_v13  ;;  %7137 = vmatprep.mubr.msk.f32.mxu0 %vm828_vm0, %v826_v21  ;;  %v1498_v31 = vld [vmem:[#allocation22 + $0x18] sm:$0xff]  ;;  %v1776_v37 = vld [vmem:[#allocation26 + $0x8] sm:$0xff]  ;;  %v6624_v16 = vld [vmem:[#allocation25] ss:$0 sm:$0xff]  ;;  %vm2717_vm14 = vcmask 1045504   ;;  %vm2274_vm15 = vcmp.ge.s32.totalorder %v10277_v12, 2 }
 0x3e9   :  { %7824 = vmatprep.subr.bf16.mxu0 %v7823_v20  ;;  %v6615_v39 = vld [vmem:[#allocation19] ss:$0 sm:$0xff]  ;;  %v1493_v46 = vld [vmem:[#allocation20 + $0x10] sm:$0xff]  ;;  %v1500_v57 = vld [vmem:[#allocation23 + $0x8] sm:$0xff]  ;;  %s9473_s14 = scalar_lea.vmem %s6523_s9, 256 }
 0x3ea   :  { %7842 = vmatpush3.bf16.msra.mxu1 %v7839_v42  ;;  %v1494_v47 = vld [vmem:[#allocation20 + $0x18] sm:$0xff]  ;;  %p9474_p10 = scmp.ne.s32.totalorder %s6523_s9, %s9473_s14  ;;  %p9479_p12 = scmp.lt.s32.totalorder %s9473_s14, %s9473_s14 }
 0x3eb   :  { %7844 = vmatprep.subr.bf16.mxu1 %v7843_v45  ;;  %v1778_v6 = vld [vmem:[#allocation26 + $0x18] sm:$0xff] }
 0x3ec   :  { %7826 = vmatpush3.bf16.msra.mxu0 %v7823_v20  ;;  %p9480_p13 = por %p9479_p12, %p9478_p11 }
 0x3ed   :  { %7828 = vmatprep.subr.bf16.mxu0 %v7827_v28 }
 0x3ee   :  { %p9481_p0 = pnand %p9480_p13, %p9474_p10 }
 0x3ef   :  { %7138 = vmatmul.mubr.msk.f32.vlgmr.msra.gmra.mrb[0].mxu0 %vm828_vm0, %v827_v32  ;;  %v7871_v32 = vpack.c.bf16 %v1498_v31, %v1497_v30 }
 0x3f0   :  { %7830 = vmatpush3.bf16.msra.mxu0 %v7827_v28  ;;  %7148 = vmatprep.mubr.msk.f32.mxu0 %vm828_vm0, %v1002_v34  ;;  %v1496_v28 = vld [vmem:[#allocation22 + $0x8] sm:$0xff] }
 0x3f1   :  { %7832 = vmatprep.subr.bf16.mxu0 %v7831_v33  ;;  %v7867_v29 = vpack.c.bf16 %v1496_v28, %v1495_v27  ;;  %v1492_v34 = vld [vmem:[#allocation20 + $0x8] sm:$0xff]  ;;  %v1882_v27 = vld [vmem:[#allocation32 + $0x18] sm:$0xff] }
 0x3f4   :  { %7834 = vmatpush3.bf16.msra.mxu0 %v7831_v33  ;;  %v1491_v33 = vld [vmem:[#allocation20] sm:$0xff] }
 0x3f5   :  { %7860 = vmatprep.subr.bf16.mxu0 %v7859_v48  ;;  %v7875_v35 = vpack.c.bf16 %v1492_v34, %v1491_v33  ;;  %v1872_v33 = vld [vmem:[#allocation29 + $0x8] sm:$0xff] }
 0x3f7   :  { %7149 = vmatmul.mubr.msk.f32.vlgmr.msra.gmra.mrb[0].mxu0 %vm828_vm0, %v1003_v36  ;;  %v1775_v36 = vld [vmem:[#allocation26] sm:$0xff] }
 0x3f8   :  { %7862 = vmatpush3.bf16.msra.mxu0 %v7859_v48  ;;  %v7891_v38 = vpack.c.bf16 %v1776_v37, %v1775_v36 }
 0x3f9   :  { %7864 = vmatprep.subr.bf16.mxu0 %v7863_v18 }
 0x3fc   :  { %7866 = vmatpush3.bf16.msra.mxu0 %v7863_v18 }
 0x3fd   :  { %7892 = vmatprep.subr.bf16.mxu0 %v7891_v38 }
 0x4ca   :  { %v7150_v50 = vpop.f32.mrb[0].mxu0 }
 0x4cb   :  { %v10302_v51 = vadd.f32 %v7150_v50, %v6607_v49  ;;  %v1076_v52 = vpop.f32.mrb[1].mxu0  ;;  %v7879_v50 = vpack.c.bf16 %v1494_v47, %v1493_v46  ;;  %v6625_v46 = vld [vmem:[#allocation28] ss:$0 sm:$0xff] }
 0x4cc   :  { %v10304_v53 = vadd.f32 %v6607_v49, %v1076_v52 }
 0x4cd   :  { %v1096_v54 = vmax.f32 %v10302_v51, 0.0 }
 0x4ce   :  { %v1095_v55 = vmax.f32 %v10304_v53, 0.0 }
 0x4cf   :  { %v1111_v58 = vmax.f32 %v1096_v54, 0.0 }
 0x4d0   :  { %v1110_v59 = vmax.f32 %v1095_v55, 0.0 }
 0x4d1   :  { %v1116_v0 = vrot.slane %v1111_v58, 5  ;;  %v1291_v1 = vrot.slane %v1111_v58, 3 }
 0x4d2   :  { %7159 = vmatprep.mubr.msk.f32.mxu1 %vm828_vm0, %v1110_v59  ;;  %v1115_v61 = vrot.slane %v1110_v59, 5  ;;  %v1290_v2 = vrot.slane %v1110_v59, 3  ;;  %v7883_v59 = vpack.c.bf16 %v1500_v57, %v1499_v56 }
 0x4d3   :  { %7160 = vmatmul.mubr.msk.f32.vlgmr.msra.gmra.mrb[0].mxu1 %vm828_vm0, %v1111_v58  ;;  %v1295_v14 = vsel %vm1289_vm9, %v1291_v1, 0.0 }
 0x4d4   :  { %7846 = vmatpush3.bf16.msra.mxu1 %v7843_v45  ;;  %v1120_v3 = vsel %vm1114_vm7, 0.0, %v1115_v61  ;;  %v1117_v8 = vsel %vm1114_vm7, %v1115_v61, %v1116_v0  ;;  %v1292_v9 = vsel %vm1289_vm9, %v1290_v2, %v1291_v1  ;;  %v1303_v15 = vsel %vm1297_vm12, %v1295_v14, 0.0  ;;  %v1502_v61 = vld [vmem:[#allocation23 + $0x18] sm:$0xff] }
 0x4d5   :  { %v1127_v4 = vsel %vm1121_vm8, %v1120_v3, 0.0  ;;  %7848 = vmatprep.subr.bf16.mxu1 %v7847_v60  ;;  %v1128_v11 = vsel %vm1122_vm10, %v1117_v8, 0.0  ;;  %v1302_v13 = vsel %vm1296_vm11, %v1292_v9, 0.0  ;;  %v1875_v8 = vld [vmem:[#allocation31] sm:$0xff]  ;;  %v1876_v9 = vld [vmem:[#allocation31 + $0x8] sm:$0xff]  ;;  %vm2275_vm7 = vcmp.ge.s32.totalorder %v10283_v22, 2 }
 0x4d6   :  { %7170 = vmatprep.mubr.msk.f32.mxu1 %vm828_vm0, %v1127_v4  ;;  %v2067_v37 = vadd.f32 %v1876_v9, %v1872_v33  ;;  %vm2724_vm8 = vcmp.lt.s32.totalorder %v10277_v12, 6  ;;  %vm2725_vm9 = vcmp.lt.s32.totalorder %v10283_v22, 6  ;;  %vm4447_vm10 = vcmask 523264  }
 0x4d7   :  { %vm4450_vm11 = vcmask 785408  }
 0x4d8   :  { %7850 = vmatpush3.bf16.msra.mxu1 %v7847_v60  ;;  %v1501_v60 = vld [vmem:[#allocation23 + $0x10] sm:$0xff] }
 0x4d9   :  { %7852 = vmatprep.subr.bf16.mxu1 %v7851_v5  ;;  %v7887_v0 = vpack.c.bf16 %v1502_v61, %v1501_v60 }
 0x4db   :  { %7171 = vmatmul.mubr.msk.f32.vlgmr.msra.gmra.mrb[0].mxu1 %vm828_vm0, %v1128_v11  ;;  %v1880_v11 = vld [vmem:[#allocation32 + $0x8] sm:$0xff] }
 0x4dc   :  { %7854 = vmatpush3.bf16.msra.mxu1 %v7851_v5  ;;  %7181 = vmatprep.mubr.msk.f32.mxu1 %vm828_vm0, %v1302_v13  ;;  %v1777_v5 = vld [vmem:[#allocation26 + $0x10] sm:$0xff]  ;;  %v1885_v14 = vadd.f32 %v1880_v11, %v1876_v9 }
 0x4dd   :  { %7856 = vmatprep.subr.bf16.mxu1 %v7855_v10  ;;  %v7895_v7 = vpack.c.bf16 %v1778_v6, %v1777_v5  ;;  %v6632_v6 = vld [vmem:[#allocation34] ss:$0 sm:$0xff] }
 0x4e0   :  { %7858 = vmatpush3.bf16.msra.mxu1 %v7855_v10  ;;  %v1879_v10 = vld [vmem:[#allocation32] sm:$0xff] }
 0x4e1   :  { %7868 = vmatprep.subr.bf16.mxu1 %v7867_v29  ;;  %v1884_v13 = vadd.f32 %v1879_v10, %v1875_v8  ;;  %v7915_v30 = vpack.c.bf16 %v1880_v11, %v1879_v10 }
 0x4e3   :  { %7182 = vmatmul.mubr.msk.f32.vlgmr.msra.gmra.mrb[0].mxu1 %vm828_vm0, %v1303_v15  ;;  %v7899_v15 = vpack.c.bf16 %v1885_v14, %v1884_v13 }
 0x4e4   :  { %7870 = vmatpush3.bf16.msra.mxu1 %v7867_v29 }
 0x4e5   :  { %7872 = vmatprep.subr.bf16.mxu1 %v7871_v32 }
 0x4e8   :  { %7874 = vmatpush3.bf16.msra.mxu1 %v7871_v32  ;;  %v1871_v32 = vld [vmem:[#allocation29] sm:$0xff] }
 0x4e9   :  { %7876 = vmatprep.subr.bf16.mxu1 %v7875_v35  ;;  %v7907_v34 = vpack.c.bf16 %v1872_v33, %v1871_v32  ;;  %v2066_v36 = vadd.f32 %v1875_v8, %v1871_v32  ;;  %v2254_v32 = vld [vmem:[#allocation38] sm:$0xff]  ;;  %v2255_v33 = vld [vmem:[#allocation38 + $0x8] sm:$0xff] }
 0x5b6   :  { %v7183_v20 = vpop.f32.mrb[0].mxu1 }
 0x5b7   :  { %v1394_v21 = vadd.f32 %v7183_v20, %v6614_v19  ;;  %v1376_v23 = vpop.f32.mrb[1].mxu1 }
 0x5b8   :  { %v1393_v24 = vadd.f32 %v6614_v19, %v1376_v23 }
 0x5b9   :  { %v1401_v26 = vmax.f32 %v1394_v21, 0.0 }
 0x5ba   :  { %v1400_v25 = vmax.f32 %v1393_v24, 0.0  ;;  %v1877_v24 = vld [vmem:[#allocation31 + $0x10] sm:$0xff] }
 0x5bc   :  { %7192 = vmatprep.mubr.msk.f32.mxu0 %vm828_vm0, %v1400_v25  ;;  %v1878_v25 = vld [vmem:[#allocation31 + $0x18] sm:$0xff] }
 0x5bd   :  { %7193 = vmatmul.mubr.msk.f32.vlgmr.msra.gmra.mrb[2].mxu0 %vm828_vm0, %v1401_v26  ;;  %v1881_v26 = vld [vmem:[#allocation32 + $0x10] sm:$0xff]  ;;  %v1887_v29 = vadd.f32 %v1882_v27, %v1878_v25 }
 0x5be   :  { %7894 = vmatpush3.bf16.msra.mxu0 %v7891_v38  ;;  %v1886_v28 = vadd.f32 %v1881_v26, %v1877_v24  ;;  %v7923_v38 = vpack.c.bf16 %v2067_v37, %v2066_v36 }
 0x5bf   :  { %7896 = vmatprep.subr.bf16.mxu0 %v7895_v7 }
 0x5c0   :  { %v7903_v31 = vpack.c.bf16 %v1887_v29, %v1886_v28 }
 0x5c2   :  { %7898 = vmatpush3.bf16.msra.mxu0 %v7895_v7 }
 0x5c3   :  { %7900 = vmatprep.subr.bf16.mxu0 %v7899_v15 }
 0x690   :  { %v7194_v40 = vpop.f32.mrb[2].mxu0 }
 0x691   :  { %v1486_v41 = vadd.f32 %v7194_v40, %v6615_v39  ;;  %v1480_v42 = vpop.f32.mrb[3].mxu0  ;;  %v1874_v40 = vld [vmem:[#allocation29 + $0x18] sm:$0xff] }
 0x692   :  { %v1481_v43 = vadd.f32 %v6615_v39, %v1480_v42  ;;  %v1873_v39 = vld [vmem:[#allocation29 + $0x10] sm:$0xff]  ;;  %v2069_v42 = vadd.f32 %v1878_v25, %v1874_v40 }
 0x693   :  { %v10330_v44 = vadd.f32 %v1486_v41, %v1096_v54  ;;  %v2068_v41 = vadd.f32 %v1877_v24, %v1873_v39  ;;  %v2249_v24 = vld [vmem:[#allocation35 + $0x18] sm:$0xff] }
 0x694   :  { %v10334_v45 = vadd.f32 %v1481_v43, %v1095_v55 }
 0x695   :  { %v1505_v48 = vmax.f32 %v10330_v44, 0.0  ;;  %v7927_v43 = vpack.c.bf16 %v2069_v42, %v2068_v41  ;;  %v7947_v41 = vpack.c.bf16 %v2255_v33, %v2254_v32  ;;  %v3022_v33 = vld [vmem:[#allocation46 + $0x10] sm:$0xff] }
 0x696   :  { %v1504_v49 = vmax.f32 %v10334_v45, 0.0 }
 0x697   :  { %v1509_v58 = vrot.slane %v1505_v48, 7  ;;  %v1677_v54 = vrot.slane %v1505_v48, 1 }
 0x698   :  { %7203 = vmatprep.mubr.msk.f32.mxu1 %vm828_vm0, %v1504_v49  ;;  %v1508_v52 = vrot.slane %v1504_v49, 7  ;;  %v1676_v53 = vrot.slane %v1504_v49, 1 }
 0x699   :  { %7204 = vmatmul.mubr.msk.f32.vlgmr.msra.gmra.mrb[2].mxu1 %vm828_vm0, %v1505_v48  ;;  %v1681_v3 = vsel %vm989_vm3, %v1677_v54, 0.0 }
 0x69a   :  { %7878 = vmatpush3.bf16.msra.mxu1 %v7875_v35  ;;  %v1513_v51 = vsel %vm813_vm1, 0.0, %v1508_v52  ;;  %v1510_v62 = vsel %vm813_vm1, %v1508_v52, %v1509_v58  ;;  %v1678_v63 = vsel %vm989_vm3, %v1676_v53, %v1677_v54  ;;  %v1683_v4 = vsel %vm997_vm6, %v1681_v3, 0.0  ;;  %v2252_v3 = vld [vmem:[#allocation37 + $0x10] sm:$0xff] }
 0x69b   :  { %v1514_v55 = vsel %vm820_vm2, %v1513_v51, 0.0  ;;  %7880 = vmatprep.subr.bf16.mxu1 %v7879_v50  ;;  %v1515_v1 = vsel %vm821_vm4, %v1510_v62, 0.0  ;;  %v1682_v2 = vsel %vm996_vm5, %v1678_v63, 0.0  ;;  %v7919_v35 = vpack.c.bf16 %v1882_v27, %v1881_v26 }
 0x69c   :  { %7214 = vmatprep.mubr.msk.f32.mxu1 %vm828_vm0, %v1514_v55  ;;  %v7911_v51 = vpack.c.bf16 %v1874_v40, %v1873_v39 }
 0x69e   :  { %7882 = vmatpush3.bf16.msra.mxu1 %v7879_v50 }
 0x69f   :  { %7884 = vmatprep.subr.bf16.mxu1 %v7883_v59 }
 0x6a1   :  { %7215 = vmatmul.mubr.msk.f32.vlgmr.msra.gmra.mrb[2].mxu1 %vm828_vm0, %v1515_v1  ;;  %v2251_v1 = vld [vmem:[#allocation37 + $0x8] sm:$0xff] }
 0x6a2   :  { %7886 = vmatpush3.bf16.msra.mxu1 %v7883_v59  ;;  %7225 = vmatprep.mubr.msk.f32.mxu1 %vm828_vm0, %v1682_v2 }
 0x6a3   :  { %7888 = vmatprep.subr.bf16.mxu1 %v7887_v0 }
 0x6a6   :  { %7890 = vmatpush3.bf16.msra.mxu1 %v7887_v0  ;;  %v2250_v0 = vld [vmem:[#allocation37] sm:$0xff] }
 0x6a7   :  { %7916 = vmatprep.subr.bf16.mxu1 %v7915_v30  ;;  %v7931_v2 = vpack.c.bf16 %v2251_v1, %v2250_v0  ;;  %v2827_v1 = vld [vmem:[#allocation41] sm:$0xff] }
 0x6a9   :  { %7226 = vmatmul.mubr.msk.f32.vlgmr.msra.gmra.mrb[2].mxu1 %vm828_vm0, %v1683_v4  ;;  %v2253_v4 = vld [vmem:[#allocation37 + $0x18] sm:$0xff] }
 0x6aa   :  { %7918 = vmatpush3.bf16.msra.mxu1 %v7915_v30  ;;  %v7935_v5 = vpack.c.bf16 %v2253_v4, %v2252_v3  ;;  %v2829_v4 = vld [vmem:[#allocation41 + $0x10] sm:$0xff] }
 0x6ab   :  { %7920 = vmatprep.subr.bf16.mxu1 %v7919_v35 }
 0x6ae   :  { %7922 = vmatpush3.bf16.msra.mxu1 %v7919_v35 }
 0x6af   :  { %7924 = vmatprep.subr.bf16.mxu1 %v7923_v38 }
 0x77c   :  { %v7227_v17 = vpop.f32.mrb[2].mxu1 }
 0x77d   :  { %v1774_v18 = vadd.f32 %v7227_v17, %v6624_v16  ;;  %v1756_v19 = vpop.f32.mrb[3].mxu1  ;;  %v2247_v17 = vld [vmem:[#allocation35 + $0x8] sm:$0xff] }
 0x77e   :  { %v1773_v20 = vadd.f32 %v6624_v16, %v1756_v19  ;;  %v2246_v16 = vld [vmem:[#allocation35] sm:$0xff] }
 0x77f   :  { %v1781_v23 = vmax.f32 %v1774_v18, 0.0  ;;  %v7939_v18 = vpack.c.bf16 %v2247_v17, %v2246_v16 }
 0x780   :  { %v1780_v21 = vmax.f32 %v1773_v20, 0.0 }
 0x782   :  { %7236 = vmatprep.mubr.msk.f32.mxu0 %vm828_vm0, %v1780_v21 }
 0x783   :  { %7237 = vmatmul.mubr.msk.f32.vlgmr.msra.gmra.mrb[4].mxu0 %vm828_vm0, %v1781_v23  ;;  %v2248_v23 = vld [vmem:[#allocation35 + $0x10] sm:$0xff] }
 0x784   :  { %7902 = vmatpush3.bf16.msra.mxu0 %v7899_v15  ;;  %v7943_v29 = vpack.c.bf16 %v2249_v24, %v2248_v23 }
 0x785   :  { %7904 = vmatprep.subr.bf16.mxu0 %v7903_v31 }
 0x788   :  { %7906 = vmatpush3.bf16.msra.mxu0 %v7903_v31 }
 0x789   :  { %7908 = vmatprep.subr.bf16.mxu0 %v7907_v34 }
 0x856   :  { %v7238_v47 = vpop.f32.mrb[4].mxu0 }
 0x857   :  { %v1866_v48 = vadd.f32 %v7238_v47, %v6625_v46  ;;  %v1860_v49 = vpop.f32.mrb[5].mxu0 }
 0x858   :  { %v1861_v50 = vadd.f32 %v6625_v46, %v1860_v49 }
 0x859   :  { %v1870_v52 = vadd.f32 %v1866_v48, %v10330_v44 }
 0x85a   :  { %v1869_v56 = vadd.f32 %v1861_v50, %v10334_v45 }
 0x85b   :  { %v1891_v57 = vrot.slane %v1870_v52, 7  ;;  %v2071_v58 = vrot.slane %v1870_v52, 1 }
 0x85c   :  { %7247 = vmatprep.mubr.msk.f32.mxu0 %vm828_vm0, %v1869_v56  ;;  %v1890_v53 = vrot.slane %v1869_v56, 7  ;;  %v2070_v54 = vrot.slane %v1869_v56, 1 }
 0x85d   :  { %7248 = vmatmul.mubr.msk.f32.vlgmr.msra.gmra.mrb[6].mxu0 %vm828_vm0, %v1870_v52  ;;  %v2075_v55 = vsel %vm989_vm3, %v2071_v58, 0.0 }
 0x85e   :  { %7910 = vmatpush3.bf16.msra.mxu0 %v7907_v34  ;;  %v1895_v59 = vsel %vm813_vm1, 0.0, %v1890_v53  ;;  %v2072_v60 = vsel %vm989_vm3, %v2070_v54, %v2071_v58  ;;  %v1892_v44 = vsel %vm813_vm1, %v1890_v53, %v1891_v57  ;;  %v2077_v62 = vsel %vm997_vm6, %v2075_v55, 0.0  ;;  %v2256_v53 = vld [vmem:[#allocation38 + $0x10] sm:$0xff]  ;;  %v2257_v54 = vld [vmem:[#allocation38 + $0x18] sm:$0xff] }
 0x85f   :  { %v1896_v45 = vsel %vm820_vm2, %v1895_v59, 0.0  ;;  %v2076_v61 = vsel %vm996_vm5, %v2072_v60, 0.0  ;;  %7912 = vmatprep.subr.bf16.mxu0 %v7911_v51  ;;  %v1897_v63 = vsel %vm821_vm4, %v1892_v44, 0.0  ;;  %v7951_v59 = vpack.c.bf16 %v2257_v54, %v2256_v53 }
 0x860   :  { %7258 = vmatprep.mubr.msk.f32.mxu0 %vm828_vm0, %v1896_v45  ;;  %7269 = vmatprep.mubr.msk.f32.mxu1 %vm828_vm0, %v2076_v61 }
 0x861   :  { %7270 = vmatmul.mubr.msk.f32.vlgmr.msra.gmra.mrb[4].mxu1 %vm828_vm0, %v2077_v62 }
 0x862   :  { %7914 = vmatpush3.bf16.msra.mxu0 %v7911_v51  ;;  %7926 = vmatpush3.bf16.msra.mxu1 %v7923_v38 }
 0x863   :  { %7280 = vmatprep.mubr.msk.f32.mxu1 %vm828_vm0, %v1869_v56  ;;  %7928 = vmatprep.subr.bf16.mxu1 %v7927_v43 }
 0x864   :  { %7932 = vmatprep.subr.bf16.mxu0 %v7931_v2 }
 0x865   :  { %7259 = vmatmul.mubr.msk.f32.vlgmr.msra.gmra.mrb[6].mxu0 %vm828_vm0, %v1897_v63 }
 0x866   :  { %7930 = vmatpush3.bf16.msra.mxu1 %v7927_v43  ;;  %7934 = vmatpush3.bf16.msra.mxu0 %v7931_v2 }
 0x867   :  { %7956 = vmatprep.subr.bf16.mxu1 %v7931_v2  ;;  %7936 = vmatprep.subr.bf16.mxu0 %v7935_v5 }
 0x869   :  { %7281 = vmatmul.mubr.msk.f32.vlgmr.msra.gmra.mrb[4].mxu1 %vm828_vm0, %v1870_v52 }
 0x86a   :  { %7958 = vmatpush3.bf16.msra.mxu1 %v7931_v2  ;;  %7938 = vmatpush3.bf16.msra.mxu0 %v7935_v5  ;;  %v2828_v2 = vld [vmem:[#allocation41 + $0x8] sm:$0xff] }
 0x86b   :  { %7960 = vmatprep.subr.bf16.mxu1 %v7935_v5  ;;  %7940 = vmatprep.subr.bf16.mxu0 %v7939_v18  ;;  %v7979_v3 = vpack.c.bf16 %v2828_v2, %v2827_v1  ;;  %v3026_v1 = vld [vmem:[#allocation47 + $0x10] sm:$0xff]  ;;  %v3027_v2 = vld [vmem:[#allocation47 + $0x18] sm:$0xff] }
 0x86e   :  { %7962 = vmatpush3.bf16.msra.mxu1 %v7935_v5  ;;  %v2830_v5 = vld [vmem:[#allocation41 + $0x18] sm:$0xff] }
 0x86f   :  { %7964 = vmatprep.subr.bf16.mxu1 %v7939_v18 }
 0x938   :  { %v7260_v7 = vpop.f32.mrb[6].mxu0 }
 0x939   :  { %v2065_v8 = vadd.f32 %v7260_v7, %v6632_v6  ;;  %v2049_v9 = vpop.f32.mrb[7].mxu0  ;;  %v6643_v7 = vld [vmem:[#allocation40] ss:$0 sm:$0xff] }
 0x93a   :  { %v2064_v10 = vadd.f32 %v6632_v6, %v2049_v9 }
 0x93c   :  { %v7282_v11 = vpop.f32.mrb[4].mxu1 }
 0x93d   :  { %v2225_v13 = vpop.f32.mrb[5].mxu1  ;;  %v2235_v15 = vadd.f32 %v7282_v11, %v6632_v6 }
 0x93e   :  { %v2234_v14 = vadd.f32 %v6632_v6, %v2225_v13  ;;  %v7983_v6 = vpack.c.bf16 %v2830_v5, %v2829_v4 }
 0x940   :  { %2238 = vrot.lane.b32.xlu0 %v2234_v14, %s9635_s12 }
 0x944   :  { %2240 = vrot.lane.b32.xlu0 %v2235_v15, %s9635_s12 }
 0x9b2   :  { %v2239_v19 = vpop.permute.xlu0 %2238 }
 0x9b3   :  { %v10383_v20 = vsel %vm828_vm0, %v2064_v10, %v2239_v19 }
 0x9b4   :  { %v2259_v21 = vmax.f32 %v10383_v20, 0.0 }
 0x9b6   :  { %v2241_v25 = vpop.permute.xlu0 %2240  ;;  %2553 = vrot.lane.b32.xlu1 %v2259_v21, %s9636_s27  ;;  %7291 = vmatprep.mubr.msk.f32.mxu0 %vm828_vm0, %v2259_v21  ;;  %v2264_v26 = vrot.slane %v2259_v21, 6  ;;  %v2442_v30 = vrot.slane %v2259_v21, 1  ;;  %v2545_v31 = vrot.slane %v2259_v21, 7  ;;  %v2718_v38 = vrot.slane %v2259_v21, 2 }
 0x9b7   :  { %v10389_v27 = vsel %vm828_vm0, %v2065_v8, %v2241_v25 }
 0x9b8   :  { %v10392_v28 = vmax.f32 %v10389_v27, 0.0  ;;  %2267 = vrot.lane.b32.xlu0 %v2264_v26, %s9636_s27  ;;  %v2550_v52 = vsel %vm813_vm1, 0.0, %v2545_v31 }
 0x9b9   :  { %v2551_v51 = vsel %vm820_vm2, %v2550_v52, 0.0 }
 0x9ba   :  { %2555 = vrot.lane.b32.xlu1 %v10392_v28, %s9636_s27  ;;  %7292 = vmatmul.mubr.msk.f32.vlgmr.msra.gmra.mrb[8].mxu0 %vm828_vm0, %v10392_v28  ;;  %v2443_v34 = vrot.slane %v10392_v28, 1  ;;  %v2265_v35 = vrot.slane %v10392_v28, 6  ;;  %v2546_v36 = vrot.slane %v10392_v28, 7  ;;  %v2719_v37 = vrot.slane %v10392_v28, 2  ;;  %v3020_v28 = vld [vmem:[#allocation46] sm:$0xff] }
 0x9bb   :  { %7942 = vmatpush3.bf16.msra.mxu0 %v7939_v18 }
 0x9bc   :  { %v2444_v39 = vsel %vm989_vm3, %v2442_v30, %v2443_v34  ;;  %v2266_v40 = vsel %vm2263_vm13, %v2264_v26, %v2265_v35  ;;  %7944 = vmatprep.subr.bf16.mxu0 %v7943_v29  ;;  %v2547_v42 = vsel %vm813_vm1, %v2545_v31, %v2546_v36  ;;  %v2720_v46 = vsel %vm2717_vm14, %v2718_v38, %v2719_v37  ;;  %v6650_v36 = vld [vmem:[#allocation43] ss:$0 sm:$0xff] }
 0x9bd   :  { %v2448_v43 = vsel %vm996_vm5, %v2444_v39, 0.0  ;;  %v2447_v47 = vsel %vm989_vm3, %v2443_v34, 0.0  ;;  %v2552_v45 = vsel %vm821_vm4, %v2547_v42, 0.0  ;;  %v2730_v61 = vsel %vm2724_vm8, %v2720_v46, 0.0  ;;  %v3023_v34 = vld [vmem:[#allocation46 + $0x18] sm:$0xff]  ;;  %v3017_v42 = vld [vmem:[#allocation44 + $0x8] sm:$0xff] }
 0x9be   :  { %2452 = vrot.lane.b32.xlu0 %v2448_v43, %s9636_s27  ;;  %2269 = vrot.lane.b32.xlu1 %v2266_v40, %s9636_s27  ;;  %v2449_v48 = vsel %vm997_vm6, %v2447_v47, 0.0  ;;  %v2723_v63 = vsel %vm2717_vm14, %v2719_v37, 0.0  ;;  %v7999_v35 = vpack.c.bf16 %v3023_v34, %v3022_v33 }
 0x9bf   :  { %7946 = vmatpush3.bf16.msra.mxu0 %v7943_v29  ;;  %v2731_v0 = vsel %vm2725_vm9, %v2723_v63, 0.0 }
 0x9c0   :  { %7948 = vmatprep.subr.bf16.mxu0 %v7947_v41 }
 0x9c2   :  { %2454 = vrot.lane.b32.xlu1 %v2449_v48, %s9636_s27 }
 0xa28   :  { %v2554_v49 = vpop.permute.xlu1 %2553 }
 0xa29   :  { %7324 = vmatprep.mubr.msk.f32.mxu1 %vm828_vm0, %v2554_v49 }
 0xa2a   :  { %v2268_v50 = vpop.permute.xlu0 %2267 }
 0xa2b   :  { %v2273_v56 = vsel %vm2263_vm13, 0.0, %v2268_v50 }
 0xa2c   :  { %v2280_v57 = vsel %vm2274_vm15, %v2273_v56, 0.0  ;;  %v2556_v58 = vpop.permute.xlu1 %2555 }
 0xa2d   :  { %7302 = vmatprep.mubr.msk.f32.mxu0 %vm828_vm0, %v2280_v57  ;;  %7325 = vmatmul.mubr.msk.f32.vlgmr.msra.gmra.mrb[6].mxu1 %vm828_vm0, %v2556_v58  ;;  %v3018_v58 = vld [vmem:[#allocation44 + $0x10] sm:$0xff] }
 0xa2e   :  { %7966 = vmatpush3.bf16.msra.mxu1 %v7939_v18  ;;  %7335 = vmatprep.mubr.msk.f32.mxu1 %vm828_vm0, %v2551_v51  ;;  %v3019_v51 = vld [vmem:[#allocation44 + $0x18] sm:$0xff] }
 0xa2f   :  { %7968 = vmatprep.subr.bf16.mxu1 %v7943_v29 }
 0xa30   :  { %v2270_v55 = vpop.permute.xlu1 %2269  ;;  %v2453_v44 = vpop.permute.xlu0 %2452 }
 0xa31   :  { %v2281_v60 = vsel %vm2275_vm7, %v2270_v55, 0.0 }
 0xa32   :  { %7303 = vmatmul.mubr.msk.f32.vlgmr.msra.gmra.mrb[8].mxu0 %vm828_vm0, %v2281_v60  ;;  %7970 = vmatpush3.bf16.msra.mxu1 %v7943_v29  ;;  %v3021_v29 = vld [vmem:[#allocation46 + $0x8] sm:$0xff]  ;;  %v3024_v60 = vld [vmem:[#allocation47] sm:$0xff] }
 0xa33   :  { %7950 = vmatpush3.bf16.msra.mxu0 %v7947_v41  ;;  %7313 = vmatprep.mubr.msk.f32.mxu0 %vm828_vm0, %v2453_v44  ;;  %v7995_v30 = vpack.c.bf16 %v3021_v29, %v3020_v28  ;;  %v3025_v44 = vld [vmem:[#allocation47 + $0x8] sm:$0xff] }
 0xa34   :  { %7972 = vmatprep.subr.bf16.mxu1 %v7947_v41  ;;  %7952 = vmatprep.subr.bf16.mxu0 %v7951_v59  ;;  %v2455_v62 = vpop.permute.xlu1 %2454 }
 0xa35   :  { %7336 = vmatmul.mubr.msk.f32.vlgmr.msra.gmra.mrb[6].mxu1 %vm828_vm0, %v2552_v45  ;;  %v8011_v45 = vpack.c.bf16 %v3025_v44, %v3024_v60  ;;  %v3740_v44 = vld [vmem:[#allocation53] sm:$0xff] }
 0xa36   :  { %7974 = vmatpush3.bf16.msra.mxu1 %v7947_v41  ;;  %7346 = vmatprep.mubr.msk.f32.mxu1 %vm828_vm0, %v2730_v61  ;;  %v3016_v41 = vld [vmem:[#allocation44] sm:$0xff] }
 0xa37   :  { %7954 = vmatpush3.bf16.msra.mxu0 %v7951_v59  ;;  %7976 = vmatprep.subr.bf16.mxu1 %v7951_v59  ;;  %v8003_v43 = vpack.c.bf16 %v3017_v42, %v3016_v41  ;;  %v3745_v41 = vld [vmem:[#allocation55 + $0x8] sm:$0xff]  ;;  %v3748_v42 = vld [vmem:[#allocation56] sm:$0xff] }
 0xa38   :  { %7980 = vmatprep.subr.bf16.mxu0 %v7979_v3 }
 0xa3a   :  { %7314 = vmatmul.mubr.msk.f32.vlgmr.msra.gmra.mrb[8].mxu0 %vm828_vm0, %v2455_v62  ;;  %7978 = vmatpush3.bf16.msra.mxu1 %v7951_v59  ;;  %v8007_v59 = vpack.c.bf16 %v3019_v51, %v3018_v58  ;;  %v3747_v58 = vld [vmem:[#allocation55 + $0x18] sm:$0xff]  ;;  %v3750_v51 = vld [vmem:[#allocation56 + $0x10] sm:$0xff] }
 0xa3b   :  { %7982 = vmatpush3.bf16.msra.mxu0 %v7979_v3  ;;  %7996 = vmatprep.subr.bf16.mxu1 %v7995_v30 }
 0xa3c   :  { %7984 = vmatprep.subr.bf16.mxu0 %v7983_v6 }
 0xa3d   :  { %7347 = vmatmul.mubr.msk.f32.vlgmr.msra.gmra.mrb[6].mxu1 %vm828_vm0, %v2731_v0 }
 0xa3e   :  { %7998 = vmatpush3.bf16.msra.mxu1 %v7995_v30 }
 0xa3f   :  { %7986 = vmatpush3.bf16.msra.mxu0 %v7983_v6  ;;  %8000 = vmatprep.subr.bf16.mxu1 %v7999_v35 }
 0xa40   :  { %7988 = vmatprep.subr.bf16.mxu0 %v7979_v3 }
 0xa42   :  { %8002 = vmatpush3.bf16.msra.mxu1 %v7999_v35 }
 0xa43   :  { %8004 = vmatprep.subr.bf16.mxu1 %v8003_v43 }
 0xb0d   :  { %v7315_v8 = vpop.f32.mrb[8].mxu0 }
 0xb0e   :  { %v2544_v9 = vadd.f32 %v7315_v8, %v6643_v7  ;;  %v2526_v10 = vpop.f32.mrb[9].mxu0 }
 0xb0f   :  { %v2543_v11 = vadd.f32 %v6643_v7, %v2526_v10 }
 0xb10   :  { %v7348_v13 = vpop.f32.mrb[6].mxu1 }
 0xb11   :  { %v2816_v14 = vadd.f32 %v7348_v13, %v6643_v7  ;;  %v2804_v15 = vpop.f32.mrb[7].mxu1 }
 0xb12   :  { %v2815_v16 = vadd.f32 %v6643_v7, %v2804_v15  ;;  %v8015_v7 = vpack.c.bf16 %v3027_v2, %v3026_v1  ;;  %v3552_v15 = vld [vmem:[#allocation50 + $0x8] sm:$0xff] }
 0xb13   :  { %2821 = vrot.lane.b32.xlu1 %v2816_v14, %s9635_s12  ;;  %v3551_v14 = vld [vmem:[#allocation50] sm:$0xff] }
 0xb14   :  { %2819 = vrot.lane.b32.xlu0 %v2815_v16, %s9635_s12  ;;  %v8043_v16 = vpack.c.bf16 %v3552_v15, %v3551_v14 }
 0xb85   :  { %v2822_v17 = vpop.permute.xlu1 %2821 }
 0xb86   :  { %v2826_v18 = vsel %vm828_vm0, %v2544_v9, %v2822_v17  ;;  %v2820_v19 = vpop.permute.xlu0 %2819  ;;  %v3553_v17 = vld [vmem:[#allocation50 + $0x10] sm:$0xff] }
 0xb87   :  { %v2833_v21 = vmax.f32 %v2826_v18, 0.0  ;;  %v2825_v23 = vsel %vm828_vm0, %v2543_v11, %v2820_v19  ;;  %v3554_v18 = vld [vmem:[#allocation50 + $0x18] sm:$0xff] }
 0xb88   :  { %v2832_v24 = vmax.f32 %v2825_v23, 0.0  ;;  %v8047_v19 = vpack.c.bf16 %v3554_v18, %v3553_v17 }
 0xb89   :  { %2923 = vrot.lane.b32.xlu1 %v2833_v21, %s9636_s27 }
 0xb8a   :  { %2921 = vrot.lane.b32.xlu0 %v2832_v24, %s9636_s27  ;;  %7357 = vmatprep.mubr.msk.f32.mxu0 %vm828_vm0, %v2832_v24 }
 0xb8b   :  { %7358 = vmatmul.mubr.msk.f32.vlgmr.msra.gmra.mrb[10].mxu0 %vm828_vm0, %v2833_v21  ;;  %v6661_v21 = vld [vmem:[#allocation49] ss:$0 sm:$0xff] }
 0xb8c   :  { %7990 = vmatpush3.bf16.msra.mxu0 %v7979_v3 }
 0xb8d   :  { %7992 = vmatprep.subr.bf16.mxu0 %v7983_v6 }
 0xb90   :  { %7994 = vmatpush3.bf16.msra.mxu0 %v7983_v6 }
 0xb91   :  { %8020 = vmatprep.subr.bf16.mxu0 %v7995_v30 }
 0xbfb   :  { %v2924_v26 = vpop.permute.xlu1 %2923 }
 0xbfc   :  { %v2922_v25 = vpop.permute.xlu0 %2921 }
 0xbfd   :  { %7368 = vmatprep.mubr.msk.f32.mxu0 %vm828_vm0, %v2922_v25 }
 0xbfe   :  { %7369 = vmatmul.mubr.msk.f32.vlgmr.msra.gmra.mrb[12].mxu0 %vm828_vm0, %v2924_v26 }
 0xbff   :  { %8022 = vmatpush3.bf16.msra.mxu0 %v7995_v30 }
 0xc00   :  { %8024 = vmatprep.subr.bf16.mxu0 %v7999_v35 }
 0xc03   :  { %8026 = vmatpush3.bf16.msra.mxu0 %v7999_v35 }
 0xc04   :  { %8028 = vmatprep.subr.bf16.mxu0 %v8003_v43 }
 0xc5e   :  { %v7359_v31 = vpop.f32.mrb[10].mxu0 }
 0xc5f   :  { %v2912_v32 = vpop.f32.mrb[11].mxu0  ;;  %v2918_v46 = vadd.f32 %v7359_v31, %v6650_v36 }
 0xc60   :  { %v2913_v47 = vadd.f32 %v6650_v36, %v2912_v32 }
 0xcd1   :  { %v7370_v37 = vpop.f32.mrb[12].mxu0 }
 0xcd2   :  { %v3001_v38 = vadd.f32 %v7370_v37, %v6650_v36  ;;  %v2995_v39 = vpop.f32.mrb[13].mxu0 }
 0xcd3   :  { %v2996_v40 = vadd.f32 %v6650_v36, %v2995_v39 }
 0xcd4   :  { %3008 = vrot.lane.b32.xlu1 %v3001_v38, %s9635_s12 }
 0xcd5   :  { %3006 = vrot.lane.b32.xlu0 %v2996_v40, %s9635_s12  ;;  %v3744_v40 = vld [vmem:[#allocation55] sm:$0xff] }
 0xcd6   :  { %v3939_v2 = vadd.f32 %v3744_v40, %v3740_v44 }
 0xd46   :  { %v3009_v48 = vpop.permute.xlu1 %3008 }
 0xd47   :  { %v3013_v49 = vsel %vm828_vm0, %v2918_v46, %v3009_v48  ;;  %v3007_v50 = vpop.permute.xlu0 %3006  ;;  %v3753_v46 = vadd.f32 %v3748_v42, %v3744_v40  ;;  %v6677_v40 = vld [vmem:[#allocation58] ss:$0 sm:$0xff] }
 0xd48   :  { %v10450_v52 = vadd.f32 %v3013_v49, %v10389_v27  ;;  %v3012_v56 = vsel %vm828_vm0, %v2913_v47, %v3007_v50 }
 0xd49   :  { %v10454_v57 = vadd.f32 %v3012_v56, %v10383_v20  ;;  %v3746_v56 = vld [vmem:[#allocation55 + $0x10] sm:$0xff] }
 0xd4a   :  { %v3030_v53 = vmax.f32 %v10450_v52, 0.0 }
 0xd4b   :  { %v3029_v54 = vmax.f32 %v10454_v57, 0.0 }
 0xd4c   :  { %3207 = vrot.lane.b32.xlu1 %v3030_v53, %s9636_s27  ;;  %v3034_v55 = vrot.slane %v3030_v53, 7  ;;  %v3449_v0 = vrot.slane %v3030_v53, 1 }
 0xd4d   :  { %3205 = vrot.lane.b32.xlu0 %v3029_v54, %s9636_s27  ;;  %7379 = vmatprep.mubr.msk.f32.mxu1 %vm828_vm0, %v3029_v54  ;;  %v3033_v27 = vrot.slane %v3029_v54, 7  ;;  %v3448_v63 = vrot.slane %v3029_v54, 1 }
 0xd4e   :  { %7380 = vmatmul.mubr.msk.f32.vlgmr.msra.gmra.mrb[8].mxu1 %vm828_vm0, %v3030_v53  ;;  %v3453_v11 = vsel %vm989_vm3, %v3449_v0, 0.0 }
 0xd4f   :  { %v3035_v20 = vsel %vm813_vm1, %v3033_v27, %v3034_v55  ;;  %8006 = vmatpush3.bf16.msra.mxu1 %v8003_v43  ;;  %v3450_v9 = vsel %vm989_vm3, %v3448_v63, %v3449_v0  ;;  %v3455_v13 = vsel %vm997_vm6, %v3453_v11, 0.0 }
 0xd50   :  { %3038 = vrot.lane.b32.xlu1 %v3035_v20, %s9636_s27  ;;  %8008 = vmatprep.subr.bf16.mxu1 %v8007_v59  ;;  %v3454_v10 = vsel %vm996_vm5, %v3450_v9, 0.0  ;;  %v3741_v20 = vld [vmem:[#allocation53 + $0x8] sm:$0xff] }
 0xd51   :  { %3036 = vrot.lane.b32.xlu0 %v3033_v27, %s9636_s27 }
 0xd53   :  { %8010 = vmatpush3.bf16.msra.mxu1 %v8007_v59 }
 0xd54   :  { %8012 = vmatprep.subr.bf16.mxu1 %v8011_v45 }
 0xdbe   :  { %v3208_v61 = vpop.permute.xlu1 %3207 }
 0xdbf   :  { %v3206_v62 = vpop.permute.xlu0 %3205 }
 0xdc0   :  { %7412 = vmatprep.mubr.msk.f32.mxu0 %vm828_vm0, %v3206_v62 }
 0xdc1   :  { %7413 = vmatmul.mubr.msk.f32.vlgmr.msra.gmra.mrb[14].mxu0 %vm828_vm0, %v3208_v61 }
 0xdc2   :  { %8030 = vmatpush3.bf16.msra.mxu0 %v8003_v43  ;;  %7423 = vmatprep.mubr.msk.f32.mxu0 %vm828_vm0, %v3029_v54  ;;  %v3039_v3 = vpop.permute.xlu1 %3038  ;;  %v3749_v43 = vld [vmem:[#allocation56 + $0x8] sm:$0xff]  ;;  %v3755_v54 = vadd.f32 %v3750_v51, %v3746_v56 }
 0xdc3   :  { %v3037_v4 = vpop.permute.xlu0 %3036  ;;  %8032 = vmatprep.subr.bf16.mxu0 %v8007_v59  ;;  %v3044_v8 = vsel %vm821_vm4, %v3039_v3, 0.0  ;;  %v3754_v47 = vadd.f32 %v3749_v43, %v3745_v41  ;;  %v10504_v27 = vpack.c.bf16 %v3749_v43, %v3748_v42  ;;  %v3940_v3 = vadd.f32 %v3745_v41, %v3741_v20 }
 0xdc4   :  { %v3042_v5 = vsel %vm813_vm1, 0.0, %v3037_v4 }
 0xdc5   :  { %v3043_v6 = vsel %vm820_vm2, %v3042_v5, 0.0  ;;  %v10496_v48 = vpack.c.bf16 %v3754_v47, %v3753_v46  ;;  %v10517_v4 = vpack.c.bf16 %v3940_v3, %v3939_v2  ;;  %v3742_v5 = vld [vmem:[#allocation53 + $0x10] sm:$0xff] }
 0xdc6   :  { %7390 = vmatprep.mubr.msk.f32.mxu1 %vm828_vm0, %v3043_v6  ;;  %8034 = vmatpush3.bf16.msra.mxu0 %v8007_v59  ;;  %v3743_v6 = vld [vmem:[#allocation53 + $0x18] sm:$0xff] }
 0xdc7   :  { %7391 = vmatmul.mubr.msk.f32.vlgmr.msra.gmra.mrb[8].mxu1 %vm828_vm0, %v3044_v8  ;;  %8036 = vmatprep.subr.bf16.mxu0 %v8011_v45  ;;  %v3942_v8 = vadd.f32 %v3747_v58, %v3743_v6 }
 0xdc8   :  { %8014 = vmatpush3.bf16.msra.mxu1 %v8011_v45  ;;  %7401 = vmatprep.mubr.msk.f32.mxu1 %vm828_vm0, %v3206_v62 }
 0xdc9   :  { %7424 = vmatmul.mubr.msk.f32.vlgmr.msra.gmra.mrb[14].mxu0 %vm828_vm0, %v3030_v53  ;;  %8016 = vmatprep.subr.bf16.mxu1 %v8015_v7  ;;  %v3751_v53 = vld [vmem:[#allocation56 + $0x18] sm:$0xff] }
 0xdca   :  { %8038 = vmatpush3.bf16.msra.mxu0 %v8011_v45  ;;  %7434 = vmatprep.mubr.msk.f32.mxu0 %vm828_vm0, %v3454_v10  ;;  %v3756_v55 = vadd.f32 %v3751_v53, %v3747_v58  ;;  %v10506_v60 = vpack.c.bf16 %v3751_v53, %v3750_v51  ;;  %v10508_v45 = vpack.c.bf16 %v3741_v20, %v3740_v44  ;;  %v4460_v58 = vld [vmem:[#allocation61 + $0x18] sm:$0xff] }
 0xdcb   :  { %8040 = vmatprep.subr.bf16.mxu0 %v8015_v7 }
 0xdcc   :  { %8018 = vmatpush3.bf16.msra.mxu1 %v8015_v7  ;;  %v10500_v59 = vpack.c.bf16 %v3756_v55, %v3755_v54 }
 0xdcd   :  { %8044 = vmatprep.subr.bf16.mxu1 %v8043_v16 }
 0xdce   :  { %8042 = vmatpush3.bf16.msra.mxu0 %v8015_v7  ;;  %v3941_v7 = vadd.f32 %v3746_v56, %v3742_v5  ;;  %v4459_v56 = vld [vmem:[#allocation61 + $0x10] sm:$0xff] }
 0xdcf   :  { %7402 = vmatmul.mubr.msk.f32.vlgmr.msra.gmra.mrb[8].mxu1 %vm828_vm0, %v3208_v61  ;;  %8052 = vmatprep.subr.bf16.mxu0 %v8043_v16  ;;  %v6668_v61 = vld [vmem:[#allocation52] ss:$0 sm:$0xff]  ;;  %v10584_v51 = vpack.c.bf16 %v4460_v58, %v4459_v56 }
 0xdd0   :  { %8046 = vmatpush3.bf16.msra.mxu1 %v8043_v16  ;;  %v10520_v9 = vpack.c.bf16 %v3942_v8, %v3941_v7 }
 0xdd1   :  { %7435 = vmatmul.mubr.msk.f32.vlgmr.msra.gmra.mrb[14].mxu0 %vm828_vm0, %v3455_v13  ;;  %8048 = vmatprep.subr.bf16.mxu1 %v8047_v19 }
 0xdd2   :  { %8054 = vmatpush3.bf16.msra.mxu0 %v8043_v16 }
 0xdd3   :  { %8056 = vmatprep.subr.bf16.mxu0 %v8047_v19 }
 0xdd4   :  { %8050 = vmatpush3.bf16.msra.mxu1 %v8047_v19 }
 0xdd5   :  { %8060 = vmatprep.subr.bf16.mxu1 %v10496_v48 }
 0xdd6   :  { %8058 = vmatpush3.bf16.msra.mxu0 %v8047_v19 }
 0xdd7   :  { %8076 = vmatprep.subr.bf16.mxu0 %v10504_v27 }
 0xea2   :  { %v7403_v23 = vpop.f32.mrb[8].mxu1 }
 0xea3   :  { %v3297_v24 = vadd.f32 %v7403_v23, %v6661_v21  ;;  %v3279_v25 = vpop.f32.mrb[9].mxu1 }
 0xea4   :  { %v3296_v26 = vadd.f32 %v6661_v21, %v3279_v25  ;;  %v7436_v28 = vpop.f32.mrb[14].mxu0 }
 0xea5   :  { %v3540_v29 = vadd.f32 %v7436_v28, %v6661_v21  ;;  %v3528_v30 = vpop.f32.mrb[15].mxu0 }
 0xea6   :  { %v3539_v31 = vadd.f32 %v6661_v21, %v3528_v30  ;;  %v8071_v21 = vpack.c.bf16 %v3743_v6, %v3742_v5  ;;  %v4456_v5 = vld [vmem:[#allocation59 + $0x18] sm:$0xff] }
 0xea7   :  { %3545 = vrot.lane.b32.xlu1 %v3540_v29, %s9635_s12 }
 0xea8   :  { %3543 = vrot.lane.b32.xlu0 %v3539_v31, %s9635_s12 }
 0xf19   :  { %v3546_v32 = vpop.permute.xlu1 %3545 }
 0xf1a   :  { %v3550_v33 = vsel %vm828_vm0, %v3297_v24, %v3546_v32  ;;  %v3544_v34 = vpop.permute.xlu0 %3543 }
 0xf1b   :  { %v3557_v35 = vmax.f32 %v3550_v33, 0.0  ;;  %v3549_v36 = vsel %vm828_vm0, %v3296_v26, %v3544_v34 }
 0xf1c   :  { %v3556_v37 = vmax.f32 %v3549_v36, 0.0 }
 0xf1d   :  { %3647 = vrot.lane.b32.xlu1 %v3557_v35, %s9636_s27 }
 0xf1e   :  { %3645 = vrot.lane.b32.xlu0 %v3556_v37, %s9636_s27  ;;  %7445 = vmatprep.mubr.msk.f32.mxu1 %vm828_vm0, %v3556_v37  ;;  %v4457_v37 = vld [vmem:[#allocation61] sm:$0xff] }
 0xf1f   :  { %7446 = vmatmul.mubr.msk.f32.vlgmr.msra.gmra.mrb[10].mxu1 %vm828_vm0, %v3557_v35 }
 0xf20   :  { %8062 = vmatpush3.bf16.msra.mxu1 %v10496_v48 }
 0xf21   :  { %8064 = vmatprep.subr.bf16.mxu1 %v10500_v59 }
 0xf24   :  { %8066 = vmatpush3.bf16.msra.mxu1 %v10500_v59 }
 0xf25   :  { %8068 = vmatprep.subr.bf16.mxu1 %v10508_v45 }
 0xf8f   :  { %v3648_v39 = vpop.permute.xlu1 %3647 }
 0xf90   :  { %v3646_v38 = vpop.permute.xlu0 %3645 }
 0xf91   :  { %7456 = vmatprep.mubr.msk.f32.mxu0 %vm828_vm0, %v3646_v38  ;;  %v4458_v38 = vld [vmem:[#allocation61 + $0x8] sm:$0xff] }
 0xf92   :  { %7457 = vmatmul.mubr.msk.f32.vlgmr.msra.gmra.mrb[16].mxu0 %vm828_vm0, %v3648_v39  ;;  %v10576_v39 = vpack.c.bf16 %v4458_v38, %v4457_v37 }
 0xf93   :  { %8078 = vmatpush3.bf16.msra.mxu0 %v10504_v27 }
 0xf94   :  { %8080 = vmatprep.subr.bf16.mxu0 %v10506_v60 }
 0xf97   :  { %8082 = vmatpush3.bf16.msra.mxu0 %v10506_v60 }
 0xf98   :  { %8084 = vmatprep.subr.bf16.mxu0 %v10517_v4 }
 0xff2   :  { %v7447_v49 = vpop.f32.mrb[10].mxu1 }
 0xff3   :  { %v3636_v50 = vpop.f32.mrb[11].mxu1  ;;  %v3642_v10 = vadd.f32 %v7447_v49, %v6668_v61 }
 0xff4   :  { %v3637_v11 = vadd.f32 %v6668_v61, %v3636_v50 }
0x1065   :  { %v7458_v62 = vpop.f32.mrb[16].mxu0 }
0x1066   :  { %v3725_v63 = vadd.f32 %v7458_v62, %v6668_v61  ;;  %v3719_v0 = vpop.f32.mrb[17].mxu0 }
0x1067   :  { %v3720_v1 = vadd.f32 %v6668_v61, %v3719_v0  ;;  %v4454_v61 = vld [vmem:[#allocation59 + $0x8] sm:$0xff] }
0x1068   :  { %3732 = vrot.lane.b32.xlu1 %v3725_v63, %s9635_s12 }
0x1069   :  { %3730 = vrot.lane.b32.xlu0 %v3720_v1, %s9635_s12 }
0x10da   :  { %v3733_v13 = vpop.permute.xlu1 %3732 }
0x10db   :  { %v3737_v14 = vsel %vm828_vm0, %v3642_v10, %v3733_v13  ;;  %v3731_v15 = vpop.permute.xlu0 %3730 }
0x10dc   :  { %v3739_v16 = vadd.f32 %v3737_v14, %v10450_v52  ;;  %v3736_v17 = vsel %vm828_vm0, %v3637_v11, %v3731_v15 }
0x10dd   :  { %v3738_v18 = vadd.f32 %v3736_v17, %v10454_v57  ;;  %v4461_v17 = vld [vmem:[#allocation62] sm:$0xff] }
0x10de   :  { %3945 = vrot.lane.b32.xlu1 %v3739_v16, %s9636_s27  ;;  %v3760_v19 = vrot.slane %v3739_v16, 7  ;;  %v4256_v26 = vrot.slane %v3739_v16, 1 }
0x10df   :  { %3943 = vrot.lane.b32.xlu0 %v3738_v18, %s9636_s27  ;;  %7467 = vmatprep.mubr.msk.f32.mxu1 %vm828_vm0, %v3738_v18  ;;  %v3759_v23 = vrot.slane %v3738_v18, 7  ;;  %v4255_v25 = vrot.slane %v3738_v18, 1 }
0x10e0   :  { %7468 = vmatmul.mubr.msk.f32.vlgmr.msra.gmra.mrb[12].mxu1 %vm828_vm0, %v3739_v16  ;;  %v4260_v35 = vsel %vm989_vm3, %v4256_v26, 0.0 }
0x10e1   :  { %v3761_v24 = vsel %vm813_vm1, %v3759_v23, %v3760_v19  ;;  %8070 = vmatpush3.bf16.msra.mxu1 %v10508_v45  ;;  %v4257_v33 = vsel %vm989_vm3, %v4255_v25, %v4256_v26  ;;  %v4262_v36 = vsel %vm997_vm6, %v4260_v35, 0.0 }
0x10e2   :  { %3764 = vrot.lane.b32.xlu1 %v3761_v24, %s9636_s27  ;;  %8072 = vmatprep.subr.bf16.mxu1 %v8071_v21  ;;  %v4261_v34 = vsel %vm996_vm5, %v4257_v33, 0.0 }
0x10e3   :  { %3762 = vrot.lane.b32.xlu0 %v3759_v23, %s9636_s27 }
0x10e5   :  { %8074 = vmatpush3.bf16.msra.mxu1 %v8071_v21 }
0x10e6   :  { %8092 = vmatprep.subr.bf16.mxu1 %v10496_v48 }
0x1150   :  { %v3946_v52 = vpop.permute.xlu1 %3945 }
0x1151   :  { %v3944_v57 = vpop.permute.xlu0 %3943 }
0x1152   :  { %7489 = vmatprep.mubr.msk.f32.mxu0 %vm828_vm0, %v3944_v57 }
0x1153   :  { %7490 = vmatmul.mubr.msk.f32.vlgmr.msra.gmra.mrb[18].mxu0 %vm828_vm0, %v3946_v52 }
0x1154   :  { %8086 = vmatpush3.bf16.msra.mxu0 %v10517_v4  ;;  %7500 = vmatprep.mubr.msk.f32.mxu0 %vm828_vm0, %v3738_v18  ;;  %v3765_v28 = vpop.permute.xlu1 %3764 }
0x1155   :  { %v3763_v29 = vpop.permute.xlu0 %3762  ;;  %8088 = vmatprep.subr.bf16.mxu0 %v10520_v9  ;;  %v3770_v32 = vsel %vm821_vm4, %v3765_v28, 0.0 }
0x1156   :  { %v3768_v30 = vsel %vm813_vm1, 0.0, %v3763_v29 }
0x1157   :  { %v3769_v31 = vsel %vm820_vm2, %v3768_v30, 0.0 }
0x1158   :  { %8090 = vmatpush3.bf16.msra.mxu0 %v10520_v9  ;;  %7478 = vmatprep.mubr.msk.f32.mxu1 %vm828_vm0, %v3769_v31 }
0x1159   :  { %7479 = vmatmul.mubr.msk.f32.vlgmr.msra.gmra.mrb[12].mxu1 %vm828_vm0, %v3770_v32  ;;  %8108 = vmatprep.subr.bf16.mxu0 %v10504_v27 }
0x115a   :  { %8094 = vmatpush3.bf16.msra.mxu1 %v10496_v48  ;;  %7511 = vmatprep.mubr.msk.f32.mxu1 %vm828_vm0, %v3944_v57 }
0x115b   :  { %7501 = vmatmul.mubr.msk.f32.vlgmr.msra.gmra.mrb[18].mxu0 %vm828_vm0, %v3739_v16  ;;  %8096 = vmatprep.subr.bf16.mxu1 %v10500_v59 }
0x115c   :  { %8110 = vmatpush3.bf16.msra.mxu0 %v10504_v27  ;;  %7533 = vmatprep.mubr.msk.f32.mxu0 %vm828_vm0, %v4261_v34 }
0x115d   :  { %8112 = vmatprep.subr.bf16.mxu0 %v10506_v60 }
0x115e   :  { %8098 = vmatpush3.bf16.msra.mxu1 %v10500_v59 }
0x115f   :  { %8100 = vmatprep.subr.bf16.mxu1 %v10508_v45 }
0x1160   :  { %8114 = vmatpush3.bf16.msra.mxu0 %v10506_v60 }
0x1161   :  { %7512 = vmatmul.mubr.msk.f32.vlgmr.msra.gmra.mrb[14].mxu1 %vm828_vm0, %v3946_v52  ;;  %8116 = vmatprep.subr.bf16.mxu0 %v10517_v4 }
0x1162   :  { %8102 = vmatpush3.bf16.msra.mxu1 %v10508_v45  ;;  %7522 = vmatprep.mubr.msk.f32.mxu1 %vm828_vm0, %v3738_v18  ;;  %v4453_v45 = vld [vmem:[#allocation59] sm:$0xff]  ;;  %v4462_v18 = vld [vmem:[#allocation62 + $0x8] sm:$0xff] }
0x1163   :  { %7534 = vmatmul.mubr.msk.f32.vlgmr.msra.gmra.mrb[20].mxu0 %vm828_vm0, %v4262_v36  ;;  %8104 = vmatprep.subr.bf16.mxu1 %v8071_v21  ;;  %v10594_v62 = vpack.c.bf16 %v4454_v61, %v4453_v45 }
0x1164   :  { %8118 = vmatpush3.bf16.msra.mxu0 %v10517_v4  ;;  %7544 = vmatprep.mubr.msk.f32.mxu0 %vm828_vm0, %v3944_v57  ;;  %v4455_v4 = vld [vmem:[#allocation59 + $0x10] sm:$0xff]  ;;  %v4464_v57 = vld [vmem:[#allocation62 + $0x18] sm:$0xff] }
0x1165   :  { %8120 = vmatprep.subr.bf16.mxu0 %v10520_v9  ;;  %v10611_v15 = vpack.c.bf16 %v4456_v5, %v4455_v4 }
0x1166   :  { %8106 = vmatpush3.bf16.msra.mxu1 %v8071_v21  ;;  %v10624_v21 = vpack.c.bf16 %v4462_v18, %v4461_v17  ;;  %v5490_v18 = vld [vmem:[#allocation65 + $0x10] sm:$0xff] }
0x1167   :  { %8124 = vmatprep.subr.bf16.mxu1 %v10576_v39 }
0x1168   :  { %8122 = vmatpush3.bf16.msra.mxu0 %v10520_v9 }
0x1169   :  { %7523 = vmatmul.mubr.msk.f32.vlgmr.msra.gmra.mrb[14].mxu1 %vm828_vm0, %v3739_v16  ;;  %8148 = vmatprep.subr.bf16.mxu0 %v10576_v39 }
0x116a   :  { %8126 = vmatpush3.bf16.msra.mxu1 %v10576_v39 }
0x116b   :  { %7545 = vmatmul.mubr.msk.f32.vlgmr.msra.gmra.mrb[20].mxu0 %vm828_vm0, %v3946_v52  ;;  %8128 = vmatprep.subr.bf16.mxu1 %v10584_v51  ;;  %v4463_v52 = vld [vmem:[#allocation62 + $0x10] sm:$0xff] }
0x116c   :  { %8150 = vmatpush3.bf16.msra.mxu0 %v10576_v39  ;;  %v8143_v30 = vpack.c.bf16 %v4464_v57, %v4463_v52 }
0x116d   :  { %8152 = vmatprep.subr.bf16.mxu0 %v10584_v51 }
0x116e   :  { %8130 = vmatpush3.bf16.msra.mxu1 %v10584_v51 }
0x116f   :  { %8132 = vmatprep.subr.bf16.mxu1 %v10594_v62 }
0x1170   :  { %8154 = vmatpush3.bf16.msra.mxu0 %v10584_v51 }
0x1171   :  { %8156 = vmatprep.subr.bf16.mxu0 %v10594_v62 }
0x122c   :  { %v7480_v41 = vpop.f32.mrb[12].mxu1 }
0x122d   :  { %v3938_v42 = vadd.f32 %v7480_v41, %v6677_v40  ;;  %v3922_v43 = vpop.f32.mrb[13].mxu1 }
0x122e   :  { %v3937_v46 = vadd.f32 %v6677_v40, %v3922_v43  ;;  %v7502_v47 = vpop.f32.mrb[18].mxu0  ;;  %v5493_v43 = vld [vmem:[#allocation67 + $0x8] sm:$0xff] }
0x122f   :  { %v4102_v48 = vadd.f32 %v7502_v47, %v6677_v40  ;;  %v4092_v49 = vpop.f32.mrb[19].mxu0  ;;  %v6696_v47 = vld [vmem:[#allocation64] ss:$0 sm:$0xff] }
0x1230   :  { %v4101_v50 = vadd.f32 %v6677_v40, %v4092_v49 }
0x1231   :  { %4425 = vrot.lane.b32.xlu1 %v4102_v48, %s9635_s12 }
0x1232   :  { %4423 = vrot.lane.b32.xlu0 %v4101_v50, %s9635_s12 }
0x123c   :  { %v7524_v53 = vpop.f32.mrb[14].mxu1 }
0x123d   :  { %v4254_v54 = vadd.f32 %v7524_v53, %v6677_v40  ;;  %v4244_v55 = vpop.f32.mrb[15].mxu1 }
0x123e   :  { %v4253_v59 = vadd.f32 %v6677_v40, %v4244_v55  ;;  %v7546_v27 = vpop.f32.mrb[20].mxu0 }
0x123f   :  { %v4410_v60 = vpop.f32.mrb[21].mxu0  ;;  %4433 = vrot.lane.b32.xlu1 %v4254_v54, %s9637_s26  ;;  %v4420_v44 = vadd.f32 %v7546_v27, %v6677_v40  ;;  %v5494_v27 = vld [vmem:[#allocation67 + $0x10] sm:$0xff] }
0x1240   :  { %4431 = vrot.lane.b32.xlu0 %v4253_v59, %s9637_s26  ;;  %v4419_v20 = vadd.f32 %v6677_v40, %v4410_v60  ;;  %v5495_v60 = vld [vmem:[#allocation67 + $0x18] sm:$0xff] }
0x1243   :  { %4441 = vrot.lane.b32.xlu1 %v4420_v44, %s9636_s27  ;;  %v10708_v44 = vpack.c.bf16 %v5495_v60, %v5494_v27 }
0x1244   :  { %4439 = vrot.lane.b32.xlu0 %v4419_v20, %s9636_s27 }
0x12a3   :  { %v4426_v63 = vpop.permute.xlu1 %4425 }
0x12a4   :  { %v4424_v0 = vpop.permute.xlu0 %4423  ;;  %v4446_v3 = vsel %vm828_vm0, %v3938_v42, %v4426_v63  ;;  %v5492_v42 = vld [vmem:[#allocation67] sm:$0xff] }
0x12a5   :  { %v4445_v6 = vsel %vm828_vm0, %v3937_v46, %v4424_v0  ;;  %v10700_v46 = vpack.c.bf16 %v5493_v43, %v5492_v42 }
0x12b1   :  { %v4434_v1 = vpop.permute.xlu1 %4433 }
0x12b2   :  { %v4432_v2 = vpop.permute.xlu0 %4431  ;;  %v4449_v7 = vsel %vm4447_vm10, %v4446_v3, %v4434_v1 }
0x12b3   :  { %v4448_v9 = vsel %vm4447_vm10, %v4445_v6, %v4432_v2 }
0x12b5   :  { %v4442_v8 = vpop.permute.xlu1 %4441 }
0x12b6   :  { %v10603_v10 = vsel %vm4450_vm11, %v4449_v7, %v4442_v8  ;;  %v4440_v11 = vpop.permute.xlu0 %4439  ;;  %v5488_v7 = vld [vmem:[#allocation65] sm:$0xff]  ;;  %v5489_v8 = vld [vmem:[#allocation65 + $0x8] sm:$0xff] }
0x12b7   :  { %v10606_v13 = vsel %vm4450_vm11, %v4448_v9, %v4440_v11  ;;  %4642 = vrot.lane.b32.xlu1 %v10603_v10, %s9636_s27  ;;  %v4469_v14 = vrot.slane %v10603_v10, 7  ;;  %v5364_v37 = vrot.slane %v10603_v10, 1  ;;  %v10718_v9 = vpack.c.bf16 %v5489_v8, %v5488_v7 }
0x12b8   :  { %4640 = vrot.lane.b32.xlu0 %v10606_v13, %s9636_s27  ;;  %7555 = vmatprep.mubr.msk.f32.mxu1 %vm828_vm0, %v10606_v13  ;;  %v4468_v16 = vrot.slane %v10606_v13, 7  ;;  %v5363_v36 = vrot.slane %v10606_v13, 1 }
0x12b9   :  { %7556 = vmatmul.mubr.msk.f32.vlgmr.msra.gmra.mrb[16].mxu1 %vm828_vm0, %v10603_v10  ;;  %v5368_v40 = vsel %vm989_vm3, %v5364_v37, 0.0 }
0x12ba   :  { %v4470_v19 = vsel %vm813_vm1, %v4468_v16, %v4469_v14  ;;  %8134 = vmatpush3.bf16.msra.mxu1 %v10594_v62  ;;  %v5365_v38 = vsel %vm989_vm3, %v5363_v36, %v5364_v37  ;;  %v5370_v41 = vsel %vm997_vm6, %v5368_v40, 0.0  ;;  %v5498_v37 = vld [vmem:[#allocation68 + $0x10] sm:$0xff] }
0x12bb   :  { %4473 = vrot.lane.b32.xlu1 %v4470_v19, %s9635_s12  ;;  %8136 = vmatprep.subr.bf16.mxu1 %v10611_v15  ;;  %v5491_v19 = vld [vmem:[#allocation65 + $0x18] sm:$0xff] }
0x12bc   :  { %4471 = vrot.lane.b32.xlu0 %v4468_v16, %s9635_s12 }
0x12be   :  { %8138 = vmatpush3.bf16.msra.mxu1 %v10611_v15 }
0x12bf   :  { %4887 = vrot.lane.b32.xlu1 %v10603_v10, %s9637_s26  ;;  %8140 = vmatprep.subr.bf16.mxu1 %v10624_v21 }
0x12c0   :  { %4885 = vrot.lane.b32.xlu0 %v10606_v13, %s9637_s26 }
0x12c3   :  { %5126 = vrot.lane.b32.xlu1 %v10603_v10, %s9635_s12 }
0x12c4   :  { %5124 = vrot.lane.b32.xlu0 %v10606_v13, %s9635_s12 }
0x1329   :  { %v4643_v23 = vpop.permute.xlu1 %4642 }
0x132a   :  { %v4641_v24 = vpop.permute.xlu0 %4640 }
0x132b   :  { %7588 = vmatprep.mubr.msk.f32.mxu0 %vm828_vm0, %v4641_v24 }
0x132c   :  { %7589 = vmatmul.mubr.msk.f32.vlgmr.msra.gmra.mrb[22].mxu0 %vm828_vm0, %v4643_v23 }
0x132d   :  { %8158 = vmatpush3.bf16.msra.mxu0 %v10594_v62  ;;  %7599 = vmatprep.mubr.msk.f32.mxu0 %vm828_vm0, %v10606_v13  ;;  %v4474_v25 = vpop.permute.xlu1 %4473 }
0x132e   :  { %v4472_v26 = vpop.permute.xlu0 %4471  ;;  %8160 = vmatprep.subr.bf16.mxu0 %v10611_v15  ;;  %v4479_v31 = vsel %vm821_vm4, %v4474_v25, 0.0 }
0x132f   :  { %v4477_v28 = vsel %vm813_vm1, 0.0, %v4472_v26 }
0x1330   :  { %v4478_v29 = vsel %vm820_vm2, %v4477_v28, 0.0 }
0x1331   :  { %8162 = vmatpush3.bf16.msra.mxu0 %v10611_v15  ;;  %7566 = vmatprep.mubr.msk.f32.mxu1 %vm828_vm0, %v4478_v29  ;;  %v4888_v33 = vpop.permute.xlu1 %4887  ;;  %v10735_v29 = vpack.c.bf16 %v5491_v19, %v5490_v18 }
0x1332   :  { %7567 = vmatmul.mubr.msk.f32.vlgmr.msra.gmra.mrb[16].mxu1 %vm828_vm0, %v4479_v31  ;;  %8164 = vmatprep.subr.bf16.mxu0 %v10624_v21  ;;  %v4886_v32 = vpop.permute.xlu0 %4885  ;;  %v5496_v31 = vld [vmem:[#allocation68] sm:$0xff] }
0x1333   :  { %8142 = vmatpush3.bf16.msra.mxu1 %v10624_v21  ;;  %7577 = vmatprep.mubr.msk.f32.mxu1 %vm828_vm0, %v4641_v24 }
0x1334   :  { %7600 = vmatmul.mubr.msk.f32.vlgmr.msra.gmra.mrb[22].mxu0 %vm828_vm0, %v10603_v10  ;;  %8144 = vmatprep.subr.bf16.mxu1 %v8143_v30 }
0x1335   :  { %8166 = vmatpush3.bf16.msra.mxu0 %v10624_v21  ;;  %7610 = vmatprep.mubr.msk.f32.mxu0 %vm828_vm0, %v4886_v32  ;;  %v5127_v35 = vpop.permute.xlu1 %5126 }
0x1336   :  { %8168 = vmatprep.subr.bf16.mxu0 %v8143_v30  ;;  %v5125_v34 = vpop.permute.xlu0 %5124 }
0x1337   :  { %8146 = vmatpush3.bf16.msra.mxu1 %v8143_v30 }
0x1338   :  { %8172 = vmatprep.subr.bf16.mxu1 %v10576_v39 }
0x1339   :  { %8170 = vmatpush3.bf16.msra.mxu0 %v8143_v30 }
0x133a   :  { %7578 = vmatmul.mubr.msk.f32.vlgmr.msra.gmra.mrb[16].mxu1 %vm828_vm0, %v4643_v23  ;;  %8196 = vmatprep.subr.bf16.mxu0 %v10576_v39 }
0x133b   :  { %8174 = vmatpush3.bf16.msra.mxu1 %v10576_v39  ;;  %7621 = vmatprep.mubr.msk.f32.mxu1 %vm828_vm0, %v4886_v32 }
0x133c   :  { %7611 = vmatmul.mubr.msk.f32.vlgmr.msra.gmra.mrb[22].mxu0 %vm828_vm0, %v4888_v33  ;;  %8176 = vmatprep.subr.bf16.mxu1 %v10584_v51 }
0x133d   :  { %8198 = vmatpush3.bf16.msra.mxu0 %v10576_v39  ;;  %7654 = vmatprep.mubr.msk.f32.mxu0 %vm828_vm0, %v5125_v34  ;;  %v5369_v39 = vsel %vm996_vm5, %v5365_v38, 0.0  ;;  %v5499_v38 = vld [vmem:[#allocation68 + $0x18] sm:$0xff] }
0x133e   :  { %8200 = vmatprep.subr.bf16.mxu0 %v10584_v51  ;;  %v8239_v43 = vpack.c.bf16 %v5499_v38, %v5498_v37 }
0x133f   :  { %8178 = vmatpush3.bf16.msra.mxu1 %v10584_v51 }
0x1340   :  { %8180 = vmatprep.subr.bf16.mxu1 %v10594_v62 }
0x1341   :  { %8202 = vmatpush3.bf16.msra.mxu0 %v10584_v51 }
0x1342   :  { %7622 = vmatmul.mubr.msk.f32.vlgmr.msra.gmra.mrb[18].mxu1 %vm828_vm0, %v4888_v33  ;;  %8204 = vmatprep.subr.bf16.mxu0 %v10594_v62 }
0x1343   :  { %8182 = vmatpush3.bf16.msra.mxu1 %v10594_v62  ;;  %7632 = vmatprep.mubr.msk.f32.mxu1 %vm828_vm0, %v4641_v24 }
0x1344   :  { %7655 = vmatmul.mubr.msk.f32.vlgmr.msra.gmra.mrb[24].mxu0 %vm828_vm0, %v5127_v35  ;;  %8184 = vmatprep.subr.bf16.mxu1 %v10611_v15 }
0x1345   :  { %8206 = vmatpush3.bf16.msra.mxu0 %v10594_v62  ;;  %7665 = vmatprep.mubr.msk.f32.mxu0 %vm828_vm0, %v4886_v32  ;;  %v5497_v32 = vld [vmem:[#allocation68 + $0x8] sm:$0xff] }
0x1346   :  { %8208 = vmatprep.subr.bf16.mxu0 %v10611_v15 }
0x1347   :  { %8186 = vmatpush3.bf16.msra.mxu1 %v10611_v15 }
0x1348   :  { %8188 = vmatprep.subr.bf16.mxu1 %v10624_v21 }
0x1349   :  { %8210 = vmatpush3.bf16.msra.mxu0 %v10611_v15 }
0x134a   :  { %7633 = vmatmul.mubr.msk.f32.vlgmr.msra.gmra.mrb[18].mxu1 %vm828_vm0, %v4643_v23  ;;  %8212 = vmatprep.subr.bf16.mxu0 %v10624_v21 }
0x134b   :  { %8190 = vmatpush3.bf16.msra.mxu1 %v10624_v21  ;;  %7643 = vmatprep.mubr.msk.f32.mxu1 %vm828_vm0, %v5125_v34  ;;  %v10748_v34 = vpack.c.bf16 %v5497_v32, %v5496_v31 }
0x134c   :  { %7666 = vmatmul.mubr.msk.f32.vlgmr.msra.gmra.mrb[24].mxu0 %vm828_vm0, %v4888_v33  ;;  %8192 = vmatprep.subr.bf16.mxu1 %v8143_v30 }
0x134d   :  { %8214 = vmatpush3.bf16.msra.mxu0 %v10624_v21  ;;  %7676 = vmatprep.mubr.msk.f32.mxu0 %vm828_vm0, %v5369_v39 }
0x134e   :  { %8216 = vmatprep.subr.bf16.mxu0 %v8143_v30 }
0x134f   :  { %8194 = vmatpush3.bf16.msra.mxu1 %v8143_v30 }
0x1350   :  { %8220 = vmatprep.subr.bf16.mxu1 %v10700_v46 }
0x1351   :  { %8218 = vmatpush3.bf16.msra.mxu0 %v8143_v30 }
0x1352   :  { %7644 = vmatmul.mubr.msk.f32.vlgmr.msra.gmra.mrb[18].mxu1 %vm828_vm0, %v5127_v35  ;;  %8244 = vmatprep.subr.bf16.mxu0 %v10700_v46 }
0x1353   :  { %8222 = vmatpush3.bf16.msra.mxu1 %v10700_v46 }
0x1354   :  { %7677 = vmatmul.mubr.msk.f32.vlgmr.msra.gmra.mrb[24].mxu0 %vm828_vm0, %v5370_v41  ;;  %8224 = vmatprep.subr.bf16.mxu1 %v10708_v44 }
0x1355   :  { %8246 = vmatpush3.bf16.msra.mxu0 %v10700_v46 }
0x1356   :  { %8248 = vmatprep.subr.bf16.mxu0 %v10708_v44 }
0x1357   :  { %8226 = vmatpush3.bf16.msra.mxu1 %v10708_v44 }
0x1358   :  { %8228 = vmatprep.subr.bf16.mxu1 %v10718_v9 }
0x1359   :  { %8250 = vmatpush3.bf16.msra.mxu0 %v10708_v44 }
0x135a   :  { %8252 = vmatprep.subr.bf16.mxu0 %v10718_v9 }
0x140d   :  { %v7579_v48 = vpop.f32.mrb[16].mxu1 }
0x140e   :  { %v4732_v49 = vadd.f32 %v7579_v48, %v6696_v47  ;;  %v4714_v50 = vpop.f32.mrb[17].mxu1 }
0x140f   :  { %v4731_v56 = vadd.f32 %v6696_v47, %v4714_v50  ;;  %v7612_v58 = vpop.f32.mrb[22].mxu0 }
0x1410   :  { %v4971_v51 = vadd.f32 %v7612_v58, %v6696_v47  ;;  %v4959_v53 = vpop.f32.mrb[23].mxu0  ;;  %v4734_v14 = vmax.f32 %v4732_v49, 0.0 }
0x1411   :  { %v4970_v54 = vadd.f32 %v6696_v47, %v4959_v53  ;;  %v4733_v16 = vmax.f32 %v4731_v56, 0.0 }
0x1412   :  { %v4973_v55 = vmax.f32 %v4971_v51, 0.0 }
0x1413   :  { %v4972_v59 = vmax.f32 %v4970_v54, 0.0 }
0x1414   :  { %5462 = vrot.lane.b32.xlu1 %v4973_v55, %s9635_s12 }
0x1415   :  { %5460 = vrot.lane.b32.xlu0 %v4972_v59, %s9635_s12  ;;  %v6721_v59 = vld [vmem:[#allocation70] ss:$0 sm:$0xff] }
0x1425   :  { %v7645_v20 = vpop.f32.mrb[18].mxu1 }
0x1426   :  { %v5210_v45 = vadd.f32 %v7645_v20, %v6696_v47  ;;  %v5198_v61 = vpop.f32.mrb[19].mxu1 }
0x1427   :  { %v5209_v62 = vadd.f32 %v6696_v47, %v5198_v61  ;;  %v7678_v63 = vpop.f32.mrb[24].mxu0 }
0x1428   :  { %v5212_v0 = vmax.f32 %v5210_v45, 0.0  ;;  %v5455_v1 = vadd.f32 %v7678_v63, %v6696_v47  ;;  %v5443_v2 = vpop.f32.mrb[25].mxu0 }
0x1429   :  { %v5211_v3 = vmax.f32 %v5209_v62, 0.0  ;;  %v5454_v4 = vadd.f32 %v6696_v47, %v5443_v2 }
0x142a   :  { %5470 = vrot.lane.b32.xlu1 %v5212_v0, %s9637_s26  ;;  %v5457_v5 = vmax.f32 %v5455_v1, 0.0 }
0x142b   :  { %5468 = vrot.lane.b32.xlu0 %v5211_v3, %s9637_s26  ;;  %v5456_v6 = vmax.f32 %v5454_v4, 0.0 }
0x142e   :  { %5478 = vrot.lane.b32.xlu1 %v5457_v5, %s9636_s27 }
0x142f   :  { %5476 = vrot.lane.b32.xlu0 %v5456_v6, %s9636_s27 }
0x1486   :  { %v5463_v10 = vpop.permute.xlu1 %5462 }
0x1487   :  { %v5461_v11 = vpop.permute.xlu0 %5460  ;;  %v5483_v17 = vsel %vm828_vm0, %v4734_v14, %v5463_v10 }
0x1488   :  { %v5482_v21 = vsel %vm828_vm0, %v4733_v16, %v5461_v11 }
0x149c   :  { %v5471_v13 = vpop.permute.xlu1 %5470 }
0x149d   :  { %v5469_v15 = vpop.permute.xlu0 %5468  ;;  %v5485_v23 = vsel %vm4447_vm10, %v5483_v17, %v5471_v13 }
0x149e   :  { %v5484_v52 = vsel %vm4447_vm10, %v5482_v21, %v5469_v15 }
0x14a0   :  { %v5479_v24 = vpop.permute.xlu1 %5478 }
0x14a1   :  { %v10727_v57 = vsel %vm4450_vm11, %v5485_v23, %v5479_v24  ;;  %v5477_v25 = vpop.permute.xlu0 %5476 }
0x14a2   :  { %v10730_v26 = vsel %vm4450_vm11, %v5484_v52, %v5477_v25  ;;  %5677 = vrot.lane.b32.xlu1 %v10727_v57, %s9636_s27  ;;  %v5504_v28 = vrot.slane %v10727_v57, 7  ;;  %v6393_v58 = vrot.slane %v10727_v57, 1 }
0x14a3   :  { %5675 = vrot.lane.b32.xlu0 %v10730_v26, %s9636_s27  ;;  %7687 = vmatprep.mubr.msk.f32.mxu1 %vm828_vm0, %v10730_v26  ;;  %v5503_v30 = vrot.slane %v10730_v26, 7 }
0x14a4   :  { %7688 = vmatmul.mubr.msk.f32.vlgmr.msra.gmra.mrb[20].mxu1 %vm828_vm0, %v10727_v57  ;;  %v6397_v54 = vsel %vm989_vm3, %v6393_v58, 0.0 }
0x14a5   :  { %v5505_v33 = vsel %vm813_vm1, %v5503_v30, %v5504_v28  ;;  %8230 = vmatpush3.bf16.msra.mxu1 %v10718_v9  ;;  %v6399_v55 = vsel %vm997_vm6, %v6397_v54, 0.0 }
0x14a6   :  { %5508 = vrot.lane.b32.xlu1 %v5505_v33, %s9635_s12  ;;  %8232 = vmatprep.subr.bf16.mxu1 %v10735_v29 }
0x14a7   :  { %5506 = vrot.lane.b32.xlu0 %v5503_v30, %s9635_s12 }
0x14a9   :  { %8234 = vmatpush3.bf16.msra.mxu1 %v10735_v29 }
0x14aa   :  { %5920 = vrot.lane.b32.xlu1 %v10727_v57, %s9637_s26  ;;  %8236 = vmatprep.subr.bf16.mxu1 %v10748_v34 }
0x14ab   :  { %5918 = vrot.lane.b32.xlu0 %v10730_v26, %s9637_s26 }
0x14ae   :  { %6157 = vrot.lane.b32.xlu1 %v10727_v57, %s9635_s12 }
0x14af   :  { %6155 = vrot.lane.b32.xlu0 %v10730_v26, %s9635_s12 }
0x1514   :  { %v5678_v35 = vpop.permute.xlu1 %5677 }
0x1515   :  { %v5676_v36 = vpop.permute.xlu0 %5675 }
0x1516   :  { %7720 = vmatprep.mubr.msk.f32.mxu0 %vm828_vm0, %v5676_v36 }
0x1517   :  { %7721 = vmatmul.mubr.msk.f32.vlgmr.msra.gmra.mrb[26].mxu0 %vm828_vm0, %v5678_v35 }
0x1518   :  { %8254 = vmatpush3.bf16.msra.mxu0 %v10718_v9  ;;  %7731 = vmatprep.mubr.msk.f32.mxu0 %vm828_vm0, %v10730_v26  ;;  %v5509_v39 = vpop.permute.xlu1 %5508 }
0x1519   :  { %v5507_v40 = vpop.permute.xlu0 %5506  ;;  %8256 = vmatprep.subr.bf16.mxu0 %v10735_v29  ;;  %v5514_v47 = vsel %vm821_vm4, %v5509_v39, 0.0 }
0x151a   :  { %v5512_v41 = vsel %vm813_vm1, 0.0, %v5507_v40 }
0x151b   :  { %v5513_v42 = vsel %vm820_vm2, %v5512_v41, 0.0 }
0x151c   :  { %8258 = vmatpush3.bf16.msra.mxu0 %v10735_v29  ;;  %7698 = vmatprep.mubr.msk.f32.mxu1 %vm828_vm0, %v5513_v42  ;;  %v5921_v49 = vpop.permute.xlu1 %5920 }
0x151d   :  { %7699 = vmatmul.mubr.msk.f32.vlgmr.msra.gmra.mrb[20].mxu1 %vm828_vm0, %v5514_v47  ;;  %8260 = vmatprep.subr.bf16.mxu0 %v10748_v34  ;;  %v5919_v48 = vpop.permute.xlu0 %5918 }
0x151e   :  { %8238 = vmatpush3.bf16.msra.mxu1 %v10748_v34  ;;  %7709 = vmatprep.mubr.msk.f32.mxu1 %vm828_vm0, %v5676_v36 }
0x151f   :  { %7732 = vmatmul.mubr.msk.f32.vlgmr.msra.gmra.mrb[26].mxu0 %vm828_vm0, %v10727_v57  ;;  %8240 = vmatprep.subr.bf16.mxu1 %v8239_v43 }
0x1520   :  { %8262 = vmatpush3.bf16.msra.mxu0 %v10748_v34  ;;  %7742 = vmatprep.mubr.msk.f32.mxu0 %vm828_vm0, %v5919_v48  ;;  %v6158_v56 = vpop.permute.xlu1 %6157 }
0x1521   :  { %8264 = vmatprep.subr.bf16.mxu0 %v8239_v43  ;;  %v6156_v50 = vpop.permute.xlu0 %6155 }
0x1522   :  { %8242 = vmatpush3.bf16.msra.mxu1 %v8239_v43 }
0x1523   :  { %8268 = vmatprep.subr.bf16.mxu1 %v10700_v46 }
0x1524   :  { %8266 = vmatpush3.bf16.msra.mxu0 %v8239_v43 }
0x1525   :  { %7710 = vmatmul.mubr.msk.f32.vlgmr.msra.gmra.mrb[20].mxu1 %vm828_vm0, %v5678_v35  ;;  %8292 = vmatprep.subr.bf16.mxu0 %v10700_v46 }
0x1526   :  { %8270 = vmatpush3.bf16.msra.mxu1 %v10700_v46  ;;  %7753 = vmatprep.mubr.msk.f32.mxu1 %vm828_vm0, %v5919_v48 }
0x1527   :  { %7743 = vmatmul.mubr.msk.f32.vlgmr.msra.gmra.mrb[26].mxu0 %vm828_vm0, %v5921_v49  ;;  %8272 = vmatprep.subr.bf16.mxu1 %v10708_v44 }
0x1528   :  { %8294 = vmatpush3.bf16.msra.mxu0 %v10700_v46  ;;  %7786 = vmatprep.mubr.msk.f32.mxu0 %vm828_vm0, %v6156_v50  ;;  %v6392_v46 = vrot.slane %v10730_v26, 1 }
0x1529   :  { %8296 = vmatprep.subr.bf16.mxu0 %v10708_v44 }
0x152a   :  { %8274 = vmatpush3.bf16.msra.mxu1 %v10708_v44  ;;  %v6394_v51 = vsel %vm989_vm3, %v6392_v46, %v6393_v58 }
0x152b   :  { %8276 = vmatprep.subr.bf16.mxu1 %v10718_v9  ;;  %v6398_v53 = vsel %vm996_vm5, %v6394_v51, 0.0 }
0x152c   :  { %8298 = vmatpush3.bf16.msra.mxu0 %v10708_v44 }
0x152d   :  { %7754 = vmatmul.mubr.msk.f32.vlgmr.msra.gmra.mrb[22].mxu1 %vm828_vm0, %v5921_v49  ;;  %8300 = vmatprep.subr.bf16.mxu0 %v10718_v9 }
0x152e   :  { %8278 = vmatpush3.bf16.msra.mxu1 %v10718_v9  ;;  %7764 = vmatprep.mubr.msk.f32.mxu1 %vm828_vm0, %v5676_v36 }
0x152f   :  { %7787 = vmatmul.mubr.msk.f32.vlgmr.msra.gmra.mrb[28].mxu0 %vm828_vm0, %v6158_v56  ;;  %8280 = vmatprep.subr.bf16.mxu1 %v10735_v29 }
0x1530   :  { %8302 = vmatpush3.bf16.msra.mxu0 %v10718_v9  ;;  %7797 = vmatprep.mubr.msk.f32.mxu0 %vm828_vm0, %v5919_v48 }
0x1531   :  { %8304 = vmatprep.subr.bf16.mxu0 %v10735_v29 }
0x1532   :  { %8282 = vmatpush3.bf16.msra.mxu1 %v10735_v29 }
0x1533   :  { %8284 = vmatprep.subr.bf16.mxu1 %v10748_v34 }
0x1534   :  { %8306 = vmatpush3.bf16.msra.mxu0 %v10735_v29 }
0x1535   :  { %7765 = vmatmul.mubr.msk.f32.vlgmr.msra.gmra.mrb[22].mxu1 %vm828_vm0, %v5678_v35  ;;  %8308 = vmatprep.subr.bf16.mxu0 %v10748_v34 }
0x1536   :  { %8286 = vmatpush3.bf16.msra.mxu1 %v10748_v34  ;;  %7775 = vmatprep.mubr.msk.f32.mxu1 %vm828_vm0, %v6156_v50 }
0x1537   :  { %7798 = vmatmul.mubr.msk.f32.vlgmr.msra.gmra.mrb[28].mxu0 %vm828_vm0, %v5921_v49  ;;  %8288 = vmatprep.subr.bf16.mxu1 %v8239_v43 }
0x1538   :  { %8310 = vmatpush3.bf16.msra.mxu0 %v10748_v34  ;;  %7808 = vmatprep.mubr.msk.f32.mxu0 %vm828_vm0, %v6398_v53 }
0x1539   :  { %8312 = vmatprep.subr.bf16.mxu0 %v8239_v43 }
0x153a   :  { %8290 = vmatpush3.bf16.msra.mxu1 %v8239_v43 }
0x153c   :  { %8314 = vmatpush3.bf16.msra.mxu0 %v8239_v43 }
0x153d   :  { %7776 = vmatmul.mubr.msk.f32.vlgmr.msra.gmra.mrb[22].mxu1 %vm828_vm0, %v6158_v56 }
0x153f   :  { %7809 = vmatmul.mubr.msk.f32.vlgmr.msra.gmra.mrb[28].mxu0 %vm828_vm0, %v6399_v55 }
0x15f8   :  { %v7711_v12 = vpop.f32.mrb[20].mxu1 }
0x15f9   :  { %v5767_v27 = vadd.f32 %v7711_v12, %v6721_v59  ;;  %v5749_v60 = vpop.f32.mrb[21].mxu1 }
0x15fa   :  { %v5766_v44 = vadd.f32 %v6721_v59, %v5749_v60  ;;  %v7744_v20 = vpop.f32.mrb[26].mxu0 }
0x15fb   :  { %v6004_v45 = vadd.f32 %v7744_v20, %v6721_v59  ;;  %v5992_v61 = vpop.f32.mrb[27].mxu0 }
0x15fc   :  { %v6003_v62 = vadd.f32 %v6721_v59, %v5992_v61 }
0x15fd   :  { %6489 = vrot.lane.b32.xlu1 %v6004_v45, %s9635_s12 }
0x15fe   :  { %6487 = vrot.lane.b32.xlu0 %v6003_v62, %s9635_s12 }
0x1610   :  { %v7777_v63 = vpop.f32.mrb[22].mxu1 }
0x1611   :  { %v6241_v0 = vadd.f32 %v7777_v63, %v6721_v59  ;;  %v6229_v1 = vpop.f32.mrb[23].mxu1 }
0x1612   :  { %v6240_v22 = vadd.f32 %v6721_v59, %v6229_v1  ;;  %v7810_v2 = vpop.f32.mrb[28].mxu0 }
0x1613   :  { %v6472_v3 = vpop.f32.mrb[29].mxu0  ;;  %6497 = vrot.lane.b32.xlu1 %v6241_v0, %s9637_s26  ;;  %v6484_v4 = vadd.f32 %v7810_v2, %v6721_v59 }
0x1614   :  { %6495 = vrot.lane.b32.xlu0 %v6240_v22, %s9637_s26  ;;  %v6483_v5 = vadd.f32 %v6721_v59, %v6472_v3 }
0x1617   :  { %6505 = vrot.lane.b32.xlu1 %v6484_v4, %s9636_s27 }
0x1618   :  { %6503 = vrot.lane.b32.xlu0 %v6483_v5, %s9636_s27 }
0x166f   :  { %v6490_v6 = vpop.permute.xlu1 %6489 }
0x1670   :  { %v6488_v7 = vpop.permute.xlu0 %6487  ;;  %v6510_v10 = vsel %vm828_vm0, %v5767_v27, %v6490_v6 }
0x1671   :  { %v6509_v11 = vsel %vm828_vm0, %v5766_v44, %v6488_v7 }
0x1685   :  { %v6498_v8 = vpop.permute.xlu1 %6497 }
0x1686   :  { %v6496_v9 = vpop.permute.xlu0 %6495  ;;  %v6512_v13 = vsel %vm4447_vm10, %v6510_v10, %v6498_v8 }
0x1687   :  { %v6511_v15 = vsel %vm4447_vm10, %v6509_v11, %v6496_v9 }
0x1689   :  { %v6506_v14 = vpop.permute.xlu1 %6505 }
0x168a   :  { %v6514_v16 = vsel %vm4450_vm11, %v6512_v13, %v6506_v14  ;;  %v6504_v17 = vpop.permute.xlu0 %6503 }
0x168b   :  { %6516 = vst [vmem:[#allocation71 + $0x8] sm:$0xff] %v6514_v16  ;;  %v6513_v18 = vsel %vm4450_vm11, %v6511_v15, %v6504_v17 }
0x168c   :  { %6515 = vst [vmem:[#allocation71] sm:$0xff] %v6513_v18 }
0x168d   :  { %9484 = shalt.err (!%p9481_p0)
}
0x168e   :  { %s9485_s28 = scalar_lea.hbm %s9872_s13, 256 }
0x168f   :  { %p9486_p1 = scmp.ne.s32.totalorder %s9872_s13, %s9485_s28  ;;  %p9489_p2 = scmp.lt.u32.totalorder %s9485_s28, %s9872_s13 }
0x1691   :  { %p9491_p3 = pnand %p9489_p2, %p9486_p1 }
0x1693   :  { %9494 = shalt.err (!%p9491_p3)
}
0x1694   :  { %6528 = dma.vmem_to_hbm [thread:$0]  %s6523_s9, 256, %s9872_s13, [#allocation4], %s9590_s18, %s9590_s18, %s9591_s22  }
0x1695   :  { %9541 = dma.done.wait [#allocation4], 256  }
0x1696   :  { %9542 = vsyncadd [#allocation4], 4294967040 }
0x1697   :  { %6532 = vsyncpa [#allocation3], 1 }
0x1698   :  { %6533 = vsyncpa [#allocation6], 1 }
0x1699   :  { %6534 = vsyncpa [#allocation9], 1 }
0x169a   :  { %6535 = vsyncpa [#allocation12], 1 }
0x169b   :  { %6536 = vsyncpa [#allocation15], 1 }
0x169c   :  { %6537 = vsyncpa [#allocation18], 1 }
0x169d   :  { %6538 = vsyncpa [#allocation21], 1 }
0x169e   :  { %6539 = vsyncpa [#allocation24], 1 }
0x169f   :  { %6540 = vsyncpa [#allocation27], 1 }
0x16a0   :  { %6541 = vsyncpa [#allocation30], 1 }
0x16a1   :  { %6542 = vsyncpa [#allocation33], 1 }
0x16a2   :  { %6543 = vsyncpa [#allocation36], 1 }
0x16a3   :  { %6544 = vsyncpa [#allocation39], 1 }
0x16a4   :  { %6545 = vsyncpa [#allocation42], 1 }
0x16a5   :  { %6546 = vsyncpa [#allocation45], 1 }
0x16a6   :  { %6547 = vsyncpa [#allocation48], 1 }
0x16a7   :  { %6548 = vsyncpa [#allocation51], 1 }
0x16a8   :  { %6549 = vsyncpa [#allocation54], 1 }
0x16a9   :  { %6550 = vsyncpa [#allocation57], 1 }
0x16aa   :  { %6551 = vsyncpa [#allocation60], 1 }
0x16ab   :  { %6552 = vsyncpa [#allocation63], 1 }
0x16ac   :  { %6553 = vsyncpa [#allocation66], 1 }
0x16ad   :  { %6554 = vsyncpa [#allocation69], 1 }
0x16ae   :  { %6555 = vsyncpa [#allocation4], 1 }

</bundles_post_ra>
